<compile_context>
chip_gen: v7x
topology: tpu7x:2x2x1
jax: 0.10.0
libtpu: 0.0.40
codegen_flags: <defaults>
</compile_context>

<pallas_src>
import functools

import jax
import jax.numpy as jnp
from jax.experimental import pallas as pl
from jax.experimental.pallas import tpu as pltpu

_LANE = 128
_SUBLANE = 8


def _round_up(n, m):
    return ((n + m - 1) // m) * m


def _pad2(a, rows, cols):
    r, c = a.shape
    return jnp.pad(a, ((0, rows - r), (0, cols - c)))


# ---------------------------------------------------------------------------
# Kernel: one batch tile through all 4 layers, entirely in VMEM.
# ---------------------------------------------------------------------------
def _encoder_fused_kernel(x_ref, w1_ref, b1_ref, w2_ref, b2_ref,
                          w3_ref, b3_ref, w4_ref, b4_ref,
                          o1_ref, o2_ref, o3_ref, o4_ref,
                          *, compute_dtype):
    def layer(a_cd, w_ref, b_ref, relu):
        # MXU matmul with f32 accumulation; bias add + ReLU in f32 (VPU).
        y = jnp.dot(a_cd, w_ref[...], preferred_element_type=jnp.float32)
        y = y + b_ref[...]            # b is [1, out] -> broadcasts over batch
        if relu:
            y = jnp.maximum(y, 0.0)
        return y

    # Each stored intermediate is exactly the (compute-dtype-rounded) value
    # consumed by the next layer -> returned chain is self-consistent.
    d1 = layer(x_ref[...], w1_ref, b1_ref, True)
    d1_cd = d1.astype(compute_dtype)
    o1_ref[...] = d1_cd.astype(o1_ref.dtype)

    d2 = layer(d1_cd, w2_ref, b2_ref, True)
    d2_cd = d2.astype(compute_dtype)
    o2_ref[...] = d2_cd.astype(o2_ref.dtype)

    d3 = layer(d2_cd, w3_ref, b3_ref, True)
    d3_cd = d3.astype(compute_dtype)
    o3_ref[...] = d3_cd.astype(o3_ref.dtype)

    d4 = layer(d3_cd, w4_ref, b4_ref, False)
    o4_ref[...] = d4.astype(o4_ref.dtype)


# ---------------------------------------------------------------------------
# One-time parameter preparation (pad + cast, done OUTSIDE the step jit).
# ---------------------------------------------------------------------------
def prepare_encoder_params(params, compute_dtype=jnp.bfloat16):
    """Pad weights/biases to lane multiples of 128 and cast weights to the
    compute dtype, once.  Returns (padded_param_tuple, dims) where dims are the
    original (static) layer widths used to slice outputs back."""
    w1, b1 = params["enc_1"]
    w2, b2 = params["enc_2"]
    w3, b3 = params["enc_3"]
    w4, b4 = params["enc_4"]
    Din, D1 = w1.shape
    D2, D3, D4 = w2.shape[1], w3.shape[1], w4.shape[1]

    Din_p = _round_up(Din, _LANE)
    D1_p = _round_up(D1, _LANE)
    D2_p = _round_up(D2, _LANE)
    D3_p = _round_up(D3, _LANE)
    D4_p = _round_up(D4, _LANE)

    padded = (
        _pad2(w1, Din_p, D1_p).astype(compute_dtype),
        _pad2(b1, 1, D1_p).astype(jnp.float32),   # biases stay f32 (post-acc add)
        _pad2(w2, D1_p, D2_p).astype(compute_dtype),
        _pad2(b2, 1, D2_p).astype(jnp.float32),
        _pad2(w3, D2_p, D3_p).astype(compute_dtype),
        _pad2(b3, 1, D3_p).astype(jnp.float32),
        _pad2(w4, D3_p, D4_p).astype(compute_dtype),
        _pad2(b4, 1, D4_p).astype(jnp.float32),
    )
    dims = (Din, D1, D2, D3, D4)
    return padded, dims


def _vmem_limit_bytes(TB, Din_p, out_dims_p, compute_dtype,
                      intermediate_dtype, out_dtype, single_buffer_weights):
    """Explicit scoped-VMEM budget: weights (x1 buffer when single-buffered)
    + double-buffered input/output tiles + f32 temporaries, with margin."""
    cb = jnp.dtype(compute_dtype).itemsize
    D1_p, D2_p, D3_p, D4_p = out_dims_p
    wbuf = 1 if single_buffer_weights else 2
    w_bytes = (Din_p * D1_p + D1_p * D2_p + D2_p * D3_p + D3_p * D4_p) * cb * wbuf
    b_bytes = (D1_p + D2_p + D3_p + D4_p) * 4 * wbuf
    x_bytes = 2 * TB * Din_p * cb
    o_itemsizes = [jnp.dtype(intermediate_dtype).itemsize] * 3 + \
                  [jnp.dtype(out_dtype).itemsize]
    o_bytes = 2 * TB * sum(d * s for d, s in zip(out_dims_p, o_itemsizes))
    tmp_bytes = 3 * TB * max(out_dims_p) * 4   # f32 accum + casts for widest layer
    est = w_bytes + b_bytes + x_bytes + o_bytes + tmp_bytes
    # margin, floored at the v6e default (32 MiB), capped at v7x physical (64 MiB)
    return int(min(64 << 20, max(32 << 20, est + est // 2 + (8 << 20))))


# ---------------------------------------------------------------------------
# Forward wrapper.
# ---------------------------------------------------------------------------
def encoder_forward(padded_params, x, *, dims, batch_tile=256,
                    min_batch_tiles=2, intermediate_dtype=jnp.float32,
                    out_dtype=jnp.float32, single_buffer_weights=True):
    """Reproduces Encoder.forward: returns (enc_d1, enc_d2, enc_d3, enc_d4).

    padded_params / dims come from prepare_encoder_params (padding + dtype cast
    are done once, outside the per-step jit).  x: [B, input_dim] f32.
    """
    (w1p, b1p, w2p, b2p, w3p, b3p, w4p, b4p) = padded_params
    compute_dtype = w1p.dtype
    Din, D1, D2, D3, D4 = dims
    Din_p, D1_p = w1p.shape
    D2_p, D3_p, D4_p = w2p.shape[1], w3p.shape[1], w4p.shape[1]
    B = x.shape[0]

    # Adaptive batch tiling: >=2 tiles keeps both v7x TensorCores busy, and
    # TB = ceil(B / n_tiles) keeps zero-row padding to < 8 rows per tile.
    n_tiles = pl.cdiv(B, batch_tile)
    if n_tiles < min_batch_tiles and B > _SUBLANE:
        n_tiles = min_batch_tiles
    n_tiles = max(n_tiles, 1)
    TB = _round_up(pl.cdiv(B, n_tiles), _SUBLANE)
    B_p = TB * n_tiles

    x_p = _pad2(x, B_p, Din_p).astype(compute_dtype)

    def act_spec(d):
        return pl.BlockSpec((TB, d), lambda i: (i, 0))

    def const_spec(shape):
        # Constant block index -> DMA'd once, resident across batch tiles.
        # Buffered(1): no double-buffering for blocks that never change.
        if single_buffer_weights:
            return pl.BlockSpec(shape, lambda i: (0, 0),
                                pipeline_mode=pl.Buffered(1))
        return pl.BlockSpec(shape, lambda i: (0, 0))

    kernel = functools.partial(_encoder_fused_kernel,
                               compute_dtype=compute_dtype)

    vmem_limit = _vmem_limit_bytes(
        TB, Din_p, (D1_p, D2_p, D3_p, D4_p), compute_dtype,
        intermediate_dtype, out_dtype, single_buffer_weights)

    d1p, d2p, d3p, d4p = pl.pallas_call(
        kernel,
        grid=(n_tiles,),
        in_specs=[
            act_spec(Din_p),
            const_spec((Din_p, D1_p)), const_spec((1, D1_p)),
            const_spec((D1_p, D2_p)), const_spec((1, D2_p)),
            const_spec((D2_p, D3_p)), const_spec((1, D3_p)),
            const_spec((D3_p, D4_p)), const_spec((1, D4_p)),
        ],
        out_specs=[act_spec(D1_p), act_spec(D2_p),
                   act_spec(D3_p), act_spec(D4_p)],
        out_shape=[
            jax.ShapeDtypeStruct((B_p, D1_p), intermediate_dtype),
            jax.ShapeDtypeStruct((B_p, D2_p), intermediate_dtype),
            jax.ShapeDtypeStruct((B_p, D3_p), intermediate_dtype),
            jax.ShapeDtypeStruct((B_p, D4_p), out_dtype),
        ],
        compiler_params=pltpu.CompilerParams(
            dimension_semantics=("parallel",),
            vmem_limit_bytes=vmem_limit),
    )(x_p, w1p, b1p, w2p, b2p, w3p, b3p, w4p, b4p)

    # Slice padded lanes / batch rows back off.
    return (d1p[:B, :D1], d2p[:B, :D2], d3p[:B, :D3], d4p[:B, :D4])


# ---------------------------------------------------------------------------
# Init + pure-JAX reference.
# ---------------------------------------------------------------------------
def init_linear_params(key, in_dim, out_dim):
    """Deterministic init mimicking nn.Linear default (uniform +/- 1/sqrt(fan_in))."""
    kw, kb = jax.random.split(key)
    bound = 1.0 / jnp.sqrt(jnp.float32(in_dim))
    w = jax.random.uniform(kw, (in_dim, out_dim), jnp.float32, -bound, bound)
    b = jax.random.uniform(kb, (1, out_dim), jnp.float32, -bound, bound)
    return w, b


def init_encoder_params(key, input_dim, feature_dim):
    k1, k2, k3, k4 = jax.random.split(key, 4)
    return {
        "enc_1": init_linear_params(k1, input_dim, 500),
        "enc_2": init_linear_params(k2, 500, 500),
        "enc_3": init_linear_params(k3, 500, 2000),
        "enc_4": init_linear_params(k4, 2000, feature_dim),
    }


def encoder_forward_ref(params, x):
    """Plain-JAX reference for correctness checking."""
    w1, b1 = params["enc_1"]
    w2, b2 = params["enc_2"]
    w3, b3 = params["enc_3"]
    w4, b4 = params["enc_4"]
    d1 = jnp.maximum(x @ w1 + b1, 0.0)
    d2 = jnp.maximum(d1 @ w2 + b2, 0.0)
    d3 = jnp.maximum(d2 @ w3 + b3, 0.0)
    d4 = d3 @ w4 + b4
    return d1, d2, d3, d4


if __name__ == "__main__":
    key = jax.random.PRNGKey(0)
    kp, kx = jax.random.split(key)

    batch = 8
    input_dim = 32
    feature_dim = 16

    params = init_encoder_params(kp, input_dim, feature_dim)
    x = jax.random.normal(kx, (batch, input_dim), jnp.float32)

    refs = jax.block_until_ready(encoder_forward_ref(params, x))

    # f32 compute path: tight tolerance vs reference.
    padded_f32, dims = prepare_encoder_params(params, compute_dtype=jnp.float32)
    fwd_f32 = jax.jit(functools.partial(encoder_forward, dims=dims))
    outs_f32 = jax.block_until_ready(fwd_f32(padded_f32, x))
    for o, r in zip(outs_f32, refs):
        assert o.shape == r.shape and o.dtype == r.dtype
        assert jnp.allclose(o, r, atol=1e-4, rtol=1e-4)

    # Default bf16 compute path (MXU-native, half the DMA bytes):
    # norm-relative error check (robust for K up to 2048).
    padded_bf16, dims = prepare_encoder_params(params)  # bf16 by default
    fwd_bf16 = jax.jit(functools.partial(encoder_forward, dims=dims))
    outs_bf16 = jax.block_until_ready(fwd_bf16(padded_bf16, x))
    for o, r in zip(outs_bf16, refs):
        assert o.shape == r.shape
        rel = jnp.linalg.norm(o - r) / (jnp.linalg.norm(r) + 1e-6)
        assert rel < 3e-2, float(rel)

    print("KERNEL_OK")
</pallas_src>

<mosaic_0001>
module attributes {stable_mosaic.version = 11 : i64} {
  func.func @_encoder_fused_kernel(%arg0: i32, %arg1: memref<8x128xf32, #tpu.memory_space<vmem>>, %arg2: memref<128x512xf32, #tpu.memory_space<vmem>>, %arg3: memref<1x512xf32, #tpu.memory_space<vmem>>, %arg4: memref<512x512xf32, #tpu.memory_space<vmem>>, %arg5: memref<1x512xf32, #tpu.memory_space<vmem>>, %arg6: memref<512x2048xf32, #tpu.memory_space<vmem>>, %arg7: memref<1x2048xf32, #tpu.memory_space<vmem>>, %arg8: memref<2048x128xf32, #tpu.memory_space<vmem>>, %arg9: memref<1x128xf32, #tpu.memory_space<vmem>>, %arg10: memref<8x512xf32, #tpu.memory_space<vmem>>, %arg11: memref<8x512xf32, #tpu.memory_space<vmem>>, %arg12: memref<8x2048xf32, #tpu.memory_space<vmem>>, %arg13: memref<8x128xf32, #tpu.memory_space<vmem>>) attributes {dimension_semantics = [#tpu.dimension_semantics<parallel>], iteration_bounds = array<i64: 1>, scalar_prefetch = 0 : i64, scratch_operands = 0 : i64, tpu.core_type = #tpu.core_type<tc>, window_params = [{transform_indices = @transform_0, window_bounds = array<i64: 8, 128>}, {pipeline_mode = #tpu.pipeline_mode<synchronous>, transform_indices = @transform_1, window_bounds = array<i64: 128, 512>}, {pipeline_mode = #tpu.pipeline_mode<synchronous>, transform_indices = @transform_2, window_bounds = array<i64: 1, 512>}, {pipeline_mode = #tpu.pipeline_mode<synchronous>, transform_indices = @transform_3, window_bounds = array<i64: 512, 512>}, {pipeline_mode = #tpu.pipeline_mode<synchronous>, transform_indices = @transform_4, window_bounds = array<i64: 1, 512>}, {pipeline_mode = #tpu.pipeline_mode<synchronous>, transform_indices = @transform_5, window_bounds = array<i64: 512, 2048>}, {pipeline_mode = #tpu.pipeline_mode<synchronous>, transform_indices = @transform_6, window_bounds = array<i64: 1, 2048>}, {pipeline_mode = #tpu.pipeline_mode<synchronous>, transform_indices = @transform_7, window_bounds = array<i64: 2048, 128>}, {pipeline_mode = #tpu.pipeline_mode<synchronous>, transform_indices = @transform_8, window_bounds = array<i64: 1, 128>}, {transform_indices = @transform_9, window_bounds = array<i64: 8, 512>}, {transform_indices = @transform_10, window_bounds = array<i64: 8, 512>}, {transform_indices = @transform_11, window_bounds = array<i64: 8, 2048>}, {transform_indices = @transform_12, window_bounds = array<i64: 8, 128>}]} {
    %c0 = arith.constant 0 : index
    %c0_0 = arith.constant 0 : index
    %0 = vector.load %arg1[%c0, %c0_0] : memref<8x128xf32, #tpu.memory_space<vmem>>, vector<8x128xf32>
    %c0_1 = arith.constant 0 : index
    %c0_2 = arith.constant 0 : index
    %1 = vector.load %arg2[%c0_1, %c0_2] : memref<128x512xf32, #tpu.memory_space<vmem>>, vector<128x512xf32>
    %cst = arith.constant dense<0.000000e+00> : vector<8x512xf32>
    %2 = tpu.matmul %0, %1, %cst {dimension_numbers = #tpu.dot_dimension_numbers<[1], [0], [0], [1], [0, 0, 1, 1], [], []>} : vector<8x128xf32>, vector<128x512xf32>, vector<8x512xf32> -> vector<8x512xf32>
    %c0_3 = arith.constant 0 : index
    %c0_4 = arith.constant 0 : index
    %3 = vector.load %arg3[%c0_3, %c0_4] : memref<1x512xf32, #tpu.memory_space<vmem>>, vector<1x512xf32>
    %4 = vector.broadcast %3 : vector<1x512xf32> to vector<8x512xf32>
    %5 = arith.addf %2, %4 : vector<8x512xf32>
    %cst_5 = arith.constant 0.000000e+00 : f32
    %6 = vector.broadcast %cst_5 : f32 to vector<8x512xf32>
    %7 = arith.maximumf %5, %6 : vector<8x512xf32>
    %c0_6 = arith.constant 0 : index
    %c0_7 = arith.constant 0 : index
    %8 = vector.load %arg10[%c0_6, %c0_7] : memref<8x512xf32, #tpu.memory_space<vmem>>, vector<8x512xf32>
    tpu.vector_store %arg10[%c0_6, %c0_7], %7 {strides = array<i32>} : memref<8x512xf32, #tpu.memory_space<vmem>>, vector<8x512xf32>,
    %c0_8 = arith.constant 0 : index
    %c0_9 = arith.constant 0 : index
    %9 = vector.load %arg4[%c0_8, %c0_9] : memref<512x512xf32, #tpu.memory_space<vmem>>, vector<512x512xf32>
    %cst_10 = arith.constant dense<0.000000e+00> : vector<8x512xf32>
    %10 = tpu.matmul %7, %9, %cst_10 {dimension_numbers = #tpu.dot_dimension_numbers<[1], [0], [0], [1], [0, 0, 1, 1], [], []>} : vector<8x512xf32>, vector<512x512xf32>, vector<8x512xf32> -> vector<8x512xf32>
    %c0_11 = arith.constant 0 : index
    %c0_12 = arith.constant 0 : index
    %11 = vector.load %arg5[%c0_11, %c0_12] : memref<1x512xf32, #tpu.memory_space<vmem>>, vector<1x512xf32>
    %12 = vector.broadcast %11 : vector<1x512xf32> to vector<8x512xf32>
    %13 = arith.addf %10, %12 : vector<8x512xf32>
    %cst_13 = arith.constant 0.000000e+00 : f32
    %14 = vector.broadcast %cst_13 : f32 to vector<8x512xf32>
    %15 = arith.maximumf %13, %14 : vector<8x512xf32>
    %c0_14 = arith.constant 0 : index
    %c0_15 = arith.constant 0 : index
    %16 = vector.load %arg11[%c0_14, %c0_15] : memref<8x512xf32, #tpu.memory_space<vmem>>, vector<8x512xf32>
    tpu.vector_store %arg11[%c0_14, %c0_15], %15 {strides = array<i32>} : memref<8x512xf32, #tpu.memory_space<vmem>>, vector<8x512xf32>,
    %c0_16 = arith.constant 0 : index
    %c0_17 = arith.constant 0 : index
    %17 = vector.load %arg6[%c0_16, %c0_17] : memref<512x2048xf32, #tpu.memory_space<vmem>>, vector<512x2048xf32>
    %cst_18 = arith.constant dense<0.000000e+00> : vector<8x2048xf32>
    %18 = tpu.matmul %15, %17, %cst_18 {dimension_numbers = #tpu.dot_dimension_numbers<[1], [0], [0], [1], [0, 0, 1, 1], [], []>} : vector<8x512xf32>, vector<512x2048xf32>, vector<8x2048xf32> -> vector<8x2048xf32>
    %c0_19 = arith.constant 0 : index
    %c0_20 = arith.constant 0 : index
    %19 = vector.load %arg7[%c0_19, %c0_20] : memref<1x2048xf32, #tpu.memory_space<vmem>>, vector<1x2048xf32>
    %20 = vector.broadcast %19 : vector<1x2048xf32> to vector<8x2048xf32>
    %21 = arith.addf %18, %20 : vector<8x2048xf32>
    %cst_21 = arith.constant 0.000000e+00 : f32
    %22 = vector.broadcast %cst_21 : f32 to vector<8x2048xf32>
    %23 = arith.maximumf %21, %22 : vector<8x2048xf32>
    %c0_22 = arith.constant 0 : index
    %c0_23 = arith.constant 0 : index
    %24 = vector.load %arg12[%c0_22, %c0_23] : memref<8x2048xf32, #tpu.memory_space<vmem>>, vector<8x2048xf32>
    tpu.vector_store %arg12[%c0_22, %c0_23], %23 {strides = array<i32>} : memref<8x2048xf32, #tpu.memory_space<vmem>>, vector<8x2048xf32>,
    %c0_24 = arith.constant 0 : index
    %c0_25 = arith.constant 0 : index
    %25 = vector.load %arg8[%c0_24, %c0_25] : memref<2048x128xf32, #tpu.memory_space<vmem>>, vector<2048x128xf32>
    %cst_26 = arith.constant dense<0.000000e+00> : vector<8x128xf32>
    %26 = tpu.matmul %23, %25, %cst_26 {dimension_numbers = #tpu.dot_dimension_numbers<[1], [0], [0], [1], [0, 0, 1, 1], [], []>} : vector<8x2048xf32>, vector<2048x128xf32>, vector<8x128xf32> -> vector<8x128xf32>
    %c0_27 = arith.constant 0 : index
    %c0_28 = arith.constant 0 : index
    %27 = vector.load %arg9[%c0_27, %c0_28] : memref<1x128xf32, #tpu.memory_space<vmem>>, vector<1x128xf32>
    %28 = vector.broadcast %27 : vector<1x128xf32> to vector<8x128xf32>
    %29 = arith.addf %26, %28 : vector<8x128xf32>
    %c0_29 = arith.constant 0 : index
    %c0_30 = arith.constant 0 : index
    %30 = vector.load %arg13[%c0_29, %c0_30] : memref<8x128xf32, #tpu.memory_space<vmem>>, vector<8x128xf32>
    tpu.vector_store %arg13[%c0_29, %c0_30], %29 {strides = array<i32>} : memref<8x128xf32, #tpu.memory_space<vmem>>, vector<8x128xf32>,
    return
  }
  func.func @transform_0(%arg0: i32) -> (i32, i32) {
    %c0_i32 = arith.constant 0 : i32
    %c0_i32_0 = arith.constant 0 : i32
    return %arg0, %c0_i32 : i32, i32
  }
  func.func @transform_1(%arg0: i32) -> (i32, i32) {
    %c0_i32 = arith.constant 0 : i32
    %c0_i32_0 = arith.constant 0 : i32
    %c0_i32_1 = arith.constant 0 : i32
    return %c0_i32, %c0_i32_0 : i32, i32
  }
  func.func @transform_2(%arg0: i32) -> (i32, i32) {
    %c0_i32 = arith.constant 0 : i32
    %c0_i32_0 = arith.constant 0 : i32
    %c0_i32_1 = arith.constant 0 : i32
    return %c0_i32, %c0_i32_0 : i32, i32
  }
  func.func @transform_3(%arg0: i32) -> (i32, i32) {
    %c0_i32 = arith.constant 0 : i32
    %c0_i32_0 = arith.constant 0 : i32
    %c0_i32_1 = arith.constant 0 : i32
    return %c0_i32, %c0_i32_0 : i32, i32
  }
  func.func @transform_4(%arg0: i32) -> (i32, i32) {
    %c0_i32 = arith.constant 0 : i32
    %c0_i32_0 = arith.constant 0 : i32
    %c0_i32_1 = arith.constant 0 : i32
    return %c0_i32, %c0_i32_0 : i32, i32
  }
  func.func @transform_5(%arg0: i32) -> (i32, i32) {
    %c0_i32 = arith.constant 0 : i32
    %c0_i32_0 = arith.constant 0 : i32
    %c0_i32_1 = arith.constant 0 : i32
    return %c0_i32, %c0_i32_0 : i32, i32
  }
  func.func @transform_6(%arg0: i32) -> (i32, i32) {
    %c0_i32 = arith.constant 0 : i32
    %c0_i32_0 = arith.constant 0 : i32
    %c0_i32_1 = arith.constant 0 : i32
    return %c0_i32, %c0_i32_0 : i32, i32
  }
  func.func @transform_7(%arg0: i32) -> (i32, i32) {
    %c0_i32 = arith.constant 0 : i32
    %c0_i32_0 = arith.constant 0 : i32
    %c0_i32_1 = arith.constant 0 : i32
    return %c0_i32, %c0_i32_0 : i32, i32
  }
  func.func @transform_8(%arg0: i32) -> (i32, i32) {
    %c0_i32 = arith.constant 0 : i32
    %c0_i32_0 = arith.constant 0 : i32
    %c0_i32_1 = arith.constant 0 : i32
    return %c0_i32, %c0_i32_0 : i32, i32
  }
  func.func @transform_9(%arg0: i32) -> (i32, i32) {
    %c0_i32 = arith.constant 0 : i32
    %c0_i32_0 = arith.constant 0 : i32
    return %arg0, %c0_i32 : i32, i32
  }
  func.func @transform_10(%arg0: i32) -> (i32, i32) {
    %c0_i32 = arith.constant 0 : i32
    %c0_i32_0 = arith.constant 0 : i32
    return %arg0, %c0_i32 : i32, i32
  }
  func.func @transform_11(%arg0: i32) -> (i32, i32) {
    %c0_i32 = arith.constant 0 : i32
    %c0_i32_0 = arith.constant 0 : i32
    return %arg0, %c0_i32 : i32, i32
  }
  func.func @transform_12(%arg0: i32) -> (i32, i32) {
    %c0_i32 = arith.constant 0 : i32
    %c0_i32_0 = arith.constant 0 : i32
    return %arg0, %c0_i32 : i32, i32
  }
}

</mosaic_0001>

<bundles_post_ra>
// kernel: encoder_forward.1
= control target key start
LH: loop header
LB: loop body
LE: loop exit
PB: predicated region body
PF: predicated region fallthrough
CT: control target
= control target key end

     0   :  { %18 = vsyncpa [#allocation3], 0  ;;  %s6707_s0 = inlined_call_operand.vmem [shape: f32[8,128], index: 0, kind: input, shape index: {}]   ;;  %s6708_s1 = inlined_call_operand.hbm [shape: f32[128,512], index: 1, kind: input, shape index: {}]   ;;  %s6709_s2 = inlined_call_operand.hbm [shape: f32[1,512], index: 2, kind: input, shape index: {}]   ;;  %s6710_s3 = inlined_call_operand.hbm [shape: f32[512,512], index: 3, kind: input, shape index: {}]   ;;  %s6711_s4 = inlined_call_operand.hbm [shape: f32[1,512], index: 4, kind: input, shape index: {}]   ;;  %s6712_s5 = inlined_call_operand.hbm [shape: f32[512,2048], index: 5, kind: input, shape index: {}]   ;;  %s6713_s6 = inlined_call_operand.hbm [shape: f32[1,2048], index: 6, kind: input, shape index: {}]   ;;  %s6714_s7 = inlined_call_operand.hbm [shape: f32[2048,128], index: 7, kind: input, shape index: {}]   ;;  %s6715_s8 = inlined_call_operand.hbm [shape: f32[1,128], index: 8, kind: input, shape index: {}]   ;;  %s6716_s9 = inlined_call_operand.hbm [shape: f32[8,512], index: 9, kind: output, shape index: {0}]   ;;  %s6717_s10 = inlined_call_operand.hbm [shape: f32[8,512], index: 10, kind: output, shape index: {1}]   ;;  %s6718_s11 = inlined_call_operand.hbm [shape: f32[8,2048], index: 11, kind: output, shape index: {2}]   ;;  %s6719_s12 = inlined_call_operand.hbm [shape: f32[8,128], index: 12, kind: output, shape index: {3}]  }
   0x1   :  { %19 = vsyncpa [#allocation6], 0 }
   0x2   :  { %20 = vsyncpa [#allocation9], 0 }
   0x3   :  { %21 = vsyncpa [#allocation12], 0 }
   0x4   :  { %22 = vsyncpa [#allocation15], 0 }
   0x5   :  { %23 = vsyncpa [#allocation4], 0 }
   0x6   :  { %24 = vsyncpa [#allocation18], 0 }
   0x7   :  { %25 = vsyncpa [#allocation21], 0  ;;  %s6342_s21 = smov [#allocation5]   ;;  %s6343_s23 = smov [#allocation8]  }
   0x8   :  { %s46_s22 = sshll.u32 %s6342_s21, 4  ;;  %s68_s24 = sshll.u32 %s6343_s23, 4  ;;  %s47_s22 = int_to_ptr.vmem [resolvable:$true] %s46_s22  ;;  %s69_s24 = int_to_ptr.vmem [resolvable:$true] %s68_s24 }
   0x9   :  { %s6062_s27 = scalar_lea.hbm %s6709_s2, 64 }
   0xa   :  { %p6063_p0 = scmp.ne.s32.totalorder %s6709_s2, %s6062_s27  ;;  %p6066_p1 = scmp.lt.u32.totalorder %s6062_s27, %s6709_s2 }
   0xc   :  { %p6068_p2 = pnand %p6066_p1, %p6063_p0 }
   0xe   :  { %6071 = shalt.err (!%p6068_p2)
}
   0xf   :  { %s6072_s14 = scalar_lea.vmem %s47_s22, 64  ;;  %p6077_p4 = scmp.lt.s32.totalorder %s47_s22, %s47_s22 }
  0x10   :  { %p6073_p3 = scmp.ne.s32.totalorder %s47_s22, %s6072_s14  ;;  %p6078_p5 = scmp.lt.s32.totalorder %s6072_s14, %s6072_s14 }
  0x12   :  { %p6079_p6 = por %p6078_p5, %p6077_p4 }
  0x14   :  { %p6080_p7 = pnand %p6079_p6, %p6073_p3 }
  0x16   :  { %6083 = shalt.err (!%p6080_p7)
}
  0x17   :  { %49 = dma.hbm_to_vmem [thread:$0]  %s6709_s2, 64, %s47_s22, [#allocation6]  }
  0x18   :  { %s6084_s19 = scalar_lea.hbm %s6711_s4, 64 }
  0x19   :  { %p6085_p8 = scmp.ne.s32.totalorder %s6711_s4, %s6084_s19  ;;  %p6088_p9 = scmp.lt.u32.totalorder %s6084_s19, %s6711_s4 }
  0x1b   :  { %p6090_p10 = pnand %p6088_p9, %p6085_p8 }
  0x1d   :  { %6093 = shalt.err (!%p6090_p10)
}
  0x1e   :  { %s6094_s26 = scalar_lea.vmem %s69_s24, 64  ;;  %p6099_p12 = scmp.lt.s32.totalorder %s69_s24, %s69_s24 }
  0x1f   :  { %p6095_p11 = scmp.ne.s32.totalorder %s69_s24, %s6094_s26  ;;  %p6100_p13 = scmp.lt.s32.totalorder %s6094_s26, %s6094_s26 }
  0x21   :  { %p6101_p0 = por %p6100_p13, %p6099_p12 }
  0x23   :  { %p6102_p1 = pnand %p6101_p0, %p6095_p11 }
  0x25   :  { %6105 = shalt.err (!%p6102_p1)
}
  0x26   :  { %71 = dma.hbm_to_vmem [thread:$0]  %s6711_s4, 64, %s69_s24, [#allocation9]  }
  0x27   :  { %s6344_s27 = smov [#allocation11]   ;;  %s6345_s29 = smov [#allocation2]  }
  0x28   :  { %s90_s28 = sshll.u32 %s6344_s27, 4  ;;  %s33_s30 = sshll.u32 %s6345_s29, 4  ;;  %s91_s28 = int_to_ptr.vmem [resolvable:$true] %s90_s28  ;;  %s6449_s30 = int_to_ptr.vmem [resolvable:$true] %s33_s30 }
  0x29   :  { %s6106_s15 = scalar_lea.hbm %s6713_s6, 256 }
  0x2a   :  { %p6107_p2 = scmp.ne.s32.totalorder %s6713_s6, %s6106_s15  ;;  %p6110_p3 = scmp.lt.u32.totalorder %s6106_s15, %s6713_s6 }
  0x2c   :  { %p6112_p4 = pnand %p6110_p3, %p6107_p2 }
  0x2e   :  { %6115 = shalt.err (!%p6112_p4)
}
  0x2f   :  { %s6116_s4 = scalar_lea.vmem %s91_s28, 256  ;;  %p6121_p6 = scmp.lt.s32.totalorder %s91_s28, %s91_s28 }
  0x30   :  { %p6117_p5 = scmp.ne.s32.totalorder %s91_s28, %s6116_s4  ;;  %p6122_p7 = scmp.lt.s32.totalorder %s6116_s4, %s6116_s4 }
  0x32   :  { %p6123_p8 = por %p6122_p7, %p6121_p6 }
  0x34   :  { %p6124_p9 = pnand %p6123_p8, %p6117_p5 }
  0x36   :  { %6127 = shalt.err (!%p6124_p9)
}
  0x37   :  { %93 = dma.hbm_to_vmem [thread:$0]  %s6713_s6, 256, %s91_s28, [#allocation12]  }
  0x38   :  { %s6128_s25 = scalar_lea.hbm %s6708_s1, 8192 }
  0x39   :  { %p6129_p10 = scmp.ne.s32.totalorder %s6708_s1, %s6128_s25  ;;  %p6132_p11 = scmp.lt.u32.totalorder %s6128_s25, %s6708_s1 }
  0x3b   :  { %p6134_p12 = pnand %p6132_p11, %p6129_p10 }
  0x3d   :  { %6137 = shalt.err (!%p6134_p12)
}
  0x3e   :  { %s6138_s29 = scalar_lea.vmem %s6449_s30, 8192  ;;  %p6143_p0 = scmp.lt.s32.totalorder %s6449_s30, %s6449_s30 }
  0x3f   :  { %p6139_p13 = scmp.ne.s32.totalorder %s6449_s30, %s6138_s29  ;;  %p6144_p1 = scmp.lt.s32.totalorder %s6138_s29, %s6138_s29 }
  0x41   :  { %p6145_p2 = por %p6144_p1, %p6143_p0 }
  0x43   :  { %p6146_p3 = pnand %p6145_p2, %p6139_p13 }
  0x45   :  { %6149 = shalt.err (!%p6146_p3)
}
  0x46   :  { %s6346_s6 = smov 512   ;;  %s6347_s28 = smov 32  }
  0x47   :  { %39 = dma.hbm_to_vmem [thread:$0]  %s6708_s1, 8192, %s6449_s30, [#allocation3], %s6346_s6, %s6346_s6, %s6347_s28  }
  0x48   :  { %s6348_s15 = smov [#allocation7]   ;;  %s6349_s17 = smov [#allocation10]  }
  0x49   :  { %s55_s16 = sshll.u32 %s6348_s15, 4  ;;  %s77_s18 = sshll.u32 %s6349_s17, 4  ;;  %s56_s16 = int_to_ptr.vmem [resolvable:$true] %s55_s16  ;;  %s6480_s18 = int_to_ptr.vmem [resolvable:$true] %s77_s18 }
  0x4a   :  { %s6150_s24 = scalar_lea.hbm %s6710_s3, 32768 }
  0x4b   :  { %p6151_p4 = scmp.ne.s32.totalorder %s6710_s3, %s6150_s24  ;;  %p6154_p5 = scmp.lt.u32.totalorder %s6150_s24, %s6710_s3 }
  0x4d   :  { %p6156_p6 = pnand %p6154_p5, %p6151_p4 }
  0x4f   :  { %6159 = shalt.err (!%p6156_p6)
}
  0x50   :  { %s6160_s1 = scalar_lea.vmem %s56_s16, 32768  ;;  %p6165_p8 = scmp.lt.s32.totalorder %s56_s16, %s56_s16 }
  0x51   :  { %p6161_p7 = scmp.ne.s32.totalorder %s56_s16, %s6160_s1  ;;  %p6166_p9 = scmp.lt.s32.totalorder %s6160_s1, %s6160_s1 }
  0x53   :  { %p6167_p10 = por %p6166_p9, %p6165_p8 }
  0x55   :  { %p6168_p11 = pnand %p6167_p10, %p6161_p7 }
  0x57   :  { %6171 = shalt.err (!%p6168_p11)
}
  0x58   :  { %61 = dma.hbm_to_vmem [thread:$0]  %s6710_s3, 32768, %s56_s16, [#allocation6], %s6346_s6, %s6346_s6, %s6347_s28  }
  0x59   :  { %s6172_s27 = scalar_lea.hbm %s6712_s5, 131072 }
  0x5a   :  { %p6173_p12 = scmp.ne.s32.totalorder %s6712_s5, %s6172_s27  ;;  %p6176_p13 = scmp.lt.u32.totalorder %s6172_s27, %s6712_s5 }
  0x5c   :  { %p6178_p0 = pnand %p6176_p13, %p6173_p12 }
  0x5e   :  { %6181 = shalt.err (!%p6178_p0)
}
  0x5f   :  { %s6182_s17 = scalar_lea.vmem %s6480_s18, 131072  ;;  %p6187_p2 = scmp.lt.s32.totalorder %s6480_s18, %s6480_s18 }
  0x60   :  { %p6183_p1 = scmp.ne.s32.totalorder %s6480_s18, %s6182_s17  ;;  %p6188_p3 = scmp.lt.s32.totalorder %s6182_s17, %s6182_s17 }
  0x62   :  { %p6189_p4 = por %p6188_p3, %p6187_p2 }
  0x64   :  { %p6190_p5 = pnand %p6189_p4, %p6183_p1 }
  0x66   :  { %6193 = shalt.err (!%p6190_p5)
}
  0x67   :  { %s6350_s3 = smov 2048   ;;  %s6351_s6 = smov 128  }
  0x68   :  { %83 = dma.hbm_to_vmem [thread:$0]  %s6712_s5, 131072, %s6480_s18, [#allocation9], %s6350_s3, %s6350_s3, %s6351_s6  }
  0x69   :  { %s6352_s19 = smov [#allocation13]   ;;  %s6353_s24 = smov [#allocation14]  }
  0x6a   :  { %s99_s4 = sshll.u32 %s6352_s19, 4  ;;  %s112_s20 = sshll.u32 %s6353_s24, 4  ;;  %s100_s4 = int_to_ptr.vmem [resolvable:$true] %s99_s4  ;;  %s113_s20 = int_to_ptr.vmem [resolvable:$true] %s112_s20 }
  0x6b   :  { %s6194_s25 = scalar_lea.hbm %s6714_s7, 32768 }
  0x6c   :  { %p6195_p6 = scmp.ne.s32.totalorder %s6714_s7, %s6194_s25  ;;  %p6198_p7 = scmp.lt.u32.totalorder %s6194_s25, %s6714_s7 }
  0x6e   :  { %p6200_p8 = pnand %p6198_p7, %p6195_p6 }
  0x70   :  { %6203 = shalt.err (!%p6200_p8)
}
  0x71   :  { %s6204_s5 = scalar_lea.vmem %s100_s4, 32768  ;;  %p6209_p10 = scmp.lt.s32.totalorder %s100_s4, %s100_s4 }
  0x72   :  { %p6205_p9 = scmp.ne.s32.totalorder %s100_s4, %s6204_s5  ;;  %p6210_p11 = scmp.lt.s32.totalorder %s6204_s5, %s6204_s5 }
  0x74   :  { %p6211_p12 = por %p6210_p11, %p6209_p10 }
  0x76   :  { %p6212_p13 = pnand %p6211_p12, %p6205_p9 }
  0x78   :  { %6215 = shalt.err (!%p6212_p13)
}
  0x79   :  { %s6354_s18 = smov 8   ;;  %s6216_s14 = scalar_lea.hbm %s6715_s8, 16 }
  0x7a   :  { %105 = dma.hbm_to_vmem [thread:$0]  %s6714_s7, 32768, %s100_s4, [#allocation12], %s6351_s6, %s6351_s6, %s6354_s18  }
  0x7b   :  { %p6217_p0 = scmp.ne.s32.totalorder %s6715_s8, %s6216_s14  ;;  %p6220_p1 = scmp.lt.u32.totalorder %s6216_s14, %s6715_s8 }
  0x7d   :  { %p6222_p2 = pnand %p6220_p1, %p6217_p0 }
  0x7f   :  { %6225 = shalt.err (!%p6222_p2)
}
  0x80   :  { %s6226_s16 = scalar_lea.vmem %s113_s20, 16  ;;  %s6230_s19 = scalar_lea.vmem %s113_s20, 32 }
  0x81   :  { %p6227_p3 = scmp.ne.s32.totalorder %s113_s20, %s6226_s16  ;;  %p6231_p4 = scmp.lt.s32.totalorder %s113_s20, %s113_s20 }
  0x82   :  { %p6232_p5 = scmp.lt.s32.totalorder %s6230_s19, %s6226_s16 }
  0x84   :  { %p6233_p6 = por %p6232_p5, %p6231_p4 }
  0x86   :  { %p6234_p7 = pnand %p6233_p6, %p6227_p3 }
  0x88   :  { %6237 = shalt.err (!%p6234_p7)
}
  0x89   :  { %115 = dma.hbm_to_vmem [thread:$0]  %s6715_s8, 16, %s113_s20, [#allocation15]  }
  0x8a   :  { %6326 = dma.done.wait [#allocation3], 8192  }
  0x8b   :  { %6327 = vsyncadd [#allocation3], 4294959104 }
  0x8c   :  { %6328 = dma.done.wait [#allocation6], 32832  }
  0x8d   :  { %6329 = vsyncadd [#allocation6], 4294934464 }
  0x8e   :  { %6330 = dma.done.wait [#allocation9], 131136  }
  0x8f   :  { %6331 = vsyncadd [#allocation9], 4294836160 }
  0x90   :  { %6332 = dma.done.wait [#allocation12], 33024  }
  0x91   :  { %6333 = vsyncadd [#allocation12], 4294934272 }
  0x92   :  { %6334 = dma.done.wait [#allocation15], 16  }
  0x93   :  { %6335 = vsyncadd [#allocation15], 4294967280  ;;  %v6355_v0 = vmov 0.0   ;;  %v142_v1 = vld [vmem:[#allocation2 + $0x8] sm:$0xff]  ;;  %v141_v3 = vld [vmem:[#allocation2] sm:$0xff]  ;;  %s6357_s20 = smov [#allocation16]  }
  0x94   :  { %291 = vmatprep.mubr.f32.mxu0 %v6355_v0  ;;  %362 = vmatprep.mubr.f32.mxu1 %v6355_v0  ;;  %v146_v2 = vld [vmem:[#allocation2 + $0x28] sm:$0xff]  ;;  %v145_v5 = vld [vmem:[#allocation2 + $0x20] sm:$0xff]  ;;  %v144_v28 = vld [vmem:[#allocation2 + $0x18] sm:$0xff]  ;;  %s4053_s21 = sshll.u32 %s6357_s20, 4  ;;  %s4054_s21 = int_to_ptr.vmem [resolvable:$true] %s4053_s21 }
  0x95   :  { %v4388_v4 = vpack.c.bf16 %v146_v2, %v142_v1  ;;  %v150_v6 = vld [vmem:[#allocation2 + $0x48] sm:$0xff]  ;;  %v4390_v8 = vpack.c.bf16 %v145_v5, %v141_v3  ;;  %v149_v10 = vld [vmem:[#allocation2 + $0x40] sm:$0xff]  ;;  %v148_v29 = vld [vmem:[#allocation2 + $0x38] sm:$0xff] }
  0x96   :  { %v154_v7 = vld [vmem:[#allocation2 + $0x68] sm:$0xff]  ;;  %v153_v11 = vld [vmem:[#allocation2 + $0x60] sm:$0xff]  ;;  %v143_v30 = vld [vmem:[#allocation2 + $0x10] sm:$0xff]  ;;  %v4420_v32 = vpack.c.bf16 %v148_v29, %v144_v28 }
  0x97   :  { %v4392_v9 = vpack.c.bf16 %v154_v7, %v150_v6  ;;  %v158_v12 = vld [vmem:[#allocation2 + $0x88] sm:$0xff]  ;;  %4389 = vmatprep.subr.bf16.mxu0 %v4388_v4  ;;  %v4394_v14 = vpack.c.bf16 %v153_v11, %v149_v10  ;;  %v157_v16 = vld [vmem:[#allocation2 + $0x80] sm:$0xff]  ;;  %v147_v33 = vld [vmem:[#allocation2 + $0x30] sm:$0xff] }
  0x98   :  { %v162_v13 = vld [vmem:[#allocation2 + $0xa8] sm:$0xff]  ;;  %4391 = vmatpush1.bf16.msra.mxu0 %v4390_v8  ;;  %v161_v17 = vld [vmem:[#allocation2 + $0xa0] sm:$0xff]  ;;  %v152_v34 = vld [vmem:[#allocation2 + $0x58] sm:$0xff]  ;;  %v4422_v37 = vpack.c.bf16 %v147_v33, %v143_v30  ;;  %4421 = vmatprep.subr.bf16.mxu1 %v4420_v32 }
  0x99   :  { %4393 = vmatprep.subr.bf16.mxu0 %v4392_v9  ;;  %v4396_v15 = vpack.c.bf16 %v162_v13, %v158_v12  ;;  %v166_v18 = vld [vmem:[#allocation2 + $0xc8] sm:$0xff]  ;;  %v4398_v20 = vpack.c.bf16 %v161_v17, %v157_v16  ;;  %v165_v22 = vld [vmem:[#allocation2 + $0xc0] sm:$0xff]  ;;  %v156_v35 = vld [vmem:[#allocation2 + $0x78] sm:$0xff] }
  0x9a   :  { %v170_v19 = vld [vmem:[#allocation2 + $0xe8] sm:$0xff]  ;;  %v169_v23 = vld [vmem:[#allocation2 + $0xe0] sm:$0xff]  ;;  %v4424_v38 = vpack.c.bf16 %v156_v35, %v152_v34  ;;  %v151_v39 = vld [vmem:[#allocation2 + $0x50] sm:$0xff]  ;;  %4423 = vmatpush1.bf16.msra.mxu1 %v4422_v37 }
  0x9b   :  { %v4400_v21 = vpack.c.bf16 %v170_v19, %v166_v18  ;;  %v174_v24 = vld [vmem:[#allocation2 + $0x108] sm:$0xff]  ;;  %v173_v26 = vld [vmem:[#allocation2 + $0x100] sm:$0xff]  ;;  %v4402_v31 = vpack.c.bf16 %v169_v23, %v165_v22  ;;  %v155_v40 = vld [vmem:[#allocation2 + $0x70] sm:$0xff] }
  0x9c   :  { %4395 = vmatpush1.bf16.msra.mxu0 %v4394_v14  ;;  %v178_v25 = vld [vmem:[#allocation2 + $0x128] sm:$0xff]  ;;  %v177_v27 = vld [vmem:[#allocation2 + $0x120] sm:$0xff]  ;;  %v160_v41 = vld [vmem:[#allocation2 + $0x98] sm:$0xff]  ;;  %v4426_v45 = vpack.c.bf16 %v155_v40, %v151_v39  ;;  %4425 = vmatprep.subr.bf16.mxu1 %v4424_v38 }
  0x9d   :  { %4397 = vmatprep.subr.bf16.mxu0 %v4396_v15  ;;  %v4404_v36 = vpack.c.bf16 %v178_v25, %v174_v24  ;;  %v182_v42 = vld [vmem:[#allocation2 + $0x148] sm:$0xff]  ;;  %v164_v44 = vld [vmem:[#allocation2 + $0xb8] sm:$0xff]  ;;  %v4406_v46 = vpack.c.bf16 %v177_v27, %v173_v26  ;;  %v181_v47 = vld [vmem:[#allocation2 + $0x140] sm:$0xff] }
  0x9e   :  { %v186_v43 = vld [vmem:[#allocation2 + $0x168] sm:$0xff]  ;;  %v4428_v48 = vpack.c.bf16 %v164_v44, %v160_v41  ;;  %v159_v49 = vld [vmem:[#allocation2 + $0x90] sm:$0xff]  ;;  %v185_v52 = vld [vmem:[#allocation2 + $0x160] sm:$0xff]  ;;  %4427 = vmatpush1.bf16.msra.mxu1 %v4426_v45 }
  0x9f   :  { %v163_v50 = vld [vmem:[#allocation2 + $0xb0] sm:$0xff]  ;;  %v4408_v51 = vpack.c.bf16 %v186_v43, %v182_v42  ;;  %v168_v53 = vld [vmem:[#allocation2 + $0xd8] sm:$0xff]  ;;  %v190_v55 = vld [vmem:[#allocation2 + $0x188] sm:$0xff]  ;;  %v4410_v58 = vpack.c.bf16 %v185_v52, %v181_v47 }
  0xa0   :  { %4399 = vmatpush1.bf16.msra.mxu0 %v4398_v20  ;;  %v172_v54 = vld [vmem:[#allocation2 + $0xf8] sm:$0xff]  ;;  %v194_v56 = vld [vmem:[#allocation2 + $0x1a8] sm:$0xff]  ;;  %v4430_v57 = vpack.c.bf16 %v163_v50, %v159_v49  ;;  %v189_v59 = vld [vmem:[#allocation2 + $0x180] sm:$0xff]  ;;  %4429 = vmatprep.subr.bf16.mxu1 %v4428_v48 }
  0xa1   :  { %4401 = vmatprep.subr.bf16.mxu0 %v4400_v21  ;;  %v4432_v60 = vpack.c.bf16 %v172_v54, %v168_v53  ;;  %v167_v61 = vld [vmem:[#allocation2 + $0xd0] sm:$0xff]  ;;  %v4412_v63 = vpack.c.bf16 %v194_v56, %v190_v55  ;;  %v193_v0 = vld [vmem:[#allocation2 + $0x1a0] sm:$0xff]  ;;  %v176_v1 = vld [vmem:[#allocation2 + $0x118] sm:$0xff] }
  0xa2   :  { %v171_v62 = vld [vmem:[#allocation2 + $0xf0] sm:$0xff]  ;;  %v180_v2 = vld [vmem:[#allocation2 + $0x138] sm:$0xff]  ;;  %v198_v3 = vld [vmem:[#allocation2 + $0x1c8] sm:$0xff]  ;;  %4431 = vmatpush1.bf16.msra.mxu1 %v4430_v57  ;;  %v4414_v6 = vpack.c.bf16 %v193_v0, %v189_v59 }
  0xa3   :  { %v202_v4 = vld [vmem:[#allocation2 + $0x1e8] sm:$0xff]  ;;  %v4434_v5 = vpack.c.bf16 %v171_v62, %v167_v61  ;;  %v197_v7 = vld [vmem:[#allocation2 + $0x1c0] sm:$0xff]  ;;  %4433 = vmatprep.subr.bf16.mxu1 %v4432_v60  ;;  %v4436_v8 = vpack.c.bf16 %v180_v2, %v176_v1  ;;  %v175_v9 = vld [vmem:[#allocation2 + $0x110] sm:$0xff] }
  0xa4   :  { %4403 = vmatpush1.bf16.msra.mxu0 %v4402_v31  ;;  %v179_v10 = vld [vmem:[#allocation2 + $0x130] sm:$0xff]  ;;  %v4416_v11 = vpack.c.bf16 %v202_v4, %v198_v3  ;;  %v201_v12 = vld [vmem:[#allocation2 + $0x1e0] sm:$0xff]  ;;  %v184_v13 = vld [vmem:[#allocation2 + $0x158] sm:$0xff] }
  0xa5   :  { %4405 = vmatprep.subr.bf16.mxu0 %v4404_v36  ;;  %v188_v14 = vld [vmem:[#allocation2 + $0x178] sm:$0xff]  ;;  %v378_v15 = vld [vmem:[#allocation7 + $0x8] sm:$0xff]  ;;  %v4438_v17 = vpack.c.bf16 %v179_v10, %v175_v9  ;;  %v4418_v18 = vpack.c.bf16 %v201_v12, %v197_v7  ;;  %v377_v25 = vld [vmem:[#allocation7] sm:$0xff] }
  0xa6   :  { %v382_v16 = vld [vmem:[#allocation7 + $0x28] sm:$0xff]  ;;  %4435 = vmatpush1.bf16.msra.mxu1 %v4434_v5  ;;  %v4440_v19 = vpack.c.bf16 %v188_v14, %v184_v13  ;;  %v192_v22 = vld [vmem:[#allocation2 + $0x198] sm:$0xff]  ;;  %v381_v26 = vld [vmem:[#allocation7 + $0x20] sm:$0xff] }
  0xa7   :  { %4437 = vmatprep.subr.bf16.mxu1 %v4436_v8  ;;  %v183_v20 = vld [vmem:[#allocation2 + $0x150] sm:$0xff]  ;;  %v196_v23 = vld [vmem:[#allocation2 + $0x1b8] sm:$0xff]  ;;  %v4452_v24 = vpack.c.bf16 %v382_v16, %v378_v15  ;;  %v6538_v29 = vld [vmem:[%s6707_s0] sm:$0xff]  ;;  %v4454_v35 = vpack.c.bf16 %v381_v26, %v377_v25  ;;  %s6356_s0 = smov [#allocation17]  }
  0xa8   :  { %4407 = vmatpush1.bf16.msra.mxu0 %v4406_v46  ;;  %v187_v21 = vld [vmem:[#allocation2 + $0x170] sm:$0xff]  ;;  %v4444_v31 = vpack.c.bf16 %v196_v23, %v192_v22  ;;  %v200_v34 = vld [vmem:[#allocation2 + $0x1d8] sm:$0xff]  ;;  %v385_v38 = vld [vmem:[#allocation7 + $0x40] sm:$0xff]  ;;  %s4063_s24 = sshll.u32 %s6356_s0, 4  ;;  %s4064_s24 = int_to_ptr.vmem [resolvable:$true] %s4063_s24 }
  0xa9   :  { %4409 = vmatprep.subr.bf16.mxu0 %v4408_v51  ;;  %v386_v27 = vld [vmem:[#allocation7 + $0x48] sm:$0xff]  ;;  %v4442_v30 = vpack.c.bf16 %v187_v21, %v183_v20  ;;  %v204_v36 = vld [vmem:[#allocation2 + $0x1f8] sm:$0xff]  ;;  %v389_v39 = vld [vmem:[#allocation7 + $0x60] sm:$0xff]  ;;  %s6238_s23 = scalar_lea.vmem %s4064_s24, 512  ;;  %p6243_p9 = scmp.lt.s32.totalorder %s4064_s24, %s4064_s24 }
  0xaa   :  { %v390_v28 = vld [vmem:[#allocation7 + $0x68] sm:$0xff]  ;;  %4439 = vmatpush1.bf16.msra.mxu1 %v4438_v17  ;;  %v4448_v43 = vpack.c.bf16 %v204_v36, %v200_v34  ;;  %v380_v46 = vld [vmem:[#allocation7 + $0x18] sm:$0xff]  ;;  %v4458_v47 = vpack.c.bf16 %v389_v39, %v385_v38  ;;  %v393_v50 = vld [vmem:[#allocation7 + $0x80] sm:$0xff]  ;;  %p6239_p8 = scmp.ne.s32.totalorder %s4064_s24, %s6238_s23  ;;  %p6244_p10 = scmp.lt.s32.totalorder %s6238_s23, %s6238_s23 }
  0xab   :  { %4441 = vmatprep.subr.bf16.mxu1 %v4440_v19  ;;  %v191_v32 = vld [vmem:[#allocation2 + $0x190] sm:$0xff]  ;;  %v4456_v37 = vpack.c.bf16 %v390_v28, %v386_v27  ;;  %v384_v48 = vld [vmem:[#allocation7 + $0x38] sm:$0xff]  ;;  %v397_v51 = vld [vmem:[#allocation7 + $0xa0] sm:$0xff] }
  0xac   :  { %4411 = vmatpush1.bf16.msra.mxu0 %v4410_v58  ;;  %v195_v33 = vld [vmem:[#allocation2 + $0x1b0] sm:$0xff]  ;;  %v4580_v55 = vpack.c.bf16 %v384_v48, %v380_v46  ;;  %v388_v58 = vld [vmem:[#allocation7 + $0x58] sm:$0xff]  ;;  %v4462_v59 = vpack.c.bf16 %v397_v51, %v393_v50  ;;  %v401_v62 = vld [vmem:[#allocation7 + $0xc0] sm:$0xff]  ;;  %p6245_p11 = por %p6244_p10, %p6243_p9 }
  0xad   :  { %4413 = vmatprep.subr.bf16.mxu0 %v4412_v63  ;;  %v394_v40 = vld [vmem:[#allocation7 + $0x88] sm:$0xff]  ;;  %v4446_v42 = vpack.c.bf16 %v195_v33, %v191_v32  ;;  %v379_v56 = vld [vmem:[#allocation7 + $0x10] sm:$0xff]  ;;  %v392_v60 = vld [vmem:[#allocation7 + $0x78] sm:$0xff] }
  0xae   :  { %v398_v41 = vld [vmem:[#allocation7 + $0xa8] sm:$0xff]  ;;  %4443 = vmatpush1.bf16.msra.mxu1 %v4442_v30  ;;  %v383_v57 = vld [vmem:[#allocation7 + $0x30] sm:$0xff]  ;;  %v405_v63 = vld [vmem:[#allocation7 + $0xe0] sm:$0xff]  ;;  %v4584_v3 = vpack.c.bf16 %v392_v60, %v388_v58  ;;  %p6246_p12 = pnand %p6245_p11, %p6239_p8 }
  0xaf   :  { %4445 = vmatprep.subr.bf16.mxu1 %v4444_v31  ;;  %v199_v44 = vld [vmem:[#allocation2 + $0x1d0] sm:$0xff]  ;;  %v4460_v49 = vpack.c.bf16 %v398_v41, %v394_v40  ;;  %v4582_v2 = vpack.c.bf16 %v383_v57, %v379_v56  ;;  %v4466_v7 = vpack.c.bf16 %v405_v63, %v401_v62  ;;  %v400_v8 = vld [vmem:[#allocation7 + $0xb8] sm:$0xff]  ;;  %v409_v10 = vld [vmem:[#allocation7 + $0x100] sm:$0xff] }
  0xb0   :  { %4415 = vmatpush1.bf16.msra.mxu0 %v4414_v6  ;;  %v203_v45 = vld [vmem:[#allocation2 + $0x1f0] sm:$0xff]  ;;  %v396_v6 = vld [vmem:[#allocation7 + $0x98] sm:$0xff]  ;;  %v417_v22 = vld [vmem:[#allocation7 + $0x140] sm:$0xff] }
  0xb1   :  { %4417 = vmatprep.subr.bf16.mxu0 %v4416_v11  ;;  %v402_v52 = vld [vmem:[#allocation7 + $0xc8] sm:$0xff]  ;;  %v4450_v54 = vpack.c.bf16 %v203_v45, %v199_v44  ;;  %v387_v4 = vld [vmem:[#allocation7 + $0x50] sm:$0xff]  ;;  %v413_v11 = vld [vmem:[#allocation7 + $0x120] sm:$0xff]  ;;  %v4588_v15 = vpack.c.bf16 %v400_v8, %v396_v6 }
  0xb2   :  { %v406_v53 = vld [vmem:[#allocation7 + $0xe8] sm:$0xff]  ;;  %4447 = vmatpush1.bf16.msra.mxu1 %v4446_v42  ;;  %v391_v5 = vld [vmem:[#allocation7 + $0x70] sm:$0xff]  ;;  %v4470_v19 = vpack.c.bf16 %v413_v11, %v409_v10  ;;  %v408_v20 = vld [vmem:[#allocation7 + $0xf8] sm:$0xff] }
  0xb3   :  { %4449 = vmatprep.subr.bf16.mxu1 %v4448_v43  ;;  %v4464_v61 = vpack.c.bf16 %v406_v53, %v402_v52  ;;  %v410_v0 = vld [vmem:[#allocation7 + $0x108] sm:$0xff]  ;;  %v4586_v14 = vpack.c.bf16 %v391_v5, %v387_v4  ;;  %v395_v16 = vld [vmem:[#allocation7 + $0x90] sm:$0xff]  ;;  %v421_v23 = vld [vmem:[#allocation7 + $0x160] sm:$0xff] }
  0xb4   :  { %4419 = vmatpush1.bf16.msra.mxu0 %v4418_v18  ;;  %v414_v1 = vld [vmem:[#allocation7 + $0x128] sm:$0xff]  ;;  %v399_v17 = vld [vmem:[#allocation7 + $0xb0] sm:$0xff]  ;;  %v404_v18 = vld [vmem:[#allocation7 + $0xd8] sm:$0xff]  ;;  %v4474_v31 = vpack.c.bf16 %v421_v23, %v417_v22 }
  0xb5   :  { %4453 = vmatprep.subr.bf16.mxu0 %v4452_v24  ;;  %v4468_v9 = vpack.c.bf16 %v414_v1, %v410_v0  ;;  %v418_v12 = vld [vmem:[#allocation7 + $0x148] sm:$0xff]  ;;  %v4590_v26 = vpack.c.bf16 %v399_v17, %v395_v16  ;;  %v4592_v27 = vpack.c.bf16 %v408_v20, %v404_v18  ;;  %v403_v28 = vld [vmem:[#allocation7 + $0xd0] sm:$0xff]  ;;  %v412_v30 = vld [vmem:[#allocation7 + $0x118] sm:$0xff] }
  0xb6   :  { %4451 = vmatpush1.bf16.msra.mxu1 %v4450_v54  ;;  %v422_v13 = vld [vmem:[#allocation7 + $0x168] sm:$0xff]  ;;  %v416_v32 = vld [vmem:[#allocation7 + $0x138] sm:$0xff]  ;;  %v425_v34 = vld [vmem:[#allocation7 + $0x180] sm:$0xff] }
  0xb7   :  { %292 = vmatmul.mubr.f32.vlgmr.msra.gmra.mrb[0].mxu0 %v6538_v29  ;;  %4581 = vmatprep.subr.bf16.mxu1 %v4580_v55  ;;  %v4472_v21 = vpack.c.bf16 %v422_v13, %v418_v12  ;;  %v426_v24 = vld [vmem:[#allocation7 + $0x188] sm:$0xff]  ;;  %v4596_v39 = vpack.c.bf16 %v416_v32, %v412_v30  ;;  %v411_v40 = vld [vmem:[#allocation7 + $0x110] sm:$0xff]  ;;  %v420_v42 = vld [vmem:[#allocation7 + $0x158] sm:$0xff] }
  0xb8   :  { %4455 = vmatpush1.bf16.msra.mxu0 %v4454_v35  ;;  %v430_v25 = vld [vmem:[#allocation7 + $0x1a8] sm:$0xff]  ;;  %v429_v35 = vld [vmem:[#allocation7 + $0x1a0] sm:$0xff]  ;;  %v415_v41 = vld [vmem:[#allocation7 + $0x130] sm:$0xff] }
  0xb9   :  { %4457 = vmatprep.subr.bf16.mxu0 %v4456_v37  ;;  %363 = vmatmul.mubr.f32.vlgmr.msra.gmra.mrb[0].mxu1 %v6538_v29  ;;  %v407_v29 = vld [vmem:[#allocation7 + $0xf0] sm:$0xff]  ;;  %v4476_v33 = vpack.c.bf16 %v430_v25, %v426_v24  ;;  %v434_v36 = vld [vmem:[#allocation7 + $0x1c8] sm:$0xff]  ;;  %v4478_v43 = vpack.c.bf16 %v429_v35, %v425_v34  ;;  %v424_v44 = vld [vmem:[#allocation7 + $0x178] sm:$0xff]  ;;  %v4598_v50 = vpack.c.bf16 %v415_v41, %v411_v40 }
  0xba   :  { %4583 = vmatpush1.bf16.msra.mxu1 %v4582_v2  ;;  %v438_v37 = vld [vmem:[#allocation7 + $0x1e8] sm:$0xff]  ;;  %v4594_v38 = vpack.c.bf16 %v407_v29, %v403_v28  ;;  %v433_v46 = vld [vmem:[#allocation7 + $0x1c0] sm:$0xff]  ;;  %v4600_v51 = vpack.c.bf16 %v424_v44, %v420_v42  ;;  %v419_v52 = vld [vmem:[#allocation7 + $0x150] sm:$0xff] }
  0xbb   :  { %4585 = vmatprep.subr.bf16.mxu1 %v4584_v3  ;;  %v4480_v45 = vpack.c.bf16 %v438_v37, %v434_v36  ;;  %v442_v48 = vld [vmem:[#allocation7 + $0x208] sm:$0xff]  ;;  %v423_v53 = vld [vmem:[#allocation7 + $0x170] sm:$0xff]  ;;  %v428_v54 = vld [vmem:[#allocation7 + $0x198] sm:$0xff] }
  0xbc   :  { %4459 = vmatpush1.bf16.msra.mxu0 %v4458_v47  ;;  %v437_v47 = vld [vmem:[#allocation7 + $0x1e0] sm:$0xff]  ;;  %v432_v56 = vld [vmem:[#allocation7 + $0x1b8] sm:$0xff]  ;;  %v450_v60 = vld [vmem:[#allocation7 + $0x248] sm:$0xff]  ;;  %v4602_v62 = vpack.c.bf16 %v423_v53, %v419_v52 }
  0xbd   :  { %4461 = vmatprep.subr.bf16.mxu0 %v4460_v49  ;;  %v446_v49 = vld [vmem:[#allocation7 + $0x228] sm:$0xff]  ;;  %v4482_v55 = vpack.c.bf16 %v437_v47, %v433_v46  ;;  %v441_v58 = vld [vmem:[#allocation7 + $0x200] sm:$0xff]  ;;  %v4604_v63 = vpack.c.bf16 %v432_v56, %v428_v54  ;;  %v427_v0 = vld [vmem:[#allocation7 + $0x190] sm:$0xff] }
  0xbe   :  { %4587 = vmatpush1.bf16.msra.mxu1 %v4586_v14  ;;  %v4484_v57 = vpack.c.bf16 %v446_v49, %v442_v48  ;;  %v431_v1 = vld [vmem:[#allocation7 + $0x1b0] sm:$0xff]  ;;  %v436_v2 = vld [vmem:[#allocation7 + $0x1d8] sm:$0xff]  ;;  %v449_v6 = vld [vmem:[#allocation7 + $0x240] sm:$0xff] }
  0xbf   :  { %4589 = vmatprep.subr.bf16.mxu1 %v4588_v15  ;;  %v440_v4 = vld [vmem:[#allocation7 + $0x1f8] sm:$0xff]  ;;  %v458_v8 = vld [vmem:[#allocation7 + $0x288] sm:$0xff]  ;;  %v4606_v10 = vpack.c.bf16 %v431_v1, %v427_v0  ;;  %v435_v12 = vld [vmem:[#allocation7 + $0x1d0] sm:$0xff] }
  0xc0   :  { %4463 = vmatpush1.bf16.msra.mxu0 %v4462_v59  ;;  %v445_v59 = vld [vmem:[#allocation7 + $0x220] sm:$0xff]  ;;  %v4608_v11 = vpack.c.bf16 %v440_v4, %v436_v2  ;;  %v439_v13 = vld [vmem:[#allocation7 + $0x1f0] sm:$0xff]  ;;  %v444_v14 = vld [vmem:[#allocation7 + $0x218] sm:$0xff] }
  0xc1   :  { %4465 = vmatprep.subr.bf16.mxu0 %v4464_v61  ;;  %v454_v61 = vld [vmem:[#allocation7 + $0x268] sm:$0xff]  ;;  %v4486_v3 = vpack.c.bf16 %v445_v59, %v441_v58  ;;  %v448_v16 = vld [vmem:[#allocation7 + $0x238] sm:$0xff]  ;;  %v457_v18 = vld [vmem:[#allocation7 + $0x280] sm:$0xff]  ;;  %v4610_v22 = vpack.c.bf16 %v439_v13, %v435_v12 }
  0xc2   :  { %4591 = vmatpush1.bf16.msra.mxu1 %v4590_v26  ;;  %v4488_v5 = vpack.c.bf16 %v454_v61, %v450_v60  ;;  %v466_v20 = vld [vmem:[#allocation7 + $0x2c8] sm:$0xff]  ;;  %v4612_v23 = vpack.c.bf16 %v448_v16, %v444_v14  ;;  %v443_v24 = vld [vmem:[#allocation7 + $0x210] sm:$0xff]  ;;  %v452_v26 = vld [vmem:[#allocation7 + $0x258] sm:$0xff] }
  0xc3   :  { %4593 = vmatprep.subr.bf16.mxu1 %v4592_v27  ;;  %v447_v25 = vld [vmem:[#allocation7 + $0x230] sm:$0xff]  ;;  %v456_v28 = vld [vmem:[#allocation7 + $0x278] sm:$0xff]  ;;  %v465_v30 = vld [vmem:[#allocation7 + $0x2c0] sm:$0xff] }
  0xc4   :  { %4467 = vmatpush1.bf16.msra.mxu0 %v4466_v7  ;;  %v453_v7 = vld [vmem:[#allocation7 + $0x260] sm:$0xff]  ;;  %v474_v32 = vld [vmem:[#allocation7 + $0x308] sm:$0xff]  ;;  %v4614_v34 = vpack.c.bf16 %v447_v25, %v443_v24  ;;  %v4616_v35 = vpack.c.bf16 %v456_v28, %v452_v26  ;;  %v451_v36 = vld [vmem:[#allocation7 + $0x250] sm:$0xff] }
  0xc5   :  { %4469 = vmatprep.subr.bf16.mxu0 %v4468_v9  ;;  %v462_v9 = vld [vmem:[#allocation7 + $0x2a8] sm:$0xff]  ;;  %v4490_v15 = vpack.c.bf16 %v453_v7, %v449_v6  ;;  %v455_v37 = vld [vmem:[#allocation7 + $0x270] sm:$0xff]  ;;  %v464_v40 = vld [vmem:[#allocation7 + $0x2b8] sm:$0xff] }
  0xc6   :  { %4595 = vmatpush1.bf16.msra.mxu1 %v4594_v38  ;;  %v4492_v17 = vpack.c.bf16 %v462_v9, %v458_v8  ;;  %v460_v38 = vld [vmem:[#allocation7 + $0x298] sm:$0xff]  ;;  %v473_v42 = vld [vmem:[#allocation7 + $0x300] sm:$0xff]  ;;  %v482_v44 = vld [vmem:[#allocation7 + $0x348] sm:$0xff]  ;;  %v4618_v46 = vpack.c.bf16 %v455_v37, %v451_v36 }
  0xc7   :  { %4597 = vmatprep.subr.bf16.mxu1 %v4596_v39  ;;  %v4620_v47 = vpack.c.bf16 %v464_v40, %v460_v38  ;;  %v459_v48 = vld [vmem:[#allocation7 + $0x290] sm:$0xff]  ;;  %v472_v52 = vld [vmem:[#allocation7 + $0x2f8] sm:$0xff]  ;;  %v481_v54 = vld [vmem:[#allocation7 + $0x340] sm:$0xff]  ;;  %v207_v40 = vlaneseq }
  0xc8   :  { %4471 = vmatpush1.bf16.msra.mxu0 %v4470_v19  ;;  %v461_v19 = vld [vmem:[#allocation7 + $0x2a0] sm:$0xff]  ;;  %v463_v49 = vld [vmem:[#allocation7 + $0x2b0] sm:$0xff]  ;;  %v490_v56 = vld [vmem:[#allocation7 + $0x388] sm:$0xff] }
  0xc9   :  { %4473 = vmatprep.subr.bf16.mxu0 %v4472_v21  ;;  %v470_v21 = vld [vmem:[#allocation7 + $0x2e8] sm:$0xff]  ;;  %v4494_v27 = vpack.c.bf16 %v461_v19, %v457_v18  ;;  %v4622_v58 = vpack.c.bf16 %v463_v49, %v459_v48  ;;  %v467_v60 = vld [vmem:[#allocation7 + $0x2d0] sm:$0xff]  ;;  %v480_v0 = vld [vmem:[#allocation7 + $0x338] sm:$0xff] }
  0xca   :  { %4599 = vmatpush1.bf16.msra.mxu1 %v4598_v50  ;;  %v4496_v29 = vpack.c.bf16 %v470_v21, %v466_v20  ;;  %v468_v50 = vld [vmem:[#allocation7 + $0x2d8] sm:$0xff]  ;;  %v471_v61 = vld [vmem:[#allocation7 + $0x2f0] sm:$0xff]  ;;  %v489_v2 = vld [vmem:[#allocation7 + $0x380] sm:$0xff] }
  0xcb   :  { %4601 = vmatprep.subr.bf16.mxu1 %v4600_v51  ;;  %v4624_v59 = vpack.c.bf16 %v472_v52, %v468_v50  ;;  %v4626_v4 = vpack.c.bf16 %v471_v61, %v467_v60  ;;  %v475_v6 = vld [vmem:[#allocation7 + $0x310] sm:$0xff]  ;;  %v484_v9 = vld [vmem:[#allocation7 + $0x358] sm:$0xff]  ;;  %v501_v28 = vld [vmem:[#allocation7 + $0x3e0] sm:$0xff] }
  0xcc   :  { %4475 = vmatpush1.bf16.msra.mxu0 %v4474_v31  ;;  %v469_v31 = vld [vmem:[#allocation7 + $0x2e0] sm:$0xff]  ;;  %v479_v7 = vld [vmem:[#allocation7 + $0x330] sm:$0xff]  ;;  %v496_v16 = vld [vmem:[#allocation7 + $0x3b8] sm:$0xff] }
  0xcd   :  { %4477 = vmatprep.subr.bf16.mxu0 %v4476_v33  ;;  %v478_v33 = vld [vmem:[#allocation7 + $0x328] sm:$0xff]  ;;  %v4498_v39 = vpack.c.bf16 %v469_v31, %v465_v30  ;;  %v483_v13 = vld [vmem:[#allocation7 + $0x350] sm:$0xff]  ;;  %v500_v24 = vld [vmem:[#allocation7 + $0x3d8] sm:$0xff] }
  0xce   :  { %4603 = vmatpush1.bf16.msra.mxu1 %v4602_v62  ;;  %v4500_v41 = vpack.c.bf16 %v478_v33, %v474_v32  ;;  %v476_v62 = vld [vmem:[#allocation7 + $0x318] sm:$0xff]  ;;  %v487_v14 = vld [vmem:[#allocation7 + $0x370] sm:$0xff]  ;;  %v505_v48 = vld [vmem:[#allocation7 + $0x400] sm:$0xff] }
  0xcf   :  { %4605 = vmatprep.subr.bf16.mxu1 %v4604_v63  ;;  %v491_v19 = vld [vmem:[#allocation7 + $0x390] sm:$0xff]  ;;  %v504_v26 = vld [vmem:[#allocation7 + $0x3f8] sm:$0xff]  ;;  %v509_v49 = vld [vmem:[#allocation7 + $0x420] sm:$0xff] }
  0xd0   :  { %4479 = vmatpush1.bf16.msra.mxu0 %v4478_v43  ;;  %v477_v43 = vld [vmem:[#allocation7 + $0x320] sm:$0xff]  ;;  %v495_v20 = vld [vmem:[#allocation7 + $0x3b0] sm:$0xff]  ;;  %v508_v36 = vld [vmem:[#allocation7 + $0x418] sm:$0xff]  ;;  %v4518_v61 = vpack.c.bf16 %v509_v49, %v505_v48 }
  0xd1   :  { %4481 = vmatprep.subr.bf16.mxu0 %v4480_v45  ;;  %v486_v45 = vld [vmem:[#allocation7 + $0x368] sm:$0xff]  ;;  %v4502_v51 = vpack.c.bf16 %v477_v43, %v473_v42  ;;  %v4638_v21 = vpack.c.bf16 %v495_v20, %v491_v19  ;;  %v499_v31 = vld [vmem:[#allocation7 + $0x3d0] sm:$0xff]  ;;  %v512_v38 = vld [vmem:[#allocation7 + $0x438] sm:$0xff] }
  0xd2   :  { %4607 = vmatpush1.bf16.msra.mxu1 %v4606_v10  ;;  %v4504_v53 = vpack.c.bf16 %v486_v45, %v482_v44  ;;  %v488_v10 = vld [vmem:[#allocation7 + $0x378] sm:$0xff]  ;;  %v503_v32 = vld [vmem:[#allocation7 + $0x3f0] sm:$0xff]  ;;  %v530_v20 = vld [vmem:[#allocation7 + $0x4c8] sm:$0xff] }
  0xd3   :  { %4609 = vmatprep.subr.bf16.mxu1 %v4608_v11  ;;  %v4630_v11 = vpack.c.bf16 %v479_v7, %v475_v6  ;;  %v4632_v12 = vpack.c.bf16 %v488_v10, %v484_v9  ;;  %v4642_v33 = vpack.c.bf16 %v503_v32, %v499_v31  ;;  %v6547_v43 = vld [vmem:[#allocation5] sm:$0xf]  ;;  %v507_v52 = vld [vmem:[#allocation7 + $0x410] sm:$0xff]  ;;  %v522_v6 = vld [vmem:[#allocation7 + $0x488] sm:$0xff] }
  0xd4   :  { %4483 = vmatpush1.bf16.msra.mxu0 %v4482_v55  ;;  %v485_v55 = vld [vmem:[#allocation7 + $0x360] sm:$0xff]  ;;  %v524_v9 = vld [vmem:[#allocation7 + $0x498] sm:$0xff]  ;;  %v527_v19 = vld [vmem:[#allocation7 + $0x4b0] sm:$0xff] }
  0xd5   :  { %4485 = vmatprep.subr.bf16.mxu0 %v4484_v57  ;;  %v494_v57 = vld [vmem:[#allocation7 + $0x3a8] sm:$0xff]  ;;  %v4506_v63 = vpack.c.bf16 %v485_v55, %v481_v54  ;;  %v528_v10 = vld [vmem:[#allocation7 + $0x4b8] sm:$0xff]  ;;  %v537_v48 = vld [vmem:[#allocation7 + $0x500] sm:$0xff] }
  0xd6   :  { %4611 = vmatpush1.bf16.msra.mxu1 %v4610_v22  ;;  %v4508_v1 = vpack.c.bf16 %v494_v57, %v490_v56  ;;  %v498_v22 = vld [vmem:[#allocation7 + $0x3c8] sm:$0xff]  ;;  %v516_v57 = vld [vmem:[#allocation7 + $0x458] sm:$0xff]  ;;  %v541_v49 = vld [vmem:[#allocation7 + $0x520] sm:$0xff] }
  0xd7   :  { %4613 = vmatprep.subr.bf16.mxu1 %v4612_v23  ;;  %v502_v23 = vld [vmem:[#allocation7 + $0x3e8] sm:$0xff] }
  0xd8   :  { %4487 = vmatpush1.bf16.msra.mxu0 %v4486_v3  ;;  %v493_v3 = vld [vmem:[#allocation7 + $0x3a0] sm:$0xff]  ;;  %v4512_v25 = vpack.c.bf16 %v502_v23, %v498_v22  ;;  %v514_v54 = vld [vmem:[#allocation7 + $0x448] sm:$0xff]  ;;  %v532_v23 = vld [vmem:[#allocation7 + $0x4d8] sm:$0xff] }
  0xd9   :  { %4489 = vmatprep.subr.bf16.mxu0 %v4488_v5  ;;  %v4628_v5 = vpack.c.bf16 %v480_v0, %v476_v62  ;;  %v4510_v8 = vpack.c.bf16 %v493_v3, %v489_v2  ;;  %v518_v56 = vld [vmem:[#allocation7 + $0x468] sm:$0xff]  ;;  %v517_v0 = vld [vmem:[#allocation7 + $0x460] sm:$0xff] }
  0xda   :  { %4615 = vmatpush1.bf16.msra.mxu1 %v4614_v34  ;;  %v506_v34 = vld [vmem:[#allocation7 + $0x408] sm:$0xff]  ;;  %v4520_v2 = vpack.c.bf16 %v518_v56, %v514_v54  ;;  %v548_v56 = vld [vmem:[#allocation7 + $0x558] sm:$0xff] }
  0xdb   :  { %4617 = vmatprep.subr.bf16.mxu1 %v4616_v35  ;;  %v510_v35 = vld [vmem:[#allocation7 + $0x428] sm:$0xff] }
  0xdc   :  { %4491 = vmatpush1.bf16.msra.mxu0 %v4490_v15  ;;  %v492_v15 = vld [vmem:[#allocation7 + $0x398] sm:$0xff]  ;;  %v4516_v37 = vpack.c.bf16 %v510_v35, %v506_v34  ;;  %v534_v22 = vld [vmem:[#allocation7 + $0x4e8] sm:$0xff]  ;;  %v531_v34 = vld [vmem:[#allocation7 + $0x4d0] sm:$0xff] }
  0xdd   :  { %4493 = vmatprep.subr.bf16.mxu0 %v4492_v17  ;;  %v4634_v17 = vpack.c.bf16 %v487_v14, %v483_v13  ;;  %v4636_v18 = vpack.c.bf16 %v496_v16, %v492_v15  ;;  %v521_v13 = vld [vmem:[#allocation7 + $0x480] sm:$0xff]  ;;  %v4528_v32 = vpack.c.bf16 %v534_v22, %v530_v20  ;;  %v535_v35 = vld [vmem:[#allocation7 + $0x4f0] sm:$0xff]  ;;  %v546_v54 = vld [vmem:[#allocation7 + $0x548] sm:$0xff] }
  0xde   :  { %4619 = vmatpush1.bf16.msra.mxu1 %v4618_v46  ;;  %v525_v14 = vld [vmem:[#allocation7 + $0x4a0] sm:$0xff] }
  0xdf   :  { %4621 = vmatprep.subr.bf16.mxu1 %v4620_v47  ;;  %v561_v22 = vld [vmem:[#allocation7 + $0x5c0] sm:$0xff] }
  0xe0   :  { %4495 = vmatpush1.bf16.msra.mxu0 %v4494_v27  ;;  %v497_v27 = vld [vmem:[#allocation7 + $0x3c0] sm:$0xff] }
  0xe1   :  { %4497 = vmatprep.subr.bf16.mxu0 %v4496_v29  ;;  %v4640_v29 = vpack.c.bf16 %v504_v26, %v500_v24  ;;  %v4514_v30 = vpack.c.bf16 %v501_v28, %v497_v27  ;;  %v536_v24 = vld [vmem:[#allocation7 + $0x4f8] sm:$0xff]  ;;  %v4526_v26 = vpack.c.bf16 %v525_v14, %v521_v13  ;;  %v529_v28 = vld [vmem:[#allocation7 + $0x4c0] sm:$0xff]  ;;  %v555_v14 = vld [vmem:[#allocation7 + $0x590] sm:$0xff] }
  0xe2   :  { %4623 = vmatpush1.bf16.msra.mxu1 %v4622_v58  ;;  %v520_v58 = vld [vmem:[#allocation7 + $0x478] sm:$0xff] }
  0xe3   :  { %4625 = vmatprep.subr.bf16.mxu1 %v4624_v59  ;;  %v4648_v3 = vpack.c.bf16 %v520_v58, %v516_v57  ;;  %v552_v57 = vld [vmem:[#allocation7 + $0x578] sm:$0xff]  ;;  %v4534_v58 = vpack.c.bf16 %v541_v49, %v537_v48 }
  0xe4   :  { %4499 = vmatpush1.bf16.msra.mxu0 %v4498_v39  ;;  %v4644_v39 = vpack.c.bf16 %v512_v38, %v508_v36  ;;  %v538_v36 = vld [vmem:[#allocation7 + $0x508] sm:$0xff] }
  0xe5   :  { %4501 = vmatprep.subr.bf16.mxu0 %v4500_v41  ;;  %v6542_v41 = vshrl.u32 %v207_v40, 7  ;;  %v542_v38 = vld [vmem:[#allocation7 + $0x528] sm:$0xff]  ;;  %v544_v40 = vld [vmem:[#allocation7 + $0x538] sm:$0xff] }
  0xe6   :  { %4627 = vmatpush1.bf16.msra.mxu1 %v4626_v4  ;;  %v515_v4 = vld [vmem:[#allocation7 + $0x450] sm:$0xff] }
  0xe7   :  { %4629 = vmatprep.subr.bf16.mxu1 %v4628_v5  ;;  %v6545_v42 = vsub.s32 0, %v6542_v41  ;;  %v6550_v44 = vsub.s32 1, %v6542_v41  ;;  %v519_v5 = vld [vmem:[#allocation7 + $0x470] sm:$0xff]  ;;  %v6560_v7 = vsub.s32 3, %v6542_v41 }
  0xe8   :  { %4503 = vmatpush1.bf16.msra.mxu0 %v4502_v51 }
  0xe9   :  { %4505 = vmatprep.subr.bf16.mxu0 %v4504_v53  ;;  %v210_v45 = vrot.slane %v6547_v43, %v6545_v42  ;;  %v214_v46 = vrot.slane %v6547_v43, %v6550_v44  ;;  %v511_v53 = vld [vmem:[#allocation7 + $0x430] sm:$0xff] }
  0xea   :  { %4631 = vmatpush1.bf16.msra.mxu1 %v4630_v11  ;;  %v4646_v62 = vpack.c.bf16 %v511_v53, %v507_v52  ;;  %v539_v52 = vld [vmem:[#allocation7 + $0x510] sm:$0xff] }
  0xeb   :  { %4633 = vmatprep.subr.bf16.mxu1 %v4632_v12  ;;  %v4650_v12 = vpack.c.bf16 %v519_v5, %v515_v4  ;;  %v543_v53 = vld [vmem:[#allocation7 + $0x530] sm:$0xff]  ;;  %v558_v4 = vld [vmem:[#allocation7 + $0x5a8] sm:$0xff]  ;;  %v556_v5 = vld [vmem:[#allocation7 + $0x598] sm:$0xff] }
  0xec   :  { %4507 = vmatpush1.bf16.msra.mxu0 %v4506_v63  ;;  %v513_v63 = vld [vmem:[#allocation7 + $0x440] sm:$0xff] }
  0xed   :  { %4509 = vmatprep.subr.bf16.mxu0 %v4508_v1  ;;  %v6557_v1 = vsub.s32 2, %v6542_v41  ;;  %v4522_v11 = vpack.c.bf16 %v517_v0, %v513_v63  ;;  %v4664_v63 = vpack.c.bf16 %v552_v57, %v548_v56  ;;  %v547_v0 = vld [vmem:[#allocation7 + $0x550] sm:$0xff]  ;;  %v586_v56 = vld [vmem:[#allocation7 + $0x688] sm:$0xff] }
  0xee   :  { %4635 = vmatpush1.bf16.msra.mxu1 %v4634_v17  ;;  %v4652_v17 = vpack.c.bf16 %v528_v10, %v524_v9  ;;  %v553_v10 = vld [vmem:[#allocation7 + $0x580] sm:$0xff]  ;;  %v590_v57 = vld [vmem:[#allocation7 + $0x6a8] sm:$0xff] }
  0xef   :  { %4637 = vmatprep.subr.bf16.mxu1 %v4636_v18  ;;  %v218_v15 = vrot.slane %v6547_v43, %v6557_v1  ;;  %v523_v18 = vld [vmem:[#allocation7 + $0x490] sm:$0xff] }
  0xf0   :  { %4511 = vmatpush1.bf16.msra.mxu0 %v4510_v8  ;;  %v526_v8 = vld [vmem:[#allocation7 + $0x4a8] sm:$0xff]  ;;  %v4654_v27 = vpack.c.bf16 %v527_v19, %v523_v18  ;;  %v564_v18 = vld [vmem:[#allocation7 + $0x5d8] sm:$0xff] }
  0xf1   :  { %4513 = vmatprep.subr.bf16.mxu0 %v4512_v25  ;;  %v4524_v16 = vpack.c.bf16 %v526_v8, %v522_v6  ;;  %v560_v6 = vld [vmem:[#allocation7 + $0x5b8] sm:$0xff] }
  0xf2   :  { %4639 = vmatpush1.bf16.msra.mxu1 %v4638_v21  ;;  %v222_v21 = vrot.slane %v6547_v43, %v6560_v7  ;;  %v4668_v13 = vpack.c.bf16 %v560_v6, %v556_v5  ;;  %v568_v19 = vld [vmem:[#allocation7 + $0x5f8] sm:$0xff]  ;;  %v594_v5 = vld [vmem:[#allocation7 + $0x6c8] sm:$0xff] }
  0xf3   :  { %4641 = vmatprep.subr.bf16.mxu1 %v4640_v29  ;;  %v533_v29 = vld [vmem:[#allocation7 + $0x4e0] sm:$0xff]  ;;  %v598_v6 = vld [vmem:[#allocation7 + $0x6e8] sm:$0xff] }
  0xf4   :  { %4515 = vmatpush1.bf16.msra.mxu0 %v4514_v30 }
  0xf5   :  { %4517 = vmatprep.subr.bf16.mxu0 %v4516_v37 }
  0xf6   :  { %4643 = vmatpush1.bf16.msra.mxu1 %v4642_v33  ;;  %v4656_v33 = vpack.c.bf16 %v536_v24, %v532_v23  ;;  %v565_v23 = vld [vmem:[#allocation7 + $0x5e0] sm:$0xff] }
  0xf7   :  { %4645 = vmatprep.subr.bf16.mxu1 %v4644_v39  ;;  %v540_v39 = vld [vmem:[#allocation7 + $0x518] sm:$0xff] }
 0x18a   :  { %v293_v47 = vpop.f32.mrb[0].mxu0 }
 0x18b   :  { %v294_v50 = vadd.f32 %v293_v47, %v210_v45  ;;  %v295_v51 = vpop.f32.mrb[1].mxu0  ;;  %v4658_v47 = vpack.c.bf16 %v535_v35, %v531_v34  ;;  %v569_v34 = vld [vmem:[#allocation7 + $0x600] sm:$0xff] }
 0x18c   :  { %v296_v55 = vadd.f32 %v295_v51, %v214_v46  ;;  %v364_v25 = vpop.f32.mrb[0].mxu1  ;;  %v4530_v46 = vpack.c.bf16 %v533_v29, %v529_v28  ;;  %v4660_v51 = vpack.c.bf16 %v544_v40, %v540_v39  ;;  %v570_v28 = vld [vmem:[#allocation7 + $0x608] sm:$0xff]  ;;  %v573_v35 = vld [vmem:[#allocation7 + $0x620] sm:$0xff]  ;;  %v575_v39 = vld [vmem:[#allocation7 + $0x630] sm:$0xff] }
 0x18d   :  { %v369_v59 = vmax.f32 %v294_v50, 0.0  ;;  %v365_v30 = vadd.f32 %v364_v25, %v218_v15  ;;  %v366_v31 = vpop.f32.mrb[1].mxu1  ;;  %v4532_v50 = vpack.c.bf16 %v542_v38, %v538_v36  ;;  %v559_v15 = vld [vmem:[#allocation7 + $0x5b0] sm:$0xff]  ;;  %v4672_v25 = vpack.c.bf16 %v568_v19, %v564_v18  ;;  %v574_v29 = vld [vmem:[#allocation7 + $0x628] sm:$0xff] }
 0x18e   :  { %v370_v60 = vmax.f32 %v296_v55, 0.0  ;;  %v367_v37 = vadd.f32 %v366_v31, %v222_v21  ;;  %v550_v55 = vld [vmem:[#allocation7 + $0x568] sm:$0xff]  ;;  %v4670_v21 = vpack.c.bf16 %v559_v15, %v555_v14  ;;  %v576_v31 = vld [vmem:[#allocation7 + $0x638] sm:$0xff]  ;;  %v4548_v36 = vpack.c.bf16 %v574_v29, %v570_v28  ;;  %v571_v38 = vld [vmem:[#allocation7 + $0x610] sm:$0xff] }
 0x18f   :  { %373 = vst [vmem:[#allocation16] sm:$0xff] %v369_v59  ;;  %v6566_v43 = vmax.f32 %v365_v30, 0.0  ;;  %v572_v30 = vld [vmem:[#allocation7 + $0x618] sm:$0xff]  ;;  %v578_v40 = vld [vmem:[#allocation7 + $0x648] sm:$0xff]  ;;  %v4550_v48 = vpack.c.bf16 %v573_v35, %v569_v34  ;;  %v4678_v49 = vpack.c.bf16 %v575_v39, %v571_v38  ;;  %v4560_v14 = vpack.c.bf16 %v598_v6, %v594_v5  ;;  %v603_v28 = vld [vmem:[#allocation7 + $0x710] sm:$0xff] }
 0x190   :  { %374 = vst [vmem:[#allocation16 + $0x8] sm:$0xff] %v370_v60  ;;  %719 = vmatprep.mubr.f32.mxu0 %v370_v60  ;;  %861 = vmatprep.mubr.f32.mxu1 %v370_v60  ;;  %v372_v45 = vmax.f32 %v367_v37, 0.0  ;;  %v545_v60 = vld [vmem:[#allocation7 + $0x540] sm:$0xff]  ;;  %v4676_v37 = vpack.c.bf16 %v576_v31, %v572_v30  ;;  %v602_v18 = vld [vmem:[#allocation7 + $0x708] sm:$0xff]  ;;  %v607_v29 = vld [vmem:[#allocation7 + $0x730] sm:$0xff] }
 0x191   :  { %720 = vmatmul.mubr.f32.vlgmr.msra.gmra.mrb[2].mxu0 %v369_v59  ;;  %862 = vmatmul.mubr.f32.vlgmr.msra.gmra.mrb[2].mxu1 %v369_v59  ;;  %375 = vst [vmem:[#allocation16 + $0x10] sm:$0xff] %v6566_v43  ;;  %v4662_v59 = vpack.c.bf16 %v543_v53, %v539_v52  ;;  %v606_v19 = vld [vmem:[#allocation7 + $0x728] sm:$0xff]  ;;  %v4694_v35 = vpack.c.bf16 %v607_v29, %v603_v28  ;;  %v627_v5 = vld [vmem:[#allocation7 + $0x7d0] sm:$0xff] }
 0x192   :  { %4519 = vmatpush1.bf16.msra.mxu0 %v4518_v61  ;;  %4647 = vmatpush1.bf16.msra.mxu1 %v4646_v62  ;;  %376 = vst [vmem:[#allocation16 + $0x18] sm:$0xff] %v372_v45  ;;  %v549_v61 = vld [vmem:[#allocation7 + $0x560] sm:$0xff]  ;;  %v4536_v62 = vpack.c.bf16 %v550_v55, %v546_v54  ;;  %v579_v54 = vld [vmem:[#allocation7 + $0x650] sm:$0xff]  ;;  %v610_v30 = vld [vmem:[#allocation7 + $0x748] sm:$0xff] }
 0x193   :  { %4521 = vmatprep.subr.bf16.mxu0 %v4520_v2  ;;  %4649 = vmatprep.subr.bf16.mxu1 %v4648_v3  ;;  %v551_v2 = vld [vmem:[#allocation7 + $0x570] sm:$0xff]  ;;  %v554_v3 = vld [vmem:[#allocation7 + $0x588] sm:$0xff]  ;;  %v4538_v8 = vpack.c.bf16 %v549_v61, %v545_v60 }
 0x194   :  { %790 = vmatprep.mubr.f32.mxu0 %v372_v45  ;;  %932 = vmatprep.mubr.f32.mxu1 %v372_v45  ;;  %v4666_v9 = vpack.c.bf16 %v551_v2, %v547_v0  ;;  %v582_v45 = vld [vmem:[#allocation7 + $0x668] sm:$0xff]  ;;  %v583_v55 = vld [vmem:[#allocation7 + $0x670] sm:$0xff]  ;;  %v4556_v0 = vpack.c.bf16 %v590_v57, %v586_v56 }
 0x195   :  { %v4552_v52 = vpack.c.bf16 %v582_v45, %v578_v40  ;;  %v4682_v61 = vpack.c.bf16 %v583_v55, %v579_v54  ;;  %v614_v31 = vld [vmem:[#allocation7 + $0x768] sm:$0xff]  ;;  %v611_v40 = vld [vmem:[#allocation7 + $0x750] sm:$0xff] }
 0x196   :  { %4523 = vmatpush1.bf16.msra.mxu0 %v4522_v11  ;;  %4651 = vmatpush1.bf16.msra.mxu1 %v4650_v12  ;;  %v557_v11 = vld [vmem:[#allocation7 + $0x5a0] sm:$0xff]  ;;  %v4540_v12 = vpack.c.bf16 %v558_v4, %v554_v3  ;;  %v587_v3 = vld [vmem:[#allocation7 + $0x690] sm:$0xff]  ;;  %v4568_v38 = vpack.c.bf16 %v614_v31, %v610_v30 }
 0x197   :  { %4525 = vmatprep.subr.bf16.mxu0 %v4524_v16  ;;  %4653 = vmatprep.subr.bf16.mxu1 %v4652_v17  ;;  %v562_v16 = vld [vmem:[#allocation7 + $0x5c8] sm:$0xff]  ;;  %v4542_v20 = vpack.c.bf16 %v557_v11, %v553_v10  ;;  %v591_v4 = vld [vmem:[#allocation7 + $0x6b0] sm:$0xff] }
 0x198   :  { %v566_v17 = vld [vmem:[#allocation7 + $0x5e8] sm:$0xff]  ;;  %v4686_v11 = vpack.c.bf16 %v591_v4, %v587_v3  ;;  %v615_v45 = vld [vmem:[#allocation7 + $0x770] sm:$0xff] }
 0x199   :  { %v4544_v24 = vpack.c.bf16 %v566_v17, %v562_v16  ;;  %v595_v16 = vld [vmem:[#allocation7 + $0x6d0] sm:$0xff] }
 0x19a   :  { %4527 = vmatpush1.bf16.msra.mxu0 %v4526_v26  ;;  %4655 = vmatpush1.bf16.msra.mxu1 %v4654_v27  ;;  %v563_v26 = vld [vmem:[#allocation7 + $0x5d0] sm:$0xff] }
 0x19b   :  { %4529 = vmatprep.subr.bf16.mxu0 %v4528_v32  ;;  %4657 = vmatprep.subr.bf16.mxu1 %v4656_v33  ;;  %v567_v27 = vld [vmem:[#allocation7 + $0x5f0] sm:$0xff]  ;;  %v4546_v32 = vpack.c.bf16 %v565_v23, %v561_v22 }
 0x19c   :  { %v4674_v33 = vpack.c.bf16 %v567_v27, %v563_v26  ;;  %v599_v17 = vld [vmem:[#allocation7 + $0x6f0] sm:$0xff]  ;;  %v4564_v26 = vpack.c.bf16 %v606_v19, %v602_v18 }
 0x19d   :  { %v4690_v23 = vpack.c.bf16 %v599_v17, %v595_v16  ;;  %v619_v56 = vld [vmem:[#allocation7 + $0x790] sm:$0xff] }
 0x19e   :  { %4531 = vmatpush1.bf16.msra.mxu0 %v4530_v46  ;;  %4659 = vmatpush1.bf16.msra.mxu1 %v4658_v47  ;;  %v580_v46 = vld [vmem:[#allocation7 + $0x658] sm:$0xff]  ;;  %v623_v57 = vld [vmem:[#allocation7 + $0x7b0] sm:$0xff] }
 0x19f   :  { %4533 = vmatprep.subr.bf16.mxu0 %v4532_v50  ;;  %4661 = vmatprep.subr.bf16.mxu1 %v4660_v51  ;;  %v584_v47 = vld [vmem:[#allocation7 + $0x678] sm:$0xff]  ;;  %v577_v50 = vld [vmem:[#allocation7 + $0x640] sm:$0xff]  ;;  %v631_v6 = vld [vmem:[#allocation7 + $0x7f0] sm:$0xff] }
 0x1a0   :  { %v581_v51 = vld [vmem:[#allocation7 + $0x660] sm:$0xff]  ;;  %v4680_v53 = vpack.c.bf16 %v584_v47, %v580_v46  ;;  %v618_v46 = vld [vmem:[#allocation7 + $0x788] sm:$0xff]  ;;  %v949_v18 = vld [vmem:[#allocation10 + $0x10] sm:$0xff] }
 0x1a1   :  { %v4554_v60 = vpack.c.bf16 %v581_v51, %v577_v50  ;;  %v622_v47 = vld [vmem:[#allocation7 + $0x7a8] sm:$0xff]  ;;  %v4698_v51 = vpack.c.bf16 %v615_v45, %v611_v40  ;;  %v965_v19 = vld [vmem:[#allocation10 + $0x90] sm:$0xff] }
 0x1a2   :  { %4535 = vmatpush1.bf16.msra.mxu0 %v4534_v58  ;;  %4663 = vmatpush1.bf16.msra.mxu1 %v4662_v59  ;;  %v588_v58 = vld [vmem:[#allocation7 + $0x698] sm:$0xff]  ;;  %v4572_v54 = vpack.c.bf16 %v622_v47, %v618_v46 }
 0x1a3   :  { %4537 = vmatprep.subr.bf16.mxu0 %v4536_v62  ;;  %4665 = vmatprep.subr.bf16.mxu1 %v4664_v63  ;;  %v592_v59 = vld [vmem:[#allocation7 + $0x6b8] sm:$0xff]  ;;  %v585_v62 = vld [vmem:[#allocation7 + $0x680] sm:$0xff] }
 0x1a4   :  { %v589_v63 = vld [vmem:[#allocation7 + $0x6a0] sm:$0xff]  ;;  %v4684_v2 = vpack.c.bf16 %v592_v59, %v588_v58  ;;  %v626_v58 = vld [vmem:[#allocation7 + $0x7c8] sm:$0xff]  ;;  %v981_v30 = vld [vmem:[#allocation10 + $0x110] sm:$0xff] }
 0x1a5   :  { %v4558_v10 = vpack.c.bf16 %v589_v63, %v585_v62  ;;  %v630_v59 = vld [vmem:[#allocation7 + $0x7e8] sm:$0xff]  ;;  %v4702_v63 = vpack.c.bf16 %v623_v57, %v619_v56  ;;  %v997_v31 = vld [vmem:[#allocation10 + $0x190] sm:$0xff] }
 0x1a6   :  { %4539 = vmatpush1.bf16.msra.mxu0 %v4538_v8  ;;  %4667 = vmatpush1.bf16.msra.mxu1 %v4666_v9  ;;  %v596_v8 = vld [vmem:[#allocation7 + $0x6d8] sm:$0xff]  ;;  %v4576_v3 = vpack.c.bf16 %v630_v59, %v626_v58  ;;  %v1076_v59 = vld [vmem:[#allocation10 + $0x408] sm:$0xff] }
 0x1a7   :  { %4541 = vmatprep.subr.bf16.mxu0 %v4540_v12  ;;  %4669 = vmatprep.subr.bf16.mxu1 %v4668_v13  ;;  %v600_v9 = vld [vmem:[#allocation7 + $0x6f8] sm:$0xff]  ;;  %v593_v12 = vld [vmem:[#allocation7 + $0x6c0] sm:$0xff] }
 0x1a8   :  { %v597_v13 = vld [vmem:[#allocation7 + $0x6e0] sm:$0xff]  ;;  %v4688_v15 = vpack.c.bf16 %v600_v9, %v596_v8  ;;  %v948_v8 = vld [vmem:[#allocation10 + $0x8] sm:$0xff]  ;;  %v1013_v46 = vld [vmem:[#allocation10 + $0x210] sm:$0xff] }
 0x1a9   :  { %v4562_v22 = vpack.c.bf16 %v597_v13, %v593_v12  ;;  %v964_v9 = vld [vmem:[#allocation10 + $0x88] sm:$0xff]  ;;  %v4706_v13 = vpack.c.bf16 %v631_v6, %v627_v5  ;;  %v1029_v47 = vld [vmem:[#allocation10 + $0x290] sm:$0xff] }
 0x1aa   :  { %4543 = vmatpush1.bf16.msra.mxu0 %v4542_v20  ;;  %4671 = vmatpush1.bf16.msra.mxu1 %v4670_v21  ;;  %v604_v20 = vld [vmem:[#allocation7 + $0x718] sm:$0xff]  ;;  %v4708_v16 = vpack.c.bf16 %v964_v9, %v948_v8  ;;  %v1108_v9 = vld [vmem:[#allocation10 + $0x508] sm:$0xff] }
 0x1ab   :  { %4545 = vmatprep.subr.bf16.mxu0 %v4544_v24  ;;  %4673 = vmatprep.subr.bf16.mxu1 %v4672_v25  ;;  %v608_v21 = vld [vmem:[#allocation7 + $0x738] sm:$0xff]  ;;  %v601_v24 = vld [vmem:[#allocation7 + $0x700] sm:$0xff] }
 0x1ac   :  { %v605_v25 = vld [vmem:[#allocation7 + $0x720] sm:$0xff]  ;;  %v4692_v27 = vpack.c.bf16 %v608_v21, %v604_v20  ;;  %v980_v20 = vld [vmem:[#allocation10 + $0x108] sm:$0xff]  ;;  %v1045_v57 = vld [vmem:[#allocation10 + $0x310] sm:$0xff] }
 0x1ad   :  { %v4566_v34 = vpack.c.bf16 %v605_v25, %v601_v24  ;;  %v996_v21 = vld [vmem:[#allocation10 + $0x188] sm:$0xff]  ;;  %v4838_v25 = vpack.c.bf16 %v965_v19, %v949_v18  ;;  %v1061_v58 = vld [vmem:[#allocation10 + $0x390] sm:$0xff] }
 0x1ae   :  { %4547 = vmatpush1.bf16.msra.mxu0 %v4546_v32  ;;  %4675 = vmatpush1.bf16.msra.mxu1 %v4674_v33  ;;  %v612_v32 = vld [vmem:[#allocation7 + $0x758] sm:$0xff]  ;;  %v4712_v28 = vpack.c.bf16 %v996_v21, %v980_v20  ;;  %v1140_v21 = vld [vmem:[#allocation10 + $0x608] sm:$0xff] }
 0x1af   :  { %4549 = vmatprep.subr.bf16.mxu0 %v4548_v36  ;;  %4677 = vmatprep.subr.bf16.mxu1 %v4676_v37  ;;  %v616_v33 = vld [vmem:[#allocation7 + $0x778] sm:$0xff]  ;;  %v609_v36 = vld [vmem:[#allocation7 + $0x740] sm:$0xff] }
 0x1b0   :  { %v613_v37 = vld [vmem:[#allocation7 + $0x760] sm:$0xff]  ;;  %v4696_v39 = vpack.c.bf16 %v616_v33, %v612_v32  ;;  %v1012_v32 = vld [vmem:[#allocation10 + $0x208] sm:$0xff]  ;;  %v1077_v6 = vld [vmem:[#allocation10 + $0x410] sm:$0xff] }
 0x1b1   :  { %v4570_v50 = vpack.c.bf16 %v613_v37, %v609_v36  ;;  %v1028_v33 = vld [vmem:[#allocation10 + $0x288] sm:$0xff]  ;;  %v4842_v37 = vpack.c.bf16 %v997_v31, %v981_v30  ;;  %v1093_v8 = vld [vmem:[#allocation10 + $0x490] sm:$0xff] }
 0x1b2   :  { %4551 = vmatpush1.bf16.msra.mxu0 %v4550_v48  ;;  %4679 = vmatpush1.bf16.msra.mxu1 %v4678_v49  ;;  %v620_v48 = vld [vmem:[#allocation7 + $0x798] sm:$0xff]  ;;  %v4716_v40 = vpack.c.bf16 %v1028_v33, %v1012_v32  ;;  %v1172_v33 = vld [vmem:[#allocation10 + $0x708] sm:$0xff] }
 0x1b3   :  { %4553 = vmatprep.subr.bf16.mxu0 %v4552_v52  ;;  %4681 = vmatprep.subr.bf16.mxu1 %v4680_v53  ;;  %v624_v49 = vld [vmem:[#allocation7 + $0x7b8] sm:$0xff]  ;;  %v617_v52 = vld [vmem:[#allocation7 + $0x780] sm:$0xff] }
 0x1b4   :  { %v621_v53 = vld [vmem:[#allocation7 + $0x7a0] sm:$0xff]  ;;  %v4700_v55 = vpack.c.bf16 %v624_v49, %v620_v48  ;;  %v1044_v48 = vld [vmem:[#allocation10 + $0x308] sm:$0xff]  ;;  %v1109_v19 = vld [vmem:[#allocation10 + $0x510] sm:$0xff] }
 0x1b5   :  { %v4574_v62 = vpack.c.bf16 %v621_v53, %v617_v52  ;;  %v1060_v49 = vld [vmem:[#allocation10 + $0x388] sm:$0xff]  ;;  %v1043_v53 = vld [vmem:[#allocation10 + $0x300] sm:$0xff]  ;;  %v1125_v20 = vld [vmem:[#allocation10 + $0x590] sm:$0xff] }
 0x1b6   :  { %4555 = vmatpush1.bf16.msra.mxu0 %v4554_v60  ;;  %4683 = vmatpush1.bf16.msra.mxu1 %v4682_v61  ;;  %v628_v60 = vld [vmem:[#allocation7 + $0x7d8] sm:$0xff] }
 0x1b7   :  { %4557 = vmatprep.subr.bf16.mxu0 %v4556_v0  ;;  %4685 = vmatprep.subr.bf16.mxu1 %v4684_v2  ;;  %v632_v61 = vld [vmem:[#allocation7 + $0x7f8] sm:$0xff]  ;;  %v625_v0 = vld [vmem:[#allocation7 + $0x7c0] sm:$0xff] }
 0x1b8   :  { %v629_v2 = vld [vmem:[#allocation7 + $0x7e0] sm:$0xff]  ;;  %v4704_v4 = vpack.c.bf16 %v632_v61, %v628_v60  ;;  %v1092_v60 = vld [vmem:[#allocation10 + $0x488] sm:$0xff]  ;;  %v1141_v31 = vld [vmem:[#allocation10 + $0x610] sm:$0xff] }
 0x1b9   :  { %v4578_v12 = vpack.c.bf16 %v629_v2, %v625_v0  ;;  %v1078_v61 = vld [vmem:[#allocation10 + $0x418] sm:$0xff]  ;;  %v4850_v0 = vpack.c.bf16 %v1061_v58, %v1045_v57  ;;  %v1075_v2 = vld [vmem:[#allocation10 + $0x400] sm:$0xff]  ;;  %v1157_v32 = vld [vmem:[#allocation10 + $0x690] sm:$0xff] }
 0x1ba   :  { %4559 = vmatpush1.bf16.msra.mxu0 %v4558_v10  ;;  %4687 = vmatpush1.bf16.msra.mxu1 %v4686_v11  ;;  %v950_v10 = vld [vmem:[#allocation10 + $0x18] sm:$0xff]  ;;  %v1205_v58 = vld [vmem:[#allocation10 + $0x810] sm:$0xff] }
 0x1bb   :  { %4561 = vmatprep.subr.bf16.mxu0 %v4560_v14  ;;  %4689 = vmatprep.subr.bf16.mxu1 %v4688_v15  ;;  %v966_v11 = vld [vmem:[#allocation10 + $0x98] sm:$0xff]  ;;  %v947_v14 = vld [vmem:[#allocation10] sm:$0xff] }
 0x1bc   :  { %v963_v15 = vld [vmem:[#allocation10 + $0x80] sm:$0xff]  ;;  %v4836_v17 = vpack.c.bf16 %v966_v11, %v950_v10  ;;  %v1124_v10 = vld [vmem:[#allocation10 + $0x588] sm:$0xff]  ;;  %v1110_v11 = vld [vmem:[#allocation10 + $0x518] sm:$0xff] }
 0x1bd   :  { %v4710_v24 = vpack.c.bf16 %v963_v15, %v947_v14  ;;  %v4854_v14 = vpack.c.bf16 %v1093_v8, %v1077_v6  ;;  %v1107_v15 = vld [vmem:[#allocation10 + $0x500] sm:$0xff]  ;;  %v1237_v8 = vld [vmem:[#allocation10 + $0x910] sm:$0xff] }
 0x1be   :  { %4563 = vmatpush1.bf16.msra.mxu0 %v4562_v22  ;;  %4691 = vmatpush1.bf16.msra.mxu1 %v4690_v23  ;;  %v982_v22 = vld [vmem:[#allocation10 + $0x118] sm:$0xff] }
 0x1bf   :  { %4565 = vmatprep.subr.bf16.mxu0 %v4564_v26  ;;  %4693 = vmatprep.subr.bf16.mxu1 %v4692_v27  ;;  %v998_v23 = vld [vmem:[#allocation10 + $0x198] sm:$0xff]  ;;  %v979_v26 = vld [vmem:[#allocation10 + $0x100] sm:$0xff] }
 0x1c0   :  { %v995_v27 = vld [vmem:[#allocation10 + $0x180] sm:$0xff]  ;;  %v4840_v29 = vpack.c.bf16 %v998_v23, %v982_v22  ;;  %v1156_v22 = vld [vmem:[#allocation10 + $0x688] sm:$0xff]  ;;  %v1142_v23 = vld [vmem:[#allocation10 + $0x618] sm:$0xff] }
 0x1c1   :  { %v4714_v36 = vpack.c.bf16 %v995_v27, %v979_v26  ;;  %v4858_v26 = vpack.c.bf16 %v1125_v20, %v1109_v19  ;;  %v1139_v27 = vld [vmem:[#allocation10 + $0x600] sm:$0xff]  ;;  %v1269_v20 = vld [vmem:[#allocation10 + $0xa10] sm:$0xff] }
 0x1c2   :  { %4567 = vmatpush1.bf16.msra.mxu0 %v4566_v34  ;;  %4695 = vmatpush1.bf16.msra.mxu1 %v4694_v35  ;;  %v1014_v34 = vld [vmem:[#allocation10 + $0x218] sm:$0xff] }
 0x1c3   :  { %4569 = vmatprep.subr.bf16.mxu0 %v4568_v38  ;;  %4697 = vmatprep.subr.bf16.mxu1 %v4696_v39  ;;  %v1030_v35 = vld [vmem:[#allocation10 + $0x298] sm:$0xff]  ;;  %v1011_v38 = vld [vmem:[#allocation10 + $0x200] sm:$0xff] }
 0x1c4   :  { %v1027_v39 = vld [vmem:[#allocation10 + $0x280] sm:$0xff]  ;;  %v4844_v45 = vpack.c.bf16 %v1030_v35, %v1014_v34  ;;  %v1188_v34 = vld [vmem:[#allocation10 + $0x788] sm:$0xff]  ;;  %v1174_v35 = vld [vmem:[#allocation10 + $0x718] sm:$0xff] }
 0x1c5   :  { %v4718_v52 = vpack.c.bf16 %v1027_v39, %v1011_v38  ;;  %v4862_v38 = vpack.c.bf16 %v1157_v32, %v1141_v31  ;;  %v1171_v39 = vld [vmem:[#allocation10 + $0x700] sm:$0xff]  ;;  %v1301_v32 = vld [vmem:[#allocation10 + $0xb10] sm:$0xff] }
 0x1c6   :  { %4571 = vmatpush1.bf16.msra.mxu0 %v4570_v50  ;;  %4699 = vmatpush1.bf16.msra.mxu1 %v4698_v51  ;;  %v1046_v50 = vld [vmem:[#allocation10 + $0x318] sm:$0xff] }
 0x1c7   :  { %4573 = vmatprep.subr.bf16.mxu0 %v4572_v54  ;;  %4701 = vmatprep.subr.bf16.mxu1 %v4700_v55  ;;  %v1062_v51 = vld [vmem:[#allocation10 + $0x398] sm:$0xff]  ;;  %v1059_v54 = vld [vmem:[#allocation10 + $0x380] sm:$0xff]  ;;  %v4720_v55 = vpack.c.bf16 %v1060_v49, %v1044_v48  ;;  %v1189_v48 = vld [vmem:[#allocation10 + $0x790] sm:$0xff] }
 0x1c8   :  { %v4848_v56 = vpack.c.bf16 %v1062_v51, %v1046_v50  ;;  %v1204_v49 = vld [vmem:[#allocation10 + $0x808] sm:$0xff]  ;;  %v1206_v51 = vld [vmem:[#allocation10 + $0x818] sm:$0xff] }
 0x1c9   :  { %v1220_v50 = vld [vmem:[#allocation10 + $0x888] sm:$0xff] }
 0x1ca   :  { %4575 = vmatpush1.bf16.msra.mxu0 %v4574_v62  ;;  %4703 = vmatpush1.bf16.msra.mxu1 %v4702_v63  ;;  %v1094_v62 = vld [vmem:[#allocation10 + $0x498] sm:$0xff]  ;;  %v4722_v63 = vpack.c.bf16 %v1059_v54, %v1043_v53  ;;  %v1203_v54 = vld [vmem:[#allocation10 + $0x800] sm:$0xff] }
 0x1cb   :  { %4577 = vmatprep.subr.bf16.mxu0 %v4576_v3  ;;  %4705 = vmatprep.subr.bf16.mxu1 %v4704_v4  ;;  %v1091_v3 = vld [vmem:[#allocation10 + $0x480] sm:$0xff]  ;;  %v4724_v4 = vpack.c.bf16 %v1092_v60, %v1076_v59  ;;  %v4852_v5 = vpack.c.bf16 %v1094_v62, %v1078_v61  ;;  %v1221_v59 = vld [vmem:[#allocation10 + $0x890] sm:$0xff]  ;;  %v1236_v60 = vld [vmem:[#allocation10 + $0x908] sm:$0xff] }
 0x1cc   :  { %v1252_v61 = vld [vmem:[#allocation10 + $0x988] sm:$0xff]  ;;  %v1238_v62 = vld [vmem:[#allocation10 + $0x918] sm:$0xff] }
 0x1ce   :  { %4579 = vmatpush1.bf16.msra.mxu0 %v4578_v12  ;;  %4707 = vmatpush1.bf16.msra.mxu1 %v4706_v13  ;;  %v1126_v12 = vld [vmem:[#allocation10 + $0x598] sm:$0xff]  ;;  %v4726_v13 = vpack.c.bf16 %v1091_v3, %v1075_v2  ;;  %v4870_v2 = vpack.c.bf16 %v1221_v59, %v1205_v58  ;;  %v1235_v3 = vld [vmem:[#allocation10 + $0x900] sm:$0xff]  ;;  %v1365_v59 = vld [vmem:[#allocation10 + $0xd10] sm:$0xff] }
 0x1cf   :  { %4709 = vmatprep.subr.bf16.mxu0 %v4708_v16  ;;  %4837 = vmatprep.subr.bf16.mxu1 %v4836_v17  ;;  %v1123_v16 = vld [vmem:[#allocation10 + $0x580] sm:$0xff]  ;;  %v4728_v17 = vpack.c.bf16 %v1124_v10, %v1108_v9  ;;  %v4856_v18 = vpack.c.bf16 %v1126_v12, %v1110_v11  ;;  %v1253_v9 = vld [vmem:[#allocation10 + $0x990] sm:$0xff]  ;;  %v1268_v10 = vld [vmem:[#allocation10 + $0xa08] sm:$0xff] }
 0x1d0   :  { %v1284_v11 = vld [vmem:[#allocation10 + $0xa88] sm:$0xff]  ;;  %v1270_v12 = vld [vmem:[#allocation10 + $0xa18] sm:$0xff] }
 0x1d1   :  { %791 = vmatmul.mubr.f32.vlgmr.msra.gmra.mrb[2].mxu0 %v6566_v43  ;;  %933 = vmatmul.mubr.f32.vlgmr.msra.gmra.mrb[2].mxu1 %v6566_v43  ;;  %v4846_v43 = vpack.c.bf16 %v1029_v47, %v1013_v46  ;;  %v1173_v47 = vld [vmem:[#allocation10 + $0x710] sm:$0xff] }
 0x1d2   :  { %4711 = vmatpush1.bf16.msra.mxu0 %v4710_v24  ;;  %4839 = vmatpush1.bf16.msra.mxu1 %v4838_v25  ;;  %v1158_v24 = vld [vmem:[#allocation10 + $0x698] sm:$0xff]  ;;  %v4730_v25 = vpack.c.bf16 %v1123_v16, %v1107_v15  ;;  %v4866_v53 = vpack.c.bf16 %v1189_v48, %v1173_v47  ;;  %v4874_v15 = vpack.c.bf16 %v1253_v9, %v1237_v8  ;;  %v1267_v16 = vld [vmem:[#allocation10 + $0xa00] sm:$0xff]  ;;  %v1333_v48 = vld [vmem:[#allocation10 + $0xc10] sm:$0xff] }
 0x1d3   :  { %4713 = vmatprep.subr.bf16.mxu0 %v4712_v28  ;;  %4841 = vmatprep.subr.bf16.mxu1 %v4840_v29  ;;  %v1155_v28 = vld [vmem:[#allocation10 + $0x680] sm:$0xff]  ;;  %v4732_v29 = vpack.c.bf16 %v1156_v22, %v1140_v21  ;;  %v4860_v30 = vpack.c.bf16 %v1158_v24, %v1142_v23  ;;  %v1285_v21 = vld [vmem:[#allocation10 + $0xa90] sm:$0xff]  ;;  %v1300_v22 = vld [vmem:[#allocation10 + $0xb08] sm:$0xff] }
 0x1d4   :  { %v1316_v23 = vld [vmem:[#allocation10 + $0xb88] sm:$0xff]  ;;  %v1302_v24 = vld [vmem:[#allocation10 + $0xb18] sm:$0xff]  ;;  %v1411_v8 = vld [vmem:[#allocation10 + $0xe80] sm:$0xff] }
 0x1d5   :  { %v1397_v9 = vld [vmem:[#allocation10 + $0xe10] sm:$0xff] }
 0x1d6   :  { %4715 = vmatpush1.bf16.msra.mxu0 %v4714_v36  ;;  %4843 = vmatpush1.bf16.msra.mxu1 %v4842_v37  ;;  %v1190_v36 = vld [vmem:[#allocation10 + $0x798] sm:$0xff]  ;;  %v4734_v37 = vpack.c.bf16 %v1155_v28, %v1139_v27  ;;  %v4878_v27 = vpack.c.bf16 %v1285_v21, %v1269_v20  ;;  %v1299_v28 = vld [vmem:[#allocation10 + $0xb00] sm:$0xff] }
 0x1d7   :  { %4717 = vmatprep.subr.bf16.mxu0 %v4716_v40  ;;  %4845 = vmatprep.subr.bf16.mxu1 %v4844_v45  ;;  %v1187_v40 = vld [vmem:[#allocation10 + $0x780] sm:$0xff]  ;;  %v4736_v45 = vpack.c.bf16 %v1188_v34, %v1172_v33  ;;  %v4864_v46 = vpack.c.bf16 %v1190_v36, %v1174_v35  ;;  %v1317_v33 = vld [vmem:[#allocation10 + $0xb90] sm:$0xff]  ;;  %v1332_v34 = vld [vmem:[#allocation10 + $0xc08] sm:$0xff] }
 0x1d8   :  { %v1348_v35 = vld [vmem:[#allocation10 + $0xc88] sm:$0xff]  ;;  %v1334_v36 = vld [vmem:[#allocation10 + $0xc18] sm:$0xff] }
 0x1da   :  { %4719 = vmatpush1.bf16.msra.mxu0 %v4718_v52  ;;  %4847 = vmatpush1.bf16.msra.mxu1 %v4846_v43  ;;  %v1222_v52 = vld [vmem:[#allocation10 + $0x898] sm:$0xff]  ;;  %v4738_v43 = vpack.c.bf16 %v1187_v40, %v1171_v39  ;;  %v4882_v39 = vpack.c.bf16 %v1317_v33, %v1301_v32  ;;  %v1331_v40 = vld [vmem:[#allocation10 + $0xc00] sm:$0xff] }
 0x1db   :  { %4721 = vmatprep.subr.bf16.mxu0 %v4720_v55  ;;  %4849 = vmatprep.subr.bf16.mxu1 %v4848_v56  ;;  %v1219_v55 = vld [vmem:[#allocation10 + $0x880] sm:$0xff]  ;;  %v4740_v56 = vpack.c.bf16 %v1220_v50, %v1204_v49  ;;  %v4868_v57 = vpack.c.bf16 %v1222_v52, %v1206_v51  ;;  %v1349_v49 = vld [vmem:[#allocation10 + $0xc90] sm:$0xff]  ;;  %v1364_v50 = vld [vmem:[#allocation10 + $0xd08] sm:$0xff] }
 0x1dc   :  { %v1380_v51 = vld [vmem:[#allocation10 + $0xd88] sm:$0xff]  ;;  %v1366_v52 = vld [vmem:[#allocation10 + $0xd18] sm:$0xff] }
 0x1de   :  { %4723 = vmatpush1.bf16.msra.mxu0 %v4722_v63  ;;  %4851 = vmatpush1.bf16.msra.mxu1 %v4850_v0  ;;  %v1254_v63 = vld [vmem:[#allocation10 + $0x998] sm:$0xff]  ;;  %v4742_v0 = vpack.c.bf16 %v1219_v55, %v1203_v54  ;;  %v4886_v54 = vpack.c.bf16 %v1349_v49, %v1333_v48  ;;  %v1363_v55 = vld [vmem:[#allocation10 + $0xd00] sm:$0xff]  ;;  %v1461_v48 = vld [vmem:[#allocation10 + $0x1010] sm:$0xff] }
 0x1df   :  { %4725 = vmatprep.subr.bf16.mxu0 %v4724_v4  ;;  %4853 = vmatprep.subr.bf16.mxu1 %v4852_v5  ;;  %v1251_v4 = vld [vmem:[#allocation10 + $0x980] sm:$0xff]  ;;  %v4744_v5 = vpack.c.bf16 %v1252_v61, %v1236_v60  ;;  %v4872_v6 = vpack.c.bf16 %v1254_v63, %v1238_v62  ;;  %v1381_v60 = vld [vmem:[#allocation10 + $0xd90] sm:$0xff]  ;;  %v1396_v61 = vld [vmem:[#allocation10 + $0xe08] sm:$0xff] }
 0x1e0   :  { %v1412_v62 = vld [vmem:[#allocation10 + $0xe88] sm:$0xff]  ;;  %v1398_v63 = vld [vmem:[#allocation10 + $0xe18] sm:$0xff]  ;;  %v1477_v49 = vld [vmem:[#allocation10 + $0x1090] sm:$0xff] }
 0x1e2   :  { %4727 = vmatpush1.bf16.msra.mxu0 %v4726_v13  ;;  %4855 = vmatpush1.bf16.msra.mxu1 %v4854_v14  ;;  %v1286_v13 = vld [vmem:[#allocation10 + $0xa98] sm:$0xff]  ;;  %v4746_v14 = vpack.c.bf16 %v1251_v4, %v1235_v3  ;;  %v4890_v3 = vpack.c.bf16 %v1381_v60, %v1365_v59  ;;  %v1395_v4 = vld [vmem:[#allocation10 + $0xe00] sm:$0xff]  ;;  %v4902_v60 = vpack.c.bf16 %v1477_v49, %v1461_v48 }
 0x1e3   :  { %4729 = vmatprep.subr.bf16.mxu0 %v4728_v17  ;;  %4857 = vmatprep.subr.bf16.mxu1 %v4856_v18  ;;  %v1283_v17 = vld [vmem:[#allocation10 + $0xa80] sm:$0xff]  ;;  %v4748_v18 = vpack.c.bf16 %v1284_v11, %v1268_v10  ;;  %v4876_v19 = vpack.c.bf16 %v1286_v13, %v1270_v12  ;;  %v1413_v10 = vld [vmem:[#allocation10 + $0xe90] sm:$0xff]  ;;  %v4766_v11 = vpack.c.bf16 %v1411_v8, %v1395_v4  ;;  %v1428_v13 = vld [vmem:[#allocation10 + $0xf08] sm:$0xff] }
 0x1e4   :  { %v4894_v12 = vpack.c.bf16 %v1413_v10, %v1397_v9  ;;  %v1542_v8 = vld [vmem:[#allocation10 + $0x1298] sm:$0xff] }
 0x1e5   :  { %v1638_v48 = vld [vmem:[#allocation10 + $0x1598] sm:$0xff] }
 0x1e6   :  { %4731 = vmatpush1.bf16.msra.mxu0 %v4730_v25  ;;  %4859 = vmatpush1.bf16.msra.mxu1 %v4858_v26  ;;  %v1318_v25 = vld [vmem:[#allocation10 + $0xb98] sm:$0xff]  ;;  %v4750_v26 = vpack.c.bf16 %v1283_v17, %v1267_v16 }
 0x1e7   :  { %4733 = vmatprep.subr.bf16.mxu0 %v4732_v29  ;;  %4861 = vmatprep.subr.bf16.mxu1 %v4860_v30  ;;  %v1315_v29 = vld [vmem:[#allocation10 + $0xb80] sm:$0xff]  ;;  %v4752_v30 = vpack.c.bf16 %v1316_v23, %v1300_v22  ;;  %v4880_v31 = vpack.c.bf16 %v1318_v25, %v1302_v24  ;;  %v1446_v17 = vld [vmem:[#allocation10 + $0xf98] sm:$0xff]  ;;  %v1429_v22 = vld [vmem:[#allocation10 + $0xf10] sm:$0xff] }
 0x1e8   :  { %v1445_v23 = vld [vmem:[#allocation10 + $0xf90] sm:$0xff]  ;;  %v1460_v25 = vld [vmem:[#allocation10 + $0x1008] sm:$0xff] }
 0x1e9   :  { %v4898_v24 = vpack.c.bf16 %v1445_v23, %v1429_v22  ;;  %v1555_v23 = vld [vmem:[#allocation10 + $0x1300] sm:$0xff] }
 0x1ea   :  { %4735 = vmatpush1.bf16.msra.mxu0 %v4734_v37  ;;  %4863 = vmatpush1.bf16.msra.mxu1 %v4862_v38  ;;  %v1350_v37 = vld [vmem:[#allocation10 + $0xc98] sm:$0xff]  ;;  %v4754_v38 = vpack.c.bf16 %v1315_v29, %v1299_v28 }
 0x1eb   :  { %4737 = vmatprep.subr.bf16.mxu0 %v4736_v45  ;;  %4865 = vmatprep.subr.bf16.mxu1 %v4864_v46  ;;  %v1347_v45 = vld [vmem:[#allocation10 + $0xc80] sm:$0xff]  ;;  %v4756_v46 = vpack.c.bf16 %v1348_v35, %v1332_v34  ;;  %v4884_v47 = vpack.c.bf16 %v1350_v37, %v1334_v36  ;;  %v1478_v29 = vld [vmem:[#allocation10 + $0x1098] sm:$0xff] }
 0x1ee   :  { %4739 = vmatpush1.bf16.msra.mxu0 %v4738_v43  ;;  %4867 = vmatpush1.bf16.msra.mxu1 %v4866_v53  ;;  %v1382_v43 = vld [vmem:[#allocation10 + $0xd98] sm:$0xff]  ;;  %v4758_v53 = vpack.c.bf16 %v1347_v45, %v1331_v40 }
 0x1ef   :  { %4741 = vmatprep.subr.bf16.mxu0 %v4740_v56  ;;  %4869 = vmatprep.subr.bf16.mxu1 %v4868_v57  ;;  %v1379_v56 = vld [vmem:[#allocation10 + $0xd80] sm:$0xff]  ;;  %v4760_v57 = vpack.c.bf16 %v1380_v51, %v1364_v50  ;;  %v4888_v58 = vpack.c.bf16 %v1382_v43, %v1366_v52  ;;  %v1492_v52 = vld [vmem:[#allocation10 + $0x1108] sm:$0xff] }
 0x1f2   :  { %4743 = vmatpush1.bf16.msra.mxu0 %v4742_v0  ;;  %4871 = vmatpush1.bf16.msra.mxu1 %v4870_v2  ;;  %v1414_v0 = vld [vmem:[#allocation10 + $0xe98] sm:$0xff]  ;;  %v4762_v2 = vpack.c.bf16 %v1379_v56, %v1363_v55 }
 0x1f3   :  { %4745 = vmatprep.subr.bf16.mxu0 %v4744_v5  ;;  %4873 = vmatprep.subr.bf16.mxu1 %v4872_v6  ;;  %v4764_v5 = vpack.c.bf16 %v1412_v62, %v1396_v61  ;;  %v4892_v6 = vpack.c.bf16 %v1414_v0, %v1398_v63  ;;  %v1494_v55 = vld [vmem:[#allocation10 + $0x1118] sm:$0xff]  ;;  %v1491_v61 = vld [vmem:[#allocation10 + $0x1100] sm:$0xff]  ;;  %v1493_v63 = vld [vmem:[#allocation10 + $0x1110] sm:$0xff] }
 0x1f4   :  { %v1510_v56 = vld [vmem:[#allocation10 + $0x1198] sm:$0xff]  ;;  %v1507_v62 = vld [vmem:[#allocation10 + $0x1180] sm:$0xff]  ;;  %v1509_v0 = vld [vmem:[#allocation10 + $0x1190] sm:$0xff] }
 0x1f5   :  { %v4904_v4 = vpack.c.bf16 %v1510_v56, %v1494_v55  ;;  %v4778_v9 = vpack.c.bf16 %v1507_v62, %v1491_v61  ;;  %v4906_v10 = vpack.c.bf16 %v1509_v0, %v1493_v63  ;;  %v1621_v55 = vld [vmem:[#allocation10 + $0x1510] sm:$0xff]  ;;  %v1670_v61 = vld [vmem:[#allocation10 + $0x1698] sm:$0xff]  ;;  %v1651_v0 = vld [vmem:[#allocation10 + $0x1600] sm:$0xff] }
 0x1f6   :  { %4747 = vmatpush1.bf16.msra.mxu0 %v4746_v14  ;;  %4875 = vmatpush1.bf16.msra.mxu1 %v4874_v15  ;;  %v1444_v14 = vld [vmem:[#allocation10 + $0xf88] sm:$0xff]  ;;  %v1430_v15 = vld [vmem:[#allocation10 + $0xf18] sm:$0xff]  ;;  %v1637_v56 = vld [vmem:[#allocation10 + $0x1590] sm:$0xff] }
 0x1f7   :  { %4749 = vmatprep.subr.bf16.mxu0 %v4748_v18  ;;  %4877 = vmatprep.subr.bf16.mxu1 %v4876_v19  ;;  %v4768_v16 = vpack.c.bf16 %v1444_v14, %v1428_v13  ;;  %v1427_v18 = vld [vmem:[#allocation10 + $0xf00] sm:$0xff]  ;;  %v4896_v20 = vpack.c.bf16 %v1446_v17, %v1430_v15  ;;  %v1525_v15 = vld [vmem:[#allocation10 + $0x1210] sm:$0xff]  ;;  %v1556_v17 = vld [vmem:[#allocation10 + $0x1308] sm:$0xff]  ;;  %v4922_v63 = vpack.c.bf16 %v1637_v56, %v1621_v55 }
 0x1f8   :  { %v1443_v19 = vld [vmem:[#allocation10 + $0xf80] sm:$0xff] }
 0x1f9   :  { %v4770_v21 = vpack.c.bf16 %v1443_v19, %v1427_v18  ;;  %v1572_v18 = vld [vmem:[#allocation10 + $0x1388] sm:$0xff]  ;;  %v1558_v19 = vld [vmem:[#allocation10 + $0x1318] sm:$0xff]  ;;  %v1795_v55 = vld [vmem:[#allocation10 + $0x1a80] sm:$0xff] }
 0x1fa   :  { %4751 = vmatpush1.bf16.msra.mxu0 %v4750_v26  ;;  %4879 = vmatpush1.bf16.msra.mxu1 %v4878_v27  ;;  %v1476_v26 = vld [vmem:[#allocation10 + $0x1088] sm:$0xff]  ;;  %v1462_v27 = vld [vmem:[#allocation10 + $0x1018] sm:$0xff] }
 0x1fb   :  { %4753 = vmatprep.subr.bf16.mxu0 %v4752_v30  ;;  %4881 = vmatprep.subr.bf16.mxu1 %v4880_v31  ;;  %v4772_v28 = vpack.c.bf16 %v1476_v26, %v1460_v25  ;;  %v4900_v30 = vpack.c.bf16 %v1478_v29, %v1462_v27  ;;  %v633_v31 = vld [vmem:[#allocation8] sm:$0xf]  ;;  %v4784_v25 = vpack.c.bf16 %v1572_v18, %v1556_v17  ;;  %v1557_v27 = vld [vmem:[#allocation10 + $0x1310] sm:$0xff]  ;;  %v1588_v29 = vld [vmem:[#allocation10 + $0x1408] sm:$0xff] }
 0x1fc   :  { %v638_v32 = vrot.slane %v633_v31, %v6545_v42  ;;  %v646_v33 = vrot.slane %v633_v31, %v6557_v1  ;;  %v642_v34 = vrot.slane %v633_v31, %v6550_v44  ;;  %v650_v35 = vrot.slane %v633_v31, %v6560_v7  ;;  %v1590_v31 = vld [vmem:[#allocation10 + $0x1418] sm:$0xff]  ;;  %v1685_v18 = vld [vmem:[#allocation10 + $0x1710] sm:$0xff] }
 0x1fe   :  { %4755 = vmatpush1.bf16.msra.mxu0 %v4754_v38  ;;  %4883 = vmatpush1.bf16.msra.mxu1 %v4882_v39  ;;  %v1459_v38 = vld [vmem:[#allocation10 + $0x1000] sm:$0xff] }
 0x1ff   :  { %4757 = vmatprep.subr.bf16.mxu0 %v4756_v46  ;;  %4885 = vmatprep.subr.bf16.mxu1 %v4884_v47  ;;  %v1475_v47 = vld [vmem:[#allocation10 + $0x1080] sm:$0xff] }
 0x200   :  { %v4774_v59 = vpack.c.bf16 %v1475_v47, %v1459_v38  ;;  %v1622_v47 = vld [vmem:[#allocation10 + $0x1518] sm:$0xff] }
 0x202   :  { %4759 = vmatpush1.bf16.msra.mxu0 %v4758_v53  ;;  %4887 = vmatpush1.bf16.msra.mxu1 %v4886_v54  ;;  %v1508_v54 = vld [vmem:[#allocation10 + $0x1188] sm:$0xff] }
 0x203   :  { %4761 = vmatprep.subr.bf16.mxu0 %v4760_v57  ;;  %4889 = vmatprep.subr.bf16.mxu1 %v4888_v58 }
 0x206   :  { %4763 = vmatpush1.bf16.msra.mxu0 %v4762_v2  ;;  %4891 = vmatpush1.bf16.msra.mxu1 %v4890_v3  ;;  %v1524_v2 = vld [vmem:[#allocation10 + $0x1208] sm:$0xff]  ;;  %v4776_v3 = vpack.c.bf16 %v1508_v54, %v1492_v52  ;;  %v1635_v52 = vld [vmem:[#allocation10 + $0x1580] sm:$0xff]  ;;  %v4920_v54 = vpack.c.bf16 %v1638_v48, %v1622_v47  ;;  %v1765_v47 = vld [vmem:[#allocation10 + $0x1990] sm:$0xff] }
 0x207   :  { %4765 = vmatprep.subr.bf16.mxu0 %v4764_v5  ;;  %4893 = vmatprep.subr.bf16.mxu1 %v4892_v6  ;;  %v1540_v5 = vld [vmem:[#allocation10 + $0x1288] sm:$0xff]  ;;  %v1526_v6 = vld [vmem:[#allocation10 + $0x1218] sm:$0xff] }
 0x208   :  { %v4780_v13 = vpack.c.bf16 %v1540_v5, %v1524_v2  ;;  %v4908_v14 = vpack.c.bf16 %v1542_v8, %v1526_v6  ;;  %v1667_v2 = vld [vmem:[#allocation10 + $0x1680] sm:$0xff]  ;;  %v1653_v5 = vld [vmem:[#allocation10 + $0x1610] sm:$0xff]  ;;  %v1684_v8 = vld [vmem:[#allocation10 + $0x1708] sm:$0xff] }
 0x209   :  { %v1669_v6 = vld [vmem:[#allocation10 + $0x1690] sm:$0xff]  ;;  %v1780_v48 = vld [vmem:[#allocation10 + $0x1a08] sm:$0xff] }
 0x20a   :  { %4767 = vmatpush1.bf16.msra.mxu0 %v4766_v11  ;;  %4895 = vmatpush1.bf16.msra.mxu1 %v4894_v12  ;;  %v1523_v11 = vld [vmem:[#allocation10 + $0x1200] sm:$0xff] }
 0x20b   :  { %4769 = vmatprep.subr.bf16.mxu0 %v4768_v16  ;;  %4897 = vmatprep.subr.bf16.mxu1 %v4896_v20  ;;  %v1539_v12 = vld [vmem:[#allocation10 + $0x1280] sm:$0xff]  ;;  %v1541_v16 = vld [vmem:[#allocation10 + $0x1290] sm:$0xff]  ;;  %v1574_v20 = vld [vmem:[#allocation10 + $0x1398] sm:$0xff] }
 0x20c   :  { %v4910_v22 = vpack.c.bf16 %v1541_v16, %v1525_v15  ;;  %v4912_v26 = vpack.c.bf16 %v1574_v20, %v1558_v19  ;;  %v1699_v15 = vld [vmem:[#allocation10 + $0x1780] sm:$0xff]  ;;  %v1701_v19 = vld [vmem:[#allocation10 + $0x1790] sm:$0xff]  ;;  %v1716_v20 = vld [vmem:[#allocation10 + $0x1808] sm:$0xff] }
 0x20e   :  { %4771 = vmatpush1.bf16.msra.mxu0 %v4770_v21  ;;  %4899 = vmatpush1.bf16.msra.mxu1 %v4898_v24  ;;  %v4782_v21 = vpack.c.bf16 %v1539_v12, %v1523_v11  ;;  %v1571_v24 = vld [vmem:[#allocation10 + $0x1380] sm:$0xff]  ;;  %v1702_v11 = vld [vmem:[#allocation10 + $0x1798] sm:$0xff]  ;;  %v4798_v12 = vpack.c.bf16 %v1667_v2, %v1651_v0 }
 0x20f   :  { %4773 = vmatprep.subr.bf16.mxu0 %v4772_v28  ;;  %4901 = vmatprep.subr.bf16.mxu1 %v4900_v30  ;;  %v1573_v28 = vld [vmem:[#allocation10 + $0x1390] sm:$0xff]  ;;  %v1604_v30 = vld [vmem:[#allocation10 + $0x1488] sm:$0xff]  ;;  %v1830_v0 = vld [vmem:[#allocation10 + $0x1b98] sm:$0xff] }
 0x2a4   :  { %v792_v36 = vpop.f32.mrb[2].mxu0  ;;  %v934_v37 = vpop.f32.mrb[2].mxu1 }
 0x2a5   :  { %v5988_v39 = vadd.f32 %v792_v36, %v638_v32  ;;  %v5990_v40 = vadd.f32 %v934_v37, %v646_v33  ;;  %v794_v45 = vpop.f32.mrb[3].mxu0  ;;  %v936_v46 = vpop.f32.mrb[3].mxu1  ;;  %v1606_v32 = vld [vmem:[#allocation10 + $0x1498] sm:$0xff]  ;;  %v4786_v33 = vpack.c.bf16 %v1571_v24, %v1555_v23  ;;  %v1603_v36 = vld [vmem:[#allocation10 + $0x1480] sm:$0xff]  ;;  %v4788_v37 = vpack.c.bf16 %v1604_v30, %v1588_v29  ;;  %v1717_v30 = vld [vmem:[#allocation10 + $0x1810] sm:$0xff] }
 0x2a6   :  { %v5989_v50 = vadd.f32 %v794_v45, %v642_v34  ;;  %v5991_v51 = vadd.f32 %v936_v46, %v650_v35  ;;  %v4914_v34 = vpack.c.bf16 %v1573_v28, %v1557_v27  ;;  %v1587_v35 = vld [vmem:[#allocation10 + $0x1400] sm:$0xff]  ;;  %v4916_v38 = vpack.c.bf16 %v1606_v32, %v1590_v31  ;;  %v1620_v45 = vld [vmem:[#allocation10 + $0x1508] sm:$0xff]  ;;  %v1734_v23 = vld [vmem:[#allocation10 + $0x1898] sm:$0xff] }
 0x2a7   :  { %v939_v43 = vmax.f32 %v5988_v39, 0.0  ;;  %v6575_v53 = vmax.f32 %v5990_v40, 0.0  ;;  %v1589_v39 = vld [vmem:[#allocation10 + $0x1410] sm:$0xff]  ;;  %v1636_v46 = vld [vmem:[#allocation10 + $0x1588] sm:$0xff]  ;;  %v4790_v49 = vpack.c.bf16 %v1603_v36, %v1587_v35  ;;  %v1731_v27 = vld [vmem:[#allocation10 + $0x1880] sm:$0xff] }
 0x2a8   :  { %v6577_v57 = vmax.f32 %v5989_v50, 0.0  ;;  %v942_v58 = vmax.f32 %v5991_v51, 0.0  ;;  %v1605_v40 = vld [vmem:[#allocation10 + $0x1490] sm:$0xff]  ;;  %v1619_v51 = vld [vmem:[#allocation10 + $0x1500] sm:$0xff]  ;;  %v1748_v32 = vld [vmem:[#allocation10 + $0x1908] sm:$0xff] }
 0x2a9   :  { %943 = vst [vmem:[#allocation17] sm:$0xff] %v939_v43  ;;  %945 = vst [vmem:[#allocation17 + $0x10] sm:$0xff] %v6575_v53  ;;  %v4918_v50 = vpack.c.bf16 %v1605_v40, %v1589_v39  ;;  %v4794_v62 = vpack.c.bf16 %v1635_v52, %v1619_v51  ;;  %v1733_v31 = vld [vmem:[#allocation10 + $0x1890] sm:$0xff]  ;;  %v1766_v35 = vld [vmem:[#allocation10 + $0x1998] sm:$0xff] }
 0x2aa   :  { %944 = vst [vmem:[#allocation17 + $0x8] sm:$0xff] %v6577_v57  ;;  %946 = vst [vmem:[#allocation17 + $0x18] sm:$0xff] %v942_v58  ;;  %2119 = vmatprep.mubr.f32.mxu0 %v6577_v57  ;;  %2261 = vmatprep.mubr.f32.mxu1 %v6577_v57  ;;  %v1763_v39 = vld [vmem:[#allocation10 + $0x1980] sm:$0xff]  ;;  %v1798_v51 = vld [vmem:[#allocation10 + $0x1a98] sm:$0xff] }
 0x2ab   :  { %2120 = vmatmul.mubr.f32.vlgmr.msra.gmra.mrb[4].mxu0 %v939_v43  ;;  %2262 = vmatmul.mubr.f32.vlgmr.msra.gmra.mrb[4].mxu1 %v939_v43  ;;  %v4792_v43 = vpack.c.bf16 %v1636_v46, %v1620_v45  ;;  %v1749_v46 = vld [vmem:[#allocation10 + $0x1910] sm:$0xff] }
 0x2ac   :  { %4775 = vmatpush1.bf16.msra.mxu0 %v4774_v59  ;;  %4903 = vmatpush1.bf16.msra.mxu1 %v4902_v60  ;;  %v1668_v59 = vld [vmem:[#allocation10 + $0x1688] sm:$0xff]  ;;  %v1654_v60 = vld [vmem:[#allocation10 + $0x1618] sm:$0xff] }
 0x2ad   :  { %2190 = vmatprep.mubr.f32.mxu0 %v942_v58  ;;  %2332 = vmatprep.mubr.f32.mxu1 %v942_v58  ;;  %v1652_v58 = vld [vmem:[#allocation10 + $0x1608] sm:$0xff] }
 0x2ae   :  { %4777 = vmatprep.subr.bf16.mxu0 %v4776_v3  ;;  %4905 = vmatprep.subr.bf16.mxu1 %v4904_v4  ;;  %v4796_v3 = vpack.c.bf16 %v1668_v59, %v1652_v58  ;;  %v4924_v4 = vpack.c.bf16 %v1670_v61, %v1654_v60  ;;  %v1781_v59 = vld [vmem:[#allocation10 + $0x1a10] sm:$0xff]  ;;  %v1812_v61 = vld [vmem:[#allocation10 + $0x1b08] sm:$0xff] }
 0x2af   :  { %v1797_v60 = vld [vmem:[#allocation10 + $0x1a90] sm:$0xff] }
 0x2b0   :  { %4779 = vmatpush1.bf16.msra.mxu0 %v4778_v9  ;;  %4907 = vmatpush1.bf16.msra.mxu1 %v4906_v10  ;;  %v1700_v9 = vld [vmem:[#allocation10 + $0x1788] sm:$0xff]  ;;  %v1686_v10 = vld [vmem:[#allocation10 + $0x1718] sm:$0xff] }
 0x2b1   :  { %4781 = vmatprep.subr.bf16.mxu0 %v4780_v13  ;;  %4909 = vmatprep.subr.bf16.mxu1 %v4908_v14  ;;  %v4926_v13 = vpack.c.bf16 %v1669_v6, %v1653_v5  ;;  %v1683_v14 = vld [vmem:[#allocation10 + $0x1700] sm:$0xff]  ;;  %v4800_v16 = vpack.c.bf16 %v1700_v9, %v1684_v8  ;;  %v4928_v17 = vpack.c.bf16 %v1702_v11, %v1686_v10  ;;  %v1813_v9 = vld [vmem:[#allocation10 + $0x1b10] sm:$0xff]  ;;  %v1844_v11 = vld [vmem:[#allocation10 + $0x1c08] sm:$0xff] }
 0x2b2   :  { %v4802_v24 = vpack.c.bf16 %v1699_v15, %v1683_v14  ;;  %v1827_v5 = vld [vmem:[#allocation10 + $0x1b80] sm:$0xff]  ;;  %v1829_v10 = vld [vmem:[#allocation10 + $0x1b90] sm:$0xff]  ;;  %v1862_v14 = vld [vmem:[#allocation10 + $0x1c98] sm:$0xff] }
 0x2b4   :  { %4783 = vmatpush1.bf16.msra.mxu0 %v4782_v21  ;;  %4911 = vmatpush1.bf16.msra.mxu1 %v4910_v22  ;;  %v1732_v21 = vld [vmem:[#allocation10 + $0x1888] sm:$0xff]  ;;  %v1718_v22 = vld [vmem:[#allocation10 + $0x1818] sm:$0xff] }
 0x2b5   :  { %4785 = vmatprep.subr.bf16.mxu0 %v4784_v25  ;;  %4913 = vmatprep.subr.bf16.mxu1 %v4912_v26  ;;  %v4930_v25 = vpack.c.bf16 %v1701_v19, %v1685_v18  ;;  %v1715_v26 = vld [vmem:[#allocation10 + $0x1800] sm:$0xff]  ;;  %v4804_v28 = vpack.c.bf16 %v1732_v21, %v1716_v20  ;;  %v4932_v29 = vpack.c.bf16 %v1734_v23, %v1718_v22  ;;  %v1845_v21 = vld [vmem:[#allocation10 + $0x1c10] sm:$0xff]  ;;  %v1876_v23 = vld [vmem:[#allocation10 + $0x1d08] sm:$0xff] }
 0x2b6   :  { %v4806_v36 = vpack.c.bf16 %v1731_v27, %v1715_v26  ;;  %v1859_v18 = vld [vmem:[#allocation10 + $0x1c80] sm:$0xff]  ;;  %v1861_v22 = vld [vmem:[#allocation10 + $0x1c90] sm:$0xff]  ;;  %v1894_v26 = vld [vmem:[#allocation10 + $0x1d98] sm:$0xff] }
 0x2b8   :  { %4787 = vmatpush1.bf16.msra.mxu0 %v4786_v33  ;;  %4915 = vmatpush1.bf16.msra.mxu1 %v4914_v34  ;;  %v1764_v33 = vld [vmem:[#allocation10 + $0x1988] sm:$0xff]  ;;  %v1750_v34 = vld [vmem:[#allocation10 + $0x1918] sm:$0xff] }
 0x2b9   :  { %4789 = vmatprep.subr.bf16.mxu0 %v4788_v37  ;;  %4917 = vmatprep.subr.bf16.mxu1 %v4916_v38  ;;  %v4934_v37 = vpack.c.bf16 %v1733_v31, %v1717_v30  ;;  %v1747_v38 = vld [vmem:[#allocation10 + $0x1900] sm:$0xff]  ;;  %v4808_v40 = vpack.c.bf16 %v1764_v33, %v1748_v32  ;;  %v4936_v45 = vpack.c.bf16 %v1766_v35, %v1750_v34  ;;  %v1877_v33 = vld [vmem:[#allocation10 + $0x1d10] sm:$0xff]  ;;  %v1908_v35 = vld [vmem:[#allocation10 + $0x1e08] sm:$0xff] }
 0x2ba   :  { %v4810_v52 = vpack.c.bf16 %v1763_v39, %v1747_v38  ;;  %v1891_v30 = vld [vmem:[#allocation10 + $0x1d80] sm:$0xff]  ;;  %v1893_v34 = vld [vmem:[#allocation10 + $0x1d90] sm:$0xff]  ;;  %v1926_v38 = vld [vmem:[#allocation10 + $0x1e98] sm:$0xff] }
 0x2bc   :  { %4791 = vmatpush1.bf16.msra.mxu0 %v4790_v49  ;;  %4919 = vmatpush1.bf16.msra.mxu1 %v4918_v50  ;;  %v1796_v49 = vld [vmem:[#allocation10 + $0x1a88] sm:$0xff]  ;;  %v1782_v50 = vld [vmem:[#allocation10 + $0x1a18] sm:$0xff] }
 0x2bd   :  { %4793 = vmatprep.subr.bf16.mxu0 %v4792_v43  ;;  %4921 = vmatprep.subr.bf16.mxu1 %v4920_v54  ;;  %v4938_v43 = vpack.c.bf16 %v1765_v47, %v1749_v46  ;;  %v1779_v54 = vld [vmem:[#allocation10 + $0x1a00] sm:$0xff]  ;;  %v4812_v56 = vpack.c.bf16 %v1796_v49, %v1780_v48  ;;  %v4940_v58 = vpack.c.bf16 %v1798_v51, %v1782_v50  ;;  %v1909_v49 = vld [vmem:[#allocation10 + $0x1e10] sm:$0xff]  ;;  %v1940_v51 = vld [vmem:[#allocation10 + $0x1f08] sm:$0xff] }
 0x2be   :  { %v4814_v2 = vpack.c.bf16 %v1795_v55, %v1779_v54  ;;  %v1923_v46 = vld [vmem:[#allocation10 + $0x1e80] sm:$0xff]  ;;  %v1925_v50 = vld [vmem:[#allocation10 + $0x1e90] sm:$0xff]  ;;  %v1958_v54 = vld [vmem:[#allocation10 + $0x1f98] sm:$0xff] }
 0x2c0   :  { %4795 = vmatpush1.bf16.msra.mxu0 %v4794_v62  ;;  %4923 = vmatpush1.bf16.msra.mxu1 %v4922_v63  ;;  %v1828_v62 = vld [vmem:[#allocation10 + $0x1b88] sm:$0xff]  ;;  %v1814_v63 = vld [vmem:[#allocation10 + $0x1b18] sm:$0xff] }
 0x2c1   :  { %4797 = vmatprep.subr.bf16.mxu0 %v4796_v3  ;;  %4925 = vmatprep.subr.bf16.mxu1 %v4924_v4  ;;  %v4942_v3 = vpack.c.bf16 %v1797_v60, %v1781_v59  ;;  %v1811_v4 = vld [vmem:[#allocation10 + $0x1b00] sm:$0xff]  ;;  %v4816_v6 = vpack.c.bf16 %v1828_v62, %v1812_v61  ;;  %v4944_v8 = vpack.c.bf16 %v1830_v0, %v1814_v63  ;;  %v1941_v62 = vld [vmem:[#allocation10 + $0x1f10] sm:$0xff]  ;;  %v952_v0 = vld [vmem:[#allocation10 + $0x28] sm:$0xff] }
 0x2c2   :  { %v4818_v15 = vpack.c.bf16 %v1827_v5, %v1811_v4  ;;  %v1955_v59 = vld [vmem:[#allocation10 + $0x1f80] sm:$0xff]  ;;  %v1957_v63 = vld [vmem:[#allocation10 + $0x1f90] sm:$0xff]  ;;  %v970_v4 = vld [vmem:[#allocation10 + $0xb8] sm:$0xff] }
 0x2c4   :  { %4799 = vmatpush1.bf16.msra.mxu0 %v4798_v12  ;;  %4927 = vmatpush1.bf16.msra.mxu1 %v4926_v13  ;;  %v1860_v12 = vld [vmem:[#allocation10 + $0x1c88] sm:$0xff]  ;;  %v1846_v13 = vld [vmem:[#allocation10 + $0x1c18] sm:$0xff] }
 0x2c5   :  { %4801 = vmatprep.subr.bf16.mxu0 %v4800_v16  ;;  %4929 = vmatprep.subr.bf16.mxu1 %v4928_v17  ;;  %v4946_v16 = vpack.c.bf16 %v1829_v10, %v1813_v9  ;;  %v1843_v17 = vld [vmem:[#allocation10 + $0x1c00] sm:$0xff]  ;;  %v4820_v19 = vpack.c.bf16 %v1860_v12, %v1844_v11  ;;  %v4948_v20 = vpack.c.bf16 %v1862_v14, %v1846_v13  ;;  %v953_v12 = vld [vmem:[#allocation10 + $0x30] sm:$0xff]  ;;  %v984_v14 = vld [vmem:[#allocation10 + $0x128] sm:$0xff] }
 0x2c6   :  { %v4822_v27 = vpack.c.bf16 %v1859_v18, %v1843_v17  ;;  %v951_v10 = vld [vmem:[#allocation10 + $0x20] sm:$0xff]  ;;  %v969_v13 = vld [vmem:[#allocation10 + $0xb0] sm:$0xff]  ;;  %v1002_v17 = vld [vmem:[#allocation10 + $0x1b8] sm:$0xff] }
 0x2c7   :  { %v967_v11 = vld [vmem:[#allocation10 + $0xa0] sm:$0xff] }
 0x2c8   :  { %4803 = vmatpush1.bf16.msra.mxu0 %v4802_v24  ;;  %4931 = vmatpush1.bf16.msra.mxu1 %v4930_v25  ;;  %v1892_v24 = vld [vmem:[#allocation10 + $0x1d88] sm:$0xff]  ;;  %v1878_v25 = vld [vmem:[#allocation10 + $0x1d18] sm:$0xff]  ;;  %v4966_v18 = vpack.c.bf16 %v967_v11, %v951_v10  ;;  %v1111_v10 = vld [vmem:[#allocation10 + $0x520] sm:$0xff] }
 0x2c9   :  { %4805 = vmatprep.subr.bf16.mxu0 %v4804_v28  ;;  %4933 = vmatprep.subr.bf16.mxu1 %v4932_v29  ;;  %v4950_v28 = vpack.c.bf16 %v1861_v22, %v1845_v21  ;;  %v1875_v29 = vld [vmem:[#allocation10 + $0x1d00] sm:$0xff]  ;;  %v4824_v31 = vpack.c.bf16 %v1892_v24, %v1876_v23  ;;  %v4952_v32 = vpack.c.bf16 %v1894_v26, %v1878_v25  ;;  %v985_v22 = vld [vmem:[#allocation10 + $0x130] sm:$0xff]  ;;  %v1016_v26 = vld [vmem:[#allocation10 + $0x228] sm:$0xff] }
 0x2ca   :  { %v4826_v39 = vpack.c.bf16 %v1891_v30, %v1875_v29  ;;  %v999_v21 = vld [vmem:[#allocation10 + $0x1a0] sm:$0xff]  ;;  %v1001_v25 = vld [vmem:[#allocation10 + $0x1b0] sm:$0xff]  ;;  %v1034_v29 = vld [vmem:[#allocation10 + $0x2b8] sm:$0xff] }
 0x2cb   :  { %v1127_v11 = vld [vmem:[#allocation10 + $0x5a0] sm:$0xff] }
 0x2cc   :  { %4807 = vmatpush1.bf16.msra.mxu0 %v4806_v36  ;;  %4935 = vmatpush1.bf16.msra.mxu1 %v4934_v37  ;;  %v1924_v36 = vld [vmem:[#allocation10 + $0x1e88] sm:$0xff]  ;;  %v1910_v37 = vld [vmem:[#allocation10 + $0x1e18] sm:$0xff] }
 0x2cd   :  { %4809 = vmatprep.subr.bf16.mxu0 %v4808_v40  ;;  %4937 = vmatprep.subr.bf16.mxu1 %v4936_v45  ;;  %v4954_v40 = vpack.c.bf16 %v1893_v34, %v1877_v33  ;;  %v1907_v45 = vld [vmem:[#allocation10 + $0x1e00] sm:$0xff]  ;;  %v4828_v47 = vpack.c.bf16 %v1924_v36, %v1908_v35  ;;  %v4956_v48 = vpack.c.bf16 %v1926_v38, %v1910_v37  ;;  %v1017_v35 = vld [vmem:[#allocation10 + $0x230] sm:$0xff]  ;;  %v1048_v38 = vld [vmem:[#allocation10 + $0x328] sm:$0xff] }
 0x2ce   :  { %v4830_v55 = vpack.c.bf16 %v1923_v46, %v1907_v45  ;;  %v1015_v33 = vld [vmem:[#allocation10 + $0x220] sm:$0xff]  ;;  %v1033_v37 = vld [vmem:[#allocation10 + $0x2b0] sm:$0xff] }
 0x2cf   :  { %v1031_v34 = vld [vmem:[#allocation10 + $0x2a0] sm:$0xff]  ;;  %v5102_v46 = vpack.c.bf16 %v1033_v37, %v1017_v35 }
 0x2d0   :  { %4811 = vmatpush1.bf16.msra.mxu0 %v4810_v52  ;;  %4939 = vmatpush1.bf16.msra.mxu1 %v4938_v43  ;;  %v1956_v52 = vld [vmem:[#allocation10 + $0x1f88] sm:$0xff]  ;;  %v1942_v43 = vld [vmem:[#allocation10 + $0x1f18] sm:$0xff]  ;;  %v4974_v45 = vpack.c.bf16 %v1031_v34, %v1015_v33  ;;  %v1175_v34 = vld [vmem:[#allocation10 + $0x720] sm:$0xff] }
 0x2d1   :  { %4813 = vmatprep.subr.bf16.mxu0 %v4812_v56  ;;  %4941 = vmatprep.subr.bf16.mxu1 %v4940_v58  ;;  %v4958_v56 = vpack.c.bf16 %v1925_v50, %v1909_v49  ;;  %v1939_v58 = vld [vmem:[#allocation10 + $0x1f00] sm:$0xff]  ;;  %v4832_v60 = vpack.c.bf16 %v1956_v52, %v1940_v51  ;;  %v4960_v61 = vpack.c.bf16 %v1958_v54, %v1942_v43  ;;  %v1049_v49 = vld [vmem:[#allocation10 + $0x330] sm:$0xff]  ;;  %v1080_v52 = vld [vmem:[#allocation10 + $0x428] sm:$0xff] }
 0x2d2   :  { %v4834_v5 = vpack.c.bf16 %v1955_v59, %v1939_v58  ;;  %v1065_v51 = vld [vmem:[#allocation10 + $0x3b0] sm:$0xff]  ;;  %v1096_v43 = vld [vmem:[#allocation10 + $0x4a8] sm:$0xff]  ;;  %v1082_v54 = vld [vmem:[#allocation10 + $0x438] sm:$0xff] }
 0x2d3   :  { %v5106_v58 = vpack.c.bf16 %v1065_v51, %v1049_v49  ;;  %v4980_v59 = vpack.c.bf16 %v1096_v43, %v1080_v52  ;;  %v1191_v35 = vld [vmem:[#allocation10 + $0x7a0] sm:$0xff]  ;;  %v1225_v52 = vld [vmem:[#allocation10 + $0x8b0] sm:$0xff]  ;;  %v1240_v43 = vld [vmem:[#allocation10 + $0x928] sm:$0xff] }
 0x2d4   :  { %4815 = vmatpush1.bf16.msra.mxu0 %v4814_v2  ;;  %4943 = vmatpush1.bf16.msra.mxu1 %v4942_v3  ;;  %v968_v2 = vld [vmem:[#allocation10 + $0xa8] sm:$0xff]  ;;  %v954_v3 = vld [vmem:[#allocation10 + $0x38] sm:$0xff]  ;;  %v1223_v49 = vld [vmem:[#allocation10 + $0x8a0] sm:$0xff] }
 0x2d5   :  { %4817 = vmatprep.subr.bf16.mxu0 %v4816_v6  ;;  %4945 = vmatprep.subr.bf16.mxu1 %v4944_v8  ;;  %v4962_v6 = vpack.c.bf16 %v1957_v63, %v1941_v62  ;;  %v4964_v8 = vpack.c.bf16 %v968_v2, %v952_v0  ;;  %v5092_v9 = vpack.c.bf16 %v970_v4, %v954_v3  ;;  %v1081_v62 = vld [vmem:[#allocation10 + $0x430] sm:$0xff]  ;;  %v1112_v2 = vld [vmem:[#allocation10 + $0x528] sm:$0xff]  ;;  %v1114_v4 = vld [vmem:[#allocation10 + $0x538] sm:$0xff] }
 0x2d6   :  { %v1097_v0 = vld [vmem:[#allocation10 + $0x4b0] sm:$0xff]  ;;  %v1128_v3 = vld [vmem:[#allocation10 + $0x5a8] sm:$0xff] }
 0x2d8   :  { %4819 = vmatpush1.bf16.msra.mxu0 %v4818_v15  ;;  %4947 = vmatpush1.bf16.msra.mxu1 %v4946_v16  ;;  %v1000_v15 = vld [vmem:[#allocation10 + $0x1a8] sm:$0xff]  ;;  %v986_v16 = vld [vmem:[#allocation10 + $0x138] sm:$0xff] }
 0x2d9   :  { %4821 = vmatprep.subr.bf16.mxu0 %v4820_v19  ;;  %4949 = vmatprep.subr.bf16.mxu1 %v4948_v20  ;;  %v5094_v19 = vpack.c.bf16 %v969_v13, %v953_v12  ;;  %v983_v20 = vld [vmem:[#allocation10 + $0x120] sm:$0xff]  ;;  %v4968_v23 = vpack.c.bf16 %v1000_v15, %v984_v14  ;;  %v5096_v24 = vpack.c.bf16 %v1002_v17, %v986_v16  ;;  %v1113_v12 = vld [vmem:[#allocation10 + $0x530] sm:$0xff]  ;;  %v1144_v15 = vld [vmem:[#allocation10 + $0x628] sm:$0xff] }
 0x2da   :  { %v4970_v30 = vpack.c.bf16 %v999_v21, %v983_v20  ;;  %v1129_v14 = vld [vmem:[#allocation10 + $0x5b0] sm:$0xff]  ;;  %v1160_v16 = vld [vmem:[#allocation10 + $0x6a8] sm:$0xff]  ;;  %v1146_v17 = vld [vmem:[#allocation10 + $0x638] sm:$0xff] }
 0x2db   :  { %v5114_v20 = vpack.c.bf16 %v1129_v14, %v1113_v12  ;;  %v4988_v21 = vpack.c.bf16 %v1160_v16, %v1144_v15  ;;  %v1287_v12 = vld [vmem:[#allocation10 + $0xaa0] sm:$0xff]  ;;  %v1289_v15 = vld [vmem:[#allocation10 + $0xab0] sm:$0xff]  ;;  %v1304_v16 = vld [vmem:[#allocation10 + $0xb28] sm:$0xff] }
 0x2dc   :  { %4823 = vmatpush1.bf16.msra.mxu0 %v4822_v27  ;;  %4951 = vmatpush1.bf16.msra.mxu1 %v4950_v28  ;;  %v1032_v27 = vld [vmem:[#allocation10 + $0x2a8] sm:$0xff]  ;;  %v1018_v28 = vld [vmem:[#allocation10 + $0x238] sm:$0xff] }
 0x2dd   :  { %4825 = vmatprep.subr.bf16.mxu0 %v4824_v31  ;;  %4953 = vmatprep.subr.bf16.mxu1 %v4952_v32  ;;  %v5098_v31 = vpack.c.bf16 %v1001_v25, %v985_v22  ;;  %v4972_v32 = vpack.c.bf16 %v1032_v27, %v1016_v26  ;;  %v5100_v36 = vpack.c.bf16 %v1034_v29, %v1018_v28  ;;  %v1143_v22 = vld [vmem:[#allocation10 + $0x620] sm:$0xff]  ;;  %v1161_v26 = vld [vmem:[#allocation10 + $0x6b0] sm:$0xff]  ;;  %v1176_v27 = vld [vmem:[#allocation10 + $0x728] sm:$0xff] }
 0x2de   :  { %v1192_v28 = vld [vmem:[#allocation10 + $0x7a8] sm:$0xff]  ;;  %v1178_v29 = vld [vmem:[#allocation10 + $0x738] sm:$0xff] }
 0x2df   :  { %v4992_v33 = vpack.c.bf16 %v1192_v28, %v1176_v27  ;;  %v1321_v27 = vld [vmem:[#allocation10 + $0xbb0] sm:$0xff]  ;;  %v1336_v28 = vld [vmem:[#allocation10 + $0xc28] sm:$0xff] }
 0x2e0   :  { %4827 = vmatpush1.bf16.msra.mxu0 %v4826_v39  ;;  %4955 = vmatpush1.bf16.msra.mxu1 %v4954_v40  ;;  %v1050_v39 = vld [vmem:[#allocation10 + $0x338] sm:$0xff] }
 0x2e1   :  { %4829 = vmatprep.subr.bf16.mxu0 %v4828_v47  ;;  %4957 = vmatprep.subr.bf16.mxu1 %v4956_v48  ;;  %v1066_v40 = vld [vmem:[#allocation10 + $0x3b8] sm:$0xff]  ;;  %v1063_v48 = vld [vmem:[#allocation10 + $0x3a0] sm:$0xff] }
 0x2e2   :  { %v5104_v50 = vpack.c.bf16 %v1066_v40, %v1050_v39  ;;  %v1224_v39 = vld [vmem:[#allocation10 + $0x8a8] sm:$0xff]  ;;  %v1210_v40 = vld [vmem:[#allocation10 + $0x838] sm:$0xff] }
 0x2e4   :  { %4831 = vmatpush1.bf16.msra.mxu0 %v4830_v55  ;;  %4959 = vmatpush1.bf16.msra.mxu1 %v4958_v56  ;;  %v1098_v55 = vld [vmem:[#allocation10 + $0x4b8] sm:$0xff] }
 0x2e5   :  { %4833 = vmatprep.subr.bf16.mxu0 %v4832_v60  ;;  %4961 = vmatprep.subr.bf16.mxu1 %v4960_v61  ;;  %v1079_v60 = vld [vmem:[#allocation10 + $0x420] sm:$0xff]  ;;  %v5108_v63 = vpack.c.bf16 %v1098_v55, %v1082_v54  ;;  %v1256_v54 = vld [vmem:[#allocation10 + $0x9a8] sm:$0xff]  ;;  %v1242_v55 = vld [vmem:[#allocation10 + $0x938] sm:$0xff] }
 0x2e6   :  { %v1095_v61 = vld [vmem:[#allocation10 + $0x4a0] sm:$0xff] }
 0x2e8   :  { %4835 = vmatpush1.bf16.msra.mxu0 %v4834_v5  ;;  %4963 = vmatpush1.bf16.msra.mxu1 %v4962_v6  ;;  %v1130_v5 = vld [vmem:[#allocation10 + $0x5b8] sm:$0xff]  ;;  %v4982_v6 = vpack.c.bf16 %v1095_v61, %v1079_v60  ;;  %v5000_v60 = vpack.c.bf16 %v1256_v54, %v1240_v43  ;;  %v1239_v61 = vld [vmem:[#allocation10 + $0x920] sm:$0xff]  ;;  %v1385_v43 = vld [vmem:[#allocation10 + $0xdb0] sm:$0xff] }
 0x2e9   :  { %4965 = vmatprep.subr.bf16.mxu0 %v4964_v8  ;;  %5093 = vmatprep.subr.bf16.mxu1 %v5092_v9  ;;  %v5110_v8 = vpack.c.bf16 %v1097_v0, %v1081_v62  ;;  %v4984_v9 = vpack.c.bf16 %v1128_v3, %v1112_v2  ;;  %v5112_v13 = vpack.c.bf16 %v1130_v5, %v1114_v4  ;;  %v1255_v62 = vld [vmem:[#allocation10 + $0x9a0] sm:$0xff]  ;;  %v1257_v2 = vld [vmem:[#allocation10 + $0x9b0] sm:$0xff]  ;;  %v1272_v3 = vld [vmem:[#allocation10 + $0xa28] sm:$0xff] }
 0x2ea   :  { %v1288_v4 = vld [vmem:[#allocation10 + $0xaa8] sm:$0xff]  ;;  %v1274_v5 = vld [vmem:[#allocation10 + $0xa38] sm:$0xff] }
 0x2eb   :  { %2191 = vmatmul.mubr.f32.vlgmr.msra.gmra.mrb[4].mxu0 %v6575_v53  ;;  %2333 = vmatmul.mubr.f32.vlgmr.msra.gmra.mrb[4].mxu1 %v6575_v53  ;;  %v1064_v53 = vld [vmem:[#allocation10 + $0x3a8] sm:$0xff] }
 0x2ec   :  { %4967 = vmatpush1.bf16.msra.mxu0 %v4966_v18  ;;  %2403 = vmatprep.mubr.f32.mxu0 %v6577_v57  ;;  %v4976_v47 = vpack.c.bf16 %v1064_v53, %v1048_v38  ;;  %v1162_v18 = vld [vmem:[#allocation10 + $0x6b8] sm:$0xff]  ;;  %v1193_v38 = vld [vmem:[#allocation10 + $0x7b0] sm:$0xff]  ;;  %v1208_v53 = vld [vmem:[#allocation10 + $0x828] sm:$0xff] }
 0x2ed   :  { %5095 = vmatpush1.bf16.msra.mxu1 %v5094_v19  ;;  %2545 = vmatprep.mubr.f32.mxu1 %v6577_v57  ;;  %v1047_v57 = vld [vmem:[#allocation10 + $0x320] sm:$0xff]  ;;  %v4986_v19 = vpack.c.bf16 %v1127_v11, %v1111_v10  ;;  %v5116_v25 = vpack.c.bf16 %v1162_v18, %v1146_v17  ;;  %v5004_v10 = vpack.c.bf16 %v1288_v4, %v1272_v3  ;;  %v1320_v17 = vld [vmem:[#allocation10 + $0xba8] sm:$0xff]  ;;  %v1306_v18 = vld [vmem:[#allocation10 + $0xb38] sm:$0xff] }
 0x2ee   :  { %4969 = vmatprep.subr.bf16.mxu0 %v4968_v23  ;;  %5097 = vmatprep.subr.bf16.mxu1 %v5096_v24  ;;  %v4978_v56 = vpack.c.bf16 %v1063_v48, %v1047_v57  ;;  %v1159_v23 = vld [vmem:[#allocation10 + $0x6a0] sm:$0xff]  ;;  %v1145_v24 = vld [vmem:[#allocation10 + $0x630] sm:$0xff]  ;;  %v4996_v57 = vpack.c.bf16 %v1224_v39, %v1208_v53  ;;  %v1368_v39 = vld [vmem:[#allocation10 + $0xd28] sm:$0xff] }
 0x2ef   :  { %v1207_v48 = vld [vmem:[#allocation10 + $0x820] sm:$0xff]  ;;  %v1353_v53 = vld [vmem:[#allocation10 + $0xcb0] sm:$0xff]  ;;  %v1400_v54 = vld [vmem:[#allocation10 + $0xe28] sm:$0xff] }
 0x2f0   :  { %4971 = vmatpush1.bf16.msra.mxu0 %v4970_v30  ;;  %v1194_v30 = vld [vmem:[#allocation10 + $0x7b8] sm:$0xff]  ;;  %v1271_v11 = vld [vmem:[#allocation10 + $0xa20] sm:$0xff]  ;;  %v1417_v3 = vld [vmem:[#allocation10 + $0xeb0] sm:$0xff] }
 0x2f1   :  { %5099 = vmatpush1.bf16.msra.mxu1 %v5098_v31  ;;  %4973 = vmatprep.subr.bf16.mxu0 %v4972_v32  ;;  %v4990_v31 = vpack.c.bf16 %v1159_v23, %v1143_v22  ;;  %v5118_v32 = vpack.c.bf16 %v1161_v26, %v1145_v24  ;;  %v5120_v37 = vpack.c.bf16 %v1194_v30, %v1178_v29  ;;  %v1303_v23 = vld [vmem:[#allocation10 + $0xb20] sm:$0xff]  ;;  %v1352_v29 = vld [vmem:[#allocation10 + $0xca8] sm:$0xff]  ;;  %v1338_v30 = vld [vmem:[#allocation10 + $0xc38] sm:$0xff] }
 0x2f2   :  { %5101 = vmatprep.subr.bf16.mxu1 %v5100_v36  ;;  %v1177_v36 = vld [vmem:[#allocation10 + $0x730] sm:$0xff]  ;;  %v5008_v22 = vpack.c.bf16 %v1320_v17, %v1304_v16  ;;  %v1319_v24 = vld [vmem:[#allocation10 + $0xba0] sm:$0xff]  ;;  %v1432_v4 = vld [vmem:[#allocation10 + $0xf28] sm:$0xff] }
 0x2f3   :  { %v1449_v16 = vld [vmem:[#allocation10 + $0xfb0] sm:$0xff]  ;;  %v1464_v17 = vld [vmem:[#allocation10 + $0x1028] sm:$0xff] }
 0x2f4   :  { %4975 = vmatpush1.bf16.msra.mxu0 %v4974_v45  ;;  %v1226_v45 = vld [vmem:[#allocation10 + $0x8b8] sm:$0xff] }
 0x2f5   :  { %5103 = vmatpush1.bf16.msra.mxu1 %v5102_v46  ;;  %4977 = vmatprep.subr.bf16.mxu0 %v4976_v47  ;;  %v4994_v46 = vpack.c.bf16 %v1191_v35, %v1175_v34  ;;  %v5122_v47 = vpack.c.bf16 %v1193_v38, %v1177_v36  ;;  %v5124_v51 = vpack.c.bf16 %v1226_v45, %v1210_v40  ;;  %v1335_v35 = vld [vmem:[#allocation10 + $0xc20] sm:$0xff]  ;;  %v1384_v40 = vld [vmem:[#allocation10 + $0xda8] sm:$0xff]  ;;  %v1370_v45 = vld [vmem:[#allocation10 + $0xd38] sm:$0xff] }
 0x2f6   :  { %5105 = vmatprep.subr.bf16.mxu1 %v5104_v50  ;;  %v1209_v50 = vld [vmem:[#allocation10 + $0x830] sm:$0xff]  ;;  %v5012_v34 = vpack.c.bf16 %v1352_v29, %v1336_v28  ;;  %v1351_v36 = vld [vmem:[#allocation10 + $0xca0] sm:$0xff]  ;;  %v1496_v29 = vld [vmem:[#allocation10 + $0x1128] sm:$0xff] }
 0x2f7   :  { %v1481_v28 = vld [vmem:[#allocation10 + $0x10b0] sm:$0xff] }
 0x2f8   :  { %4979 = vmatpush1.bf16.msra.mxu0 %v4978_v56  ;;  %v1258_v56 = vld [vmem:[#allocation10 + $0x9b8] sm:$0xff] }
 0x2f9   :  { %5107 = vmatpush1.bf16.msra.mxu1 %v5106_v58  ;;  %4981 = vmatprep.subr.bf16.mxu0 %v4980_v59  ;;  %v4998_v58 = vpack.c.bf16 %v1223_v49, %v1207_v48  ;;  %v5126_v59 = vpack.c.bf16 %v1225_v52, %v1209_v50  ;;  %v5128_v0 = vpack.c.bf16 %v1258_v56, %v1242_v55  ;;  %v1367_v49 = vld [vmem:[#allocation10 + $0xd20] sm:$0xff]  ;;  %v1416_v55 = vld [vmem:[#allocation10 + $0xea8] sm:$0xff]  ;;  %v1402_v56 = vld [vmem:[#allocation10 + $0xe38] sm:$0xff] }
 0x2fa   :  { %5109 = vmatprep.subr.bf16.mxu1 %v5108_v63  ;;  %v1241_v63 = vld [vmem:[#allocation10 + $0x930] sm:$0xff]  ;;  %v5016_v48 = vpack.c.bf16 %v1384_v40, %v1368_v39  ;;  %v1383_v50 = vld [vmem:[#allocation10 + $0xda0] sm:$0xff]  ;;  %v1528_v39 = vld [vmem:[#allocation10 + $0x1228] sm:$0xff] }
 0x2fb   :  { %v1544_v40 = vld [vmem:[#allocation10 + $0x12a8] sm:$0xff] }
 0x2fc   :  { %4983 = vmatpush1.bf16.msra.mxu0 %v4982_v6  ;;  %v1290_v6 = vld [vmem:[#allocation10 + $0xab8] sm:$0xff] }
 0x2fd   :  { %5111 = vmatpush1.bf16.msra.mxu1 %v5110_v8  ;;  %4985 = vmatprep.subr.bf16.mxu0 %v4984_v9  ;;  %v5002_v8 = vpack.c.bf16 %v1255_v62, %v1239_v61  ;;  %v5130_v9 = vpack.c.bf16 %v1257_v2, %v1241_v63  ;;  %v5132_v14 = vpack.c.bf16 %v1290_v6, %v1274_v5  ;;  %v1399_v62 = vld [vmem:[#allocation10 + $0xe20] sm:$0xff]  ;;  %v1448_v5 = vld [vmem:[#allocation10 + $0xfa8] sm:$0xff]  ;;  %v1434_v6 = vld [vmem:[#allocation10 + $0xf38] sm:$0xff] }
 0x2fe   :  { %5113 = vmatprep.subr.bf16.mxu1 %v5112_v13  ;;  %v1273_v13 = vld [vmem:[#allocation10 + $0xa30] sm:$0xff]  ;;  %v5020_v61 = vpack.c.bf16 %v1416_v55, %v1400_v54  ;;  %v1415_v63 = vld [vmem:[#allocation10 + $0xea0] sm:$0xff] }
 0x2ff   :  { %v1529_v54 = vld [vmem:[#allocation10 + $0x1230] sm:$0xff] }
 0x300   :  { %4987 = vmatpush1.bf16.msra.mxu0 %v4986_v19  ;;  %v1322_v19 = vld [vmem:[#allocation10 + $0xbb8] sm:$0xff] }
 0x301   :  { %5115 = vmatpush1.bf16.msra.mxu1 %v5114_v20  ;;  %4989 = vmatprep.subr.bf16.mxu0 %v4988_v21  ;;  %v5006_v20 = vpack.c.bf16 %v1287_v12, %v1271_v11  ;;  %v5134_v21 = vpack.c.bf16 %v1289_v15, %v1273_v13  ;;  %v5136_v26 = vpack.c.bf16 %v1322_v19, %v1306_v18  ;;  %v1431_v12 = vld [vmem:[#allocation10 + $0xf20] sm:$0xff]  ;;  %v1480_v18 = vld [vmem:[#allocation10 + $0x10a8] sm:$0xff]  ;;  %v1466_v19 = vld [vmem:[#allocation10 + $0x1038] sm:$0xff] }
 0x302   :  { %5117 = vmatprep.subr.bf16.mxu1 %v5116_v25  ;;  %v1305_v25 = vld [vmem:[#allocation10 + $0xb30] sm:$0xff]  ;;  %v5024_v11 = vpack.c.bf16 %v1448_v5, %v1432_v4  ;;  %v1447_v13 = vld [vmem:[#allocation10 + $0xfa0] sm:$0xff] }
 0x303   :  { %v1561_v4 = vld [vmem:[#allocation10 + $0x1330] sm:$0xff] }
 0x304   :  { %4991 = vmatpush1.bf16.msra.mxu0 %v4990_v31  ;;  %v1354_v31 = vld [vmem:[#allocation10 + $0xcb8] sm:$0xff] }
 0x305   :  { %5119 = vmatpush1.bf16.msra.mxu1 %v5118_v32  ;;  %4993 = vmatprep.subr.bf16.mxu0 %v4992_v33  ;;  %v5010_v32 = vpack.c.bf16 %v1319_v24, %v1303_v23  ;;  %v5138_v33 = vpack.c.bf16 %v1321_v27, %v1305_v25  ;;  %v5140_v38 = vpack.c.bf16 %v1354_v31, %v1338_v30  ;;  %v1463_v24 = vld [vmem:[#allocation10 + $0x1020] sm:$0xff]  ;;  %v1465_v27 = vld [vmem:[#allocation10 + $0x1030] sm:$0xff]  ;;  %v1512_v30 = vld [vmem:[#allocation10 + $0x11a8] sm:$0xff] }
 0x306   :  { %5121 = vmatprep.subr.bf16.mxu1 %v5120_v37  ;;  %v1337_v37 = vld [vmem:[#allocation10 + $0xc30] sm:$0xff]  ;;  %v5028_v23 = vpack.c.bf16 %v1480_v18, %v1464_v17  ;;  %v1479_v25 = vld [vmem:[#allocation10 + $0x10a0] sm:$0xff] }
 0x307   :  { %v5030_v31 = vpack.c.bf16 %v1479_v25, %v1463_v24  ;;  %v1593_v17 = vld [vmem:[#allocation10 + $0x1430] sm:$0xff] }
 0x308   :  { %4995 = vmatpush1.bf16.msra.mxu0 %v4994_v46  ;;  %v1386_v46 = vld [vmem:[#allocation10 + $0xdb8] sm:$0xff] }
 0x309   :  { %5123 = vmatpush1.bf16.msra.mxu1 %v5122_v47  ;;  %4997 = vmatprep.subr.bf16.mxu0 %v4996_v57  ;;  %v5014_v47 = vpack.c.bf16 %v1351_v36, %v1335_v35  ;;  %v5142_v57 = vpack.c.bf16 %v1353_v53, %v1337_v37  ;;  %v5144_v52 = vpack.c.bf16 %v1386_v46, %v1370_v45  ;;  %v1495_v35 = vld [vmem:[#allocation10 + $0x1120] sm:$0xff]  ;;  %v1497_v37 = vld [vmem:[#allocation10 + $0x1130] sm:$0xff] }
 0x30a   :  { %5125 = vmatprep.subr.bf16.mxu1 %v5124_v51  ;;  %v1369_v51 = vld [vmem:[#allocation10 + $0xd30] sm:$0xff]  ;;  %v1511_v36 = vld [vmem:[#allocation10 + $0x11a0] sm:$0xff] }
 0x30b   :  { %v1513_v53 = vld [vmem:[#allocation10 + $0x11b0] sm:$0xff] }
 0x30c   :  { %4999 = vmatpush1.bf16.msra.mxu0 %v4998_v58  ;;  %v1418_v58 = vld [vmem:[#allocation10 + $0xeb8] sm:$0xff] }
 0x30d   :  { %5127 = vmatpush1.bf16.msra.mxu1 %v5126_v59  ;;  %5001 = vmatprep.subr.bf16.mxu0 %v5000_v60  ;;  %v5018_v59 = vpack.c.bf16 %v1383_v50, %v1367_v49  ;;  %v5146_v60 = vpack.c.bf16 %v1385_v43, %v1369_v51  ;;  %v5148_v2 = vpack.c.bf16 %v1418_v58, %v1402_v56  ;;  %v6046_v45 = vld [vmem:[#allocation17] sm:$0xff]  ;;  %v6047_v49 = vld [vmem:[#allocation17 + $0x18] sm:$0xff]  ;;  %v1543_v43 = vld [vmem:[#allocation10 + $0x12a0] sm:$0xff] }
 0x30e   :  { %5129 = vmatprep.subr.bf16.mxu1 %v5128_v0  ;;  %v1401_v0 = vld [vmem:[#allocation10 + $0xe30] sm:$0xff]  ;;  %v5162_v50 = vpack.c.bf16 %v1513_v53, %v1497_v37  ;;  %v5036_v51 = vpack.c.bf16 %v1544_v40, %v1528_v39  ;;  %v1560_v58 = vld [vmem:[#allocation10 + $0x1328] sm:$0xff]  ;;  %v1655_v53 = vld [vmem:[#allocation10 + $0x1620] sm:$0xff] }
 0x30f   :  { %v1545_v56 = vld [vmem:[#allocation10 + $0x12b0] sm:$0xff]  ;;  %v1671_v39 = vld [vmem:[#allocation10 + $0x16a0] sm:$0xff] }
 0x310   :  { %5003 = vmatpush1.bf16.msra.mxu0 %v5002_v8  ;;  %v1450_v8 = vld [vmem:[#allocation10 + $0xfb8] sm:$0xff]  ;;  %v1657_v40 = vld [vmem:[#allocation10 + $0x1630] sm:$0xff] }
 0x311   :  { %5131 = vmatpush1.bf16.msra.mxu1 %v5130_v9  ;;  %5005 = vmatprep.subr.bf16.mxu0 %v5004_v10  ;;  %v5022_v9 = vpack.c.bf16 %v1415_v63, %v1399_v62  ;;  %v5150_v10 = vpack.c.bf16 %v1417_v3, %v1401_v0  ;;  %v5152_v15 = vpack.c.bf16 %v1450_v8, %v1434_v6  ;;  %v1575_v3 = vld [vmem:[#allocation10 + $0x13a0] sm:$0xff]  ;;  %v1577_v6 = vld [vmem:[#allocation10 + $0x13b0] sm:$0xff]  ;;  %v1592_v8 = vld [vmem:[#allocation10 + $0x1428] sm:$0xff] }
 0x312   :  { %5133 = vmatprep.subr.bf16.mxu1 %v5132_v14  ;;  %v1433_v14 = vld [vmem:[#allocation10 + $0xf30] sm:$0xff]  ;;  %v5166_v63 = vpack.c.bf16 %v1545_v56, %v1529_v54  ;;  %v1703_v54 = vld [vmem:[#allocation10 + $0x17a0] sm:$0xff] }
 0x314   :  { %5007 = vmatpush1.bf16.msra.mxu0 %v5006_v20  ;;  %v1482_v20 = vld [vmem:[#allocation10 + $0x10b8] sm:$0xff] }
 0x315   :  { %5135 = vmatpush1.bf16.msra.mxu1 %v5134_v21  ;;  %5009 = vmatprep.subr.bf16.mxu0 %v5008_v22  ;;  %v5026_v21 = vpack.c.bf16 %v1447_v13, %v1431_v12  ;;  %v5154_v22 = vpack.c.bf16 %v1449_v16, %v1433_v14  ;;  %v5170_v13 = vpack.c.bf16 %v1577_v6, %v1561_v4  ;;  %v1607_v16 = vld [vmem:[#allocation10 + $0x14a0] sm:$0xff] }
 0x316   :  { %5137 = vmatprep.subr.bf16.mxu1 %v5136_v26  ;;  %v5156_v26 = vpack.c.bf16 %v1482_v20, %v1466_v19  ;;  %v1609_v19 = vld [vmem:[#allocation10 + $0x14b0] sm:$0xff]  ;;  %v1624_v20 = vld [vmem:[#allocation10 + $0x1528] sm:$0xff]  ;;  %v1735_v4 = vld [vmem:[#allocation10 + $0x18a0] sm:$0xff] }
 0x317   :  { %v5174_v25 = vpack.c.bf16 %v1609_v19, %v1593_v17  ;;  %v1767_v17 = vld [vmem:[#allocation10 + $0x19a0] sm:$0xff] }
 0x318   :  { %5011 = vmatpush1.bf16.msra.mxu0 %v5010_v32  ;;  %v1498_v32 = vld [vmem:[#allocation10 + $0x1138] sm:$0xff] }
 0x319   :  { %5139 = vmatpush1.bf16.msra.mxu1 %v5138_v33  ;;  %5013 = vmatprep.subr.bf16.mxu0 %v5012_v34  ;;  %v1514_v33 = vld [vmem:[#allocation10 + $0x11b8] sm:$0xff]  ;;  %v5158_v34 = vpack.c.bf16 %v1481_v28, %v1465_v27  ;;  %v1623_v27 = vld [vmem:[#allocation10 + $0x1520] sm:$0xff] }
 0x31a   :  { %5141 = vmatprep.subr.bf16.mxu1 %v5140_v38  ;;  %v5032_v38 = vpack.c.bf16 %v1512_v30, %v1496_v29  ;;  %v5160_v46 = vpack.c.bf16 %v1514_v33, %v1498_v32  ;;  %v1639_v28 = vld [vmem:[#allocation10 + $0x15a0] sm:$0xff]  ;;  %v1625_v29 = vld [vmem:[#allocation10 + $0x1530] sm:$0xff]  ;;  %v1656_v32 = vld [vmem:[#allocation10 + $0x1628] sm:$0xff] }
 0x31b   :  { %v1672_v33 = vld [vmem:[#allocation10 + $0x16a8] sm:$0xff] }
 0x31c   :  { %5015 = vmatpush1.bf16.msra.mxu0 %v5014_v47  ;;  %v1530_v47 = vld [vmem:[#allocation10 + $0x1238] sm:$0xff] }
 0x31d   :  { %5143 = vmatpush1.bf16.msra.mxu1 %v5142_v57  ;;  %5017 = vmatprep.subr.bf16.mxu0 %v5016_v48  ;;  %v1546_v57 = vld [vmem:[#allocation10 + $0x12b8] sm:$0xff]  ;;  %v5034_v48 = vpack.c.bf16 %v1511_v36, %v1495_v35  ;;  %v5050_v36 = vpack.c.bf16 %v1639_v28, %v1623_v27  ;;  %v1783_v28 = vld [vmem:[#allocation10 + $0x1a20] sm:$0xff] }
 0x31e   :  { %5145 = vmatprep.subr.bf16.mxu1 %v5144_v52  ;;  %v1527_v52 = vld [vmem:[#allocation10 + $0x1220] sm:$0xff]  ;;  %v5164_v55 = vpack.c.bf16 %v1546_v57, %v1530_v47  ;;  %v1674_v35 = vld [vmem:[#allocation10 + $0x16b8] sm:$0xff]  ;;  %v1688_v47 = vld [vmem:[#allocation10 + $0x1728] sm:$0xff] }
 0x31f   :  { %v5038_v62 = vpack.c.bf16 %v1543_v43, %v1527_v52  ;;  %v1704_v57 = vld [vmem:[#allocation10 + $0x17a8] sm:$0xff]  ;;  %v1687_v43 = vld [vmem:[#allocation10 + $0x1720] sm:$0xff] }
 0x320   :  { %5019 = vmatpush1.bf16.msra.mxu0 %v5018_v59  ;;  %v1576_v59 = vld [vmem:[#allocation10 + $0x13a8] sm:$0xff]  ;;  %v5056_v52 = vpack.c.bf16 %v1704_v57, %v1688_v47  ;;  %v1833_v47 = vld [vmem:[#allocation10 + $0x1bb0] sm:$0xff] }
 0x321   :  { %5147 = vmatpush1.bf16.msra.mxu1 %v5146_v60  ;;  %5021 = vmatprep.subr.bf16.mxu0 %v5020_v61  ;;  %v1562_v60 = vld [vmem:[#allocation10 + $0x1338] sm:$0xff]  ;;  %v5040_v0 = vpack.c.bf16 %v1576_v59, %v1560_v58  ;;  %v1705_v58 = vld [vmem:[#allocation10 + $0x17b0] sm:$0xff]  ;;  %v1720_v59 = vld [vmem:[#allocation10 + $0x1828] sm:$0xff] }
 0x322   :  { %5149 = vmatprep.subr.bf16.mxu1 %v5148_v2  ;;  %v1578_v61 = vld [vmem:[#allocation10 + $0x13b8] sm:$0xff]  ;;  %v1559_v2 = vld [vmem:[#allocation10 + $0x1320] sm:$0xff]  ;;  %v1848_v57 = vld [vmem:[#allocation10 + $0x1c28] sm:$0xff] }
 0x323   :  { %v5168_v5 = vpack.c.bf16 %v1578_v61, %v1562_v60  ;;  %v5042_v12 = vpack.c.bf16 %v1575_v3, %v1559_v2  ;;  %v1736_v60 = vld [vmem:[#allocation10 + $0x18a8] sm:$0xff]  ;;  %v1722_v61 = vld [vmem:[#allocation10 + $0x1838] sm:$0xff]  ;;  %v1719_v3 = vld [vmem:[#allocation10 + $0x1820] sm:$0xff] }
 0x324   :  { %5023 = vmatpush1.bf16.msra.mxu0 %v5022_v9  ;;  %v1608_v9 = vld [vmem:[#allocation10 + $0x14a8] sm:$0xff]  ;;  %v5060_v2 = vpack.c.bf16 %v1736_v60, %v1720_v59  ;;  %v1865_v59 = vld [vmem:[#allocation10 + $0x1cb0] sm:$0xff] }
 0x325   :  { %5151 = vmatpush1.bf16.msra.mxu1 %v5150_v10  ;;  %5025 = vmatprep.subr.bf16.mxu0 %v5024_v11  ;;  %v1594_v10 = vld [vmem:[#allocation10 + $0x1438] sm:$0xff]  ;;  %v5044_v14 = vpack.c.bf16 %v1608_v9, %v1592_v8  ;;  %v1737_v8 = vld [vmem:[#allocation10 + $0x18b0] sm:$0xff]  ;;  %v1752_v9 = vld [vmem:[#allocation10 + $0x1928] sm:$0xff] }
 0x326   :  { %5153 = vmatprep.subr.bf16.mxu1 %v5152_v15  ;;  %v1610_v11 = vld [vmem:[#allocation10 + $0x14b8] sm:$0xff]  ;;  %v1591_v15 = vld [vmem:[#allocation10 + $0x1420] sm:$0xff]  ;;  %v1880_v60 = vld [vmem:[#allocation10 + $0x1d28] sm:$0xff] }
 0x327   :  { %v5172_v18 = vpack.c.bf16 %v1610_v11, %v1594_v10  ;;  %v5046_v24 = vpack.c.bf16 %v1607_v16, %v1591_v15  ;;  %v1768_v10 = vld [vmem:[#allocation10 + $0x19a8] sm:$0xff]  ;;  %v1754_v11 = vld [vmem:[#allocation10 + $0x1938] sm:$0xff]  ;;  %v1751_v16 = vld [vmem:[#allocation10 + $0x1920] sm:$0xff] }
 0x328   :  { %5027 = vmatpush1.bf16.msra.mxu0 %v5026_v21  ;;  %v1640_v21 = vld [vmem:[#allocation10 + $0x15a8] sm:$0xff]  ;;  %v5064_v15 = vpack.c.bf16 %v1768_v10, %v1752_v9  ;;  %v1897_v9 = vld [vmem:[#allocation10 + $0x1db0] sm:$0xff] }
 0x329   :  { %5155 = vmatpush1.bf16.msra.mxu1 %v5154_v22  ;;  %5029 = vmatprep.subr.bf16.mxu0 %v5028_v23  ;;  %v1626_v22 = vld [vmem:[#allocation10 + $0x1538] sm:$0xff]  ;;  %v1912_v10 = vld [vmem:[#allocation10 + $0x1e28] sm:$0xff] }
 0x32a   :  { %5157 = vmatprep.subr.bf16.mxu1 %v5156_v26  ;;  %v1642_v23 = vld [vmem:[#allocation10 + $0x15b8] sm:$0xff]  ;;  %v5048_v26 = vpack.c.bf16 %v1640_v21, %v1624_v20  ;;  %v1769_v20 = vld [vmem:[#allocation10 + $0x19b0] sm:$0xff]  ;;  %v1784_v21 = vld [vmem:[#allocation10 + $0x1a28] sm:$0xff] }
 0x32b   :  { %2404 = vmatmul.mubr.f32.vlgmr.msra.gmra.mrb[6].mxu0 %v6046_v45  ;;  %v5176_v30 = vpack.c.bf16 %v1642_v23, %v1626_v22  ;;  %v1800_v22 = vld [vmem:[#allocation10 + $0x1aa8] sm:$0xff]  ;;  %v1786_v23 = vld [vmem:[#allocation10 + $0x1a38] sm:$0xff] }
 0x32c   :  { %2546 = vmatmul.mubr.f32.vlgmr.msra.gmra.mrb[6].mxu1 %v6046_v45  ;;  %5031 = vmatpush1.bf16.msra.mxu0 %v5030_v31  ;;  %v1641_v31 = vld [vmem:[#allocation10 + $0x15b0] sm:$0xff]  ;;  %v5068_v27 = vpack.c.bf16 %v1800_v22, %v1784_v21  ;;  %v1944_v22 = vld [vmem:[#allocation10 + $0x1f28] sm:$0xff] }
 0x32d   :  { %2474 = vmatprep.mubr.f32.mxu0 %v6047_v49  ;;  %5159 = vmatpush1.bf16.msra.mxu1 %v5158_v34  ;;  %v1658_v34 = vld [vmem:[#allocation10 + $0x1638] sm:$0xff]  ;;  %v5178_v37 = vpack.c.bf16 %v1641_v31, %v1625_v29  ;;  %v1799_v29 = vld [vmem:[#allocation10 + $0x1aa0] sm:$0xff]  ;;  %v1929_v21 = vld [vmem:[#allocation10 + $0x1eb0] sm:$0xff] }
 0x32e   :  { %2616 = vmatprep.mubr.f32.mxu1 %v6047_v49  ;;  %5033 = vmatprep.subr.bf16.mxu0 %v5032_v38  ;;  %v5052_v38 = vpack.c.bf16 %v1672_v33, %v1656_v32  ;;  %v5180_v45 = vpack.c.bf16 %v1674_v35, %v1658_v34  ;;  %v1706_v49 = vld [vmem:[#allocation10 + $0x17b8] sm:$0xff]  ;;  %v1801_v32 = vld [vmem:[#allocation10 + $0x1ab0] sm:$0xff]  ;;  %v1816_v33 = vld [vmem:[#allocation10 + $0x1b28] sm:$0xff] }
 0x32f   :  { %5161 = vmatprep.subr.bf16.mxu1 %v5160_v46  ;;  %v1673_v46 = vld [vmem:[#allocation10 + $0x16b0] sm:$0xff]  ;;  %v1832_v34 = vld [vmem:[#allocation10 + $0x1ba8] sm:$0xff]  ;;  %v1818_v35 = vld [vmem:[#allocation10 + $0x1b38] sm:$0xff] }
 0x330   :  { %5035 = vmatpush1.bf16.msra.mxu0 %v5034_v48  ;;  %v1690_v48 = vld [vmem:[#allocation10 + $0x1738] sm:$0xff] }
 0x331   :  { %5163 = vmatpush1.bf16.msra.mxu1 %v5162_v50  ;;  %5037 = vmatprep.subr.bf16.mxu0 %v5036_v51  ;;  %v5054_v50 = vpack.c.bf16 %v1671_v39, %v1655_v53  ;;  %v5182_v51 = vpack.c.bf16 %v1673_v46, %v1657_v40  ;;  %v5184_v56 = vpack.c.bf16 %v1706_v49, %v1690_v48  ;;  %v1815_v39 = vld [vmem:[#allocation10 + $0x1b20] sm:$0xff]  ;;  %v1864_v48 = vld [vmem:[#allocation10 + $0x1ca8] sm:$0xff]  ;;  %v1850_v49 = vld [vmem:[#allocation10 + $0x1c38] sm:$0xff] }
 0x332   :  { %5165 = vmatprep.subr.bf16.mxu1 %v5164_v55  ;;  %v1689_v55 = vld [vmem:[#allocation10 + $0x1730] sm:$0xff]  ;;  %v5072_v53 = vpack.c.bf16 %v1832_v34, %v1816_v33  ;;  %v1831_v40 = vld [vmem:[#allocation10 + $0x1ba0] sm:$0xff]  ;;  %v956_v34 = vld [vmem:[#allocation10 + $0x48] sm:$0xff] }
 0x333   :  { %v1961_v33 = vld [vmem:[#allocation10 + $0x1fb0] sm:$0xff] }
 0x334   :  { %5039 = vmatpush1.bf16.msra.mxu0 %v5038_v62  ;;  %v1738_v62 = vld [vmem:[#allocation10 + $0x18b8] sm:$0xff] }
 0x335   :  { %5167 = vmatpush1.bf16.msra.mxu1 %v5166_v63  ;;  %5041 = vmatprep.subr.bf16.mxu0 %v5040_v0  ;;  %v5058_v63 = vpack.c.bf16 %v1703_v54, %v1687_v43  ;;  %v5186_v0 = vpack.c.bf16 %v1705_v58, %v1689_v55  ;;  %v5188_v6 = vpack.c.bf16 %v1738_v62, %v1722_v61  ;;  %v1847_v54 = vld [vmem:[#allocation10 + $0x1c20] sm:$0xff]  ;;  %v1896_v61 = vld [vmem:[#allocation10 + $0x1da8] sm:$0xff]  ;;  %v1882_v62 = vld [vmem:[#allocation10 + $0x1d38] sm:$0xff] }
 0x336   :  { %5169 = vmatprep.subr.bf16.mxu1 %v5168_v5  ;;  %v1721_v5 = vld [vmem:[#allocation10 + $0x1830] sm:$0xff]  ;;  %v5076_v43 = vpack.c.bf16 %v1864_v48, %v1848_v57  ;;  %v1863_v55 = vld [vmem:[#allocation10 + $0x1ca0] sm:$0xff]  ;;  %v988_v48 = vld [vmem:[#allocation10 + $0x148] sm:$0xff] }
 0x337   :  { %v973_v57 = vld [vmem:[#allocation10 + $0xd0] sm:$0xff] }
 0x338   :  { %5043 = vmatpush1.bf16.msra.mxu0 %v5042_v12  ;;  %v1770_v12 = vld [vmem:[#allocation10 + $0x19b8] sm:$0xff] }
 0x339   :  { %5171 = vmatpush1.bf16.msra.mxu1 %v5170_v13  ;;  %5045 = vmatprep.subr.bf16.mxu0 %v5044_v14  ;;  %v5062_v13 = vpack.c.bf16 %v1735_v4, %v1719_v3  ;;  %v5190_v14 = vpack.c.bf16 %v1737_v8, %v1721_v5  ;;  %v5192_v19 = vpack.c.bf16 %v1770_v12, %v1754_v11  ;;  %v1879_v4 = vld [vmem:[#allocation10 + $0x1d20] sm:$0xff]  ;;  %v1928_v11 = vld [vmem:[#allocation10 + $0x1ea8] sm:$0xff]  ;;  %v1914_v12 = vld [vmem:[#allocation10 + $0x1e38] sm:$0xff] }
 0x33a   :  { %5173 = vmatprep.subr.bf16.mxu1 %v5172_v18  ;;  %v1753_v18 = vld [vmem:[#allocation10 + $0x1930] sm:$0xff]  ;;  %v5080_v3 = vpack.c.bf16 %v1896_v61, %v1880_v60  ;;  %v1895_v5 = vld [vmem:[#allocation10 + $0x1da0] sm:$0xff]  ;;  %v1020_v60 = vld [vmem:[#allocation10 + $0x248] sm:$0xff] }
 0x33b   :  { %v1036_v61 = vld [vmem:[#allocation10 + $0x2c8] sm:$0xff] }
 0x33c   :  { %5047 = vmatpush1.bf16.msra.mxu0 %v5046_v24  ;;  %v1802_v24 = vld [vmem:[#allocation10 + $0x1ab8] sm:$0xff] }
 0x33d   :  { %5175 = vmatpush1.bf16.msra.mxu1 %v5174_v25  ;;  %5049 = vmatprep.subr.bf16.mxu0 %v5048_v26  ;;  %v5066_v25 = vpack.c.bf16 %v1767_v17, %v1751_v16  ;;  %v5194_v26 = vpack.c.bf16 %v1769_v20, %v1753_v18  ;;  %v5196_v31 = vpack.c.bf16 %v1802_v24, %v1786_v23  ;;  %v1911_v17 = vld [vmem:[#allocation10 + $0x1e20] sm:$0xff]  ;;  %v1960_v23 = vld [vmem:[#allocation10 + $0x1fa8] sm:$0xff]  ;;  %v1946_v24 = vld [vmem:[#allocation10 + $0x1f38] sm:$0xff] }
 0x33e   :  { %5177 = vmatprep.subr.bf16.mxu1 %v5176_v30  ;;  %v1785_v30 = vld [vmem:[#allocation10 + $0x1a30] sm:$0xff]  ;;  %v5084_v16 = vpack.c.bf16 %v1928_v11, %v1912_v10  ;;  %v1927_v18 = vld [vmem:[#allocation10 + $0x1ea0] sm:$0xff] }
 0x33f   :  { %v1021_v10 = vld [vmem:[#allocation10 + $0x250] sm:$0xff] }
 0x340   :  { %5051 = vmatpush1.bf16.msra.mxu0 %v5050_v36  ;;  %v1834_v36 = vld [vmem:[#allocation10 + $0x1bb8] sm:$0xff] }
 0x341   :  { %5179 = vmatpush1.bf16.msra.mxu1 %v5178_v37  ;;  %5053 = vmatprep.subr.bf16.mxu0 %v5052_v38  ;;  %v5070_v37 = vpack.c.bf16 %v1799_v29, %v1783_v28  ;;  %v5198_v38 = vpack.c.bf16 %v1801_v32, %v1785_v30  ;;  %v5200_v46 = vpack.c.bf16 %v1834_v36, %v1818_v35  ;;  %v1943_v29 = vld [vmem:[#allocation10 + $0x1f20] sm:$0xff]  ;;  %v972_v35 = vld [vmem:[#allocation10 + $0xc8] sm:$0xff]  ;;  %v958_v36 = vld [vmem:[#allocation10 + $0x58] sm:$0xff] }
 0x342   :  { %5181 = vmatprep.subr.bf16.mxu1 %v5180_v45  ;;  %v1817_v45 = vld [vmem:[#allocation10 + $0x1b30] sm:$0xff]  ;;  %v5088_v28 = vpack.c.bf16 %v1960_v23, %v1944_v22  ;;  %v1959_v30 = vld [vmem:[#allocation10 + $0x1fa0] sm:$0xff] }
 0x343   :  { %v1053_v22 = vld [vmem:[#allocation10 + $0x350] sm:$0xff] }
 0x344   :  { %5055 = vmatpush1.bf16.msra.mxu0 %v5054_v50  ;;  %v1866_v50 = vld [vmem:[#allocation10 + $0x1cb8] sm:$0xff] }
 0x345   :  { %5183 = vmatpush1.bf16.msra.mxu1 %v5182_v51  ;;  %5057 = vmatprep.subr.bf16.mxu0 %v5056_v52  ;;  %v5074_v51 = vpack.c.bf16 %v1831_v40, %v1815_v39  ;;  %v5202_v52 = vpack.c.bf16 %v1833_v47, %v1817_v45  ;;  %v5204_v58 = vpack.c.bf16 %v1866_v50, %v1850_v49  ;;  %v955_v40 = vld [vmem:[#allocation10 + $0x40] sm:$0xff]  ;;  %v957_v47 = vld [vmem:[#allocation10 + $0x50] sm:$0xff]  ;;  %v1004_v49 = vld [vmem:[#allocation10 + $0x1c8] sm:$0xff] }
 0x346   :  { %5185 = vmatprep.subr.bf16.mxu1 %v5184_v56  ;;  %v1849_v56 = vld [vmem:[#allocation10 + $0x1c30] sm:$0xff]  ;;  %v5220_v39 = vpack.c.bf16 %v972_v35, %v956_v34  ;;  %v971_v45 = vld [vmem:[#allocation10 + $0xc0] sm:$0xff] }
 0x347   :  { %v5222_v50 = vpack.c.bf16 %v971_v45, %v955_v40  ;;  %v1085_v34 = vld [vmem:[#allocation10 + $0x450] sm:$0xff] }
 0x348   :  { %5059 = vmatpush1.bf16.msra.mxu0 %v5058_v63  ;;  %v1898_v63 = vld [vmem:[#allocation10 + $0x1db8] sm:$0xff] }
 0x349   :  { %5187 = vmatpush1.bf16.msra.mxu1 %v5186_v0  ;;  %5061 = vmatprep.subr.bf16.mxu0 %v5060_v2  ;;  %v5078_v0 = vpack.c.bf16 %v1863_v55, %v1847_v54  ;;  %v5206_v2 = vpack.c.bf16 %v1865_v59, %v1849_v56  ;;  %v5208_v8 = vpack.c.bf16 %v1898_v63, %v1882_v62  ;;  %v987_v54 = vld [vmem:[#allocation10 + $0x140] sm:$0xff]  ;;  %v989_v56 = vld [vmem:[#allocation10 + $0x150] sm:$0xff] }
 0x34a   :  { %5189 = vmatprep.subr.bf16.mxu1 %v5188_v6  ;;  %v1881_v6 = vld [vmem:[#allocation10 + $0x1d30] sm:$0xff]  ;;  %v1003_v55 = vld [vmem:[#allocation10 + $0x1c0] sm:$0xff] }
 0x34b   :  { %v1005_v59 = vld [vmem:[#allocation10 + $0x1d0] sm:$0xff]  ;;  %v6048_v62 = vld [vmem:[#allocation17 + $0x10] sm:$0xff] }
 0x34c   :  { %5063 = vmatpush1.bf16.msra.mxu0 %v5062_v13  ;;  %v1930_v13 = vld [vmem:[#allocation10 + $0x1eb8] sm:$0xff] }
 0x34d   :  { %5191 = vmatpush1.bf16.msra.mxu1 %v5190_v14  ;;  %5065 = vmatprep.subr.bf16.mxu0 %v5064_v15  ;;  %v5082_v14 = vpack.c.bf16 %v1895_v5, %v1879_v4  ;;  %v5210_v15 = vpack.c.bf16 %v1897_v9, %v1881_v6  ;;  %v5212_v20 = vpack.c.bf16 %v1930_v13, %v1914_v12  ;;  %v6049_v4 = vld [vmem:[#allocation17 + $0x8] sm:$0xff]  ;;  %v1037_v12 = vld [vmem:[#allocation10 + $0x2d0] sm:$0xff]  ;;  %v1052_v13 = vld [vmem:[#allocation10 + $0x348] sm:$0xff] }
 0x34e   :  { %5193 = vmatprep.subr.bf16.mxu1 %v5192_v19  ;;  %v1913_v19 = vld [vmem:[#allocation10 + $0x1e30] sm:$0xff]  ;;  %v5354_v5 = vpack.c.bf16 %v1005_v59, %v989_v56  ;;  %v5228_v6 = vpack.c.bf16 %v1036_v61, %v1020_v60  ;;  %v1035_v9 = vld [vmem:[#allocation10 + $0x2c0] sm:$0xff] }
 0x34f   :  { %v1147_v59 = vld [vmem:[#allocation10 + $0x640] sm:$0xff]  ;;  %v1149_v61 = vld [vmem:[#allocation10 + $0x650] sm:$0xff] }
 0x350   :  { %5067 = vmatpush1.bf16.msra.mxu0 %v5066_v25  ;;  %v1962_v25 = vld [vmem:[#allocation10 + $0x1fb8] sm:$0xff]  ;;  %v1163_v60 = vld [vmem:[#allocation10 + $0x6c0] sm:$0xff] }
 0x351   :  { %5195 = vmatpush1.bf16.msra.mxu1 %v5194_v26  ;;  %5069 = vmatprep.subr.bf16.mxu0 %v5068_v27  ;;  %v5086_v26 = vpack.c.bf16 %v1927_v18, %v1911_v17  ;;  %v5214_v27 = vpack.c.bf16 %v1929_v21, %v1913_v19  ;;  %v5216_v32 = vpack.c.bf16 %v1962_v25, %v1946_v24  ;;  %v1067_v21 = vld [vmem:[#allocation10 + $0x3c0] sm:$0xff]  ;;  %v1069_v24 = vld [vmem:[#allocation10 + $0x3d0] sm:$0xff]  ;;  %v1084_v25 = vld [vmem:[#allocation10 + $0x448] sm:$0xff] }
 0x352   :  { %5197 = vmatprep.subr.bf16.mxu1 %v5196_v31  ;;  %v1945_v31 = vld [vmem:[#allocation10 + $0x1f30] sm:$0xff]  ;;  %v5358_v18 = vpack.c.bf16 %v1037_v12, %v1021_v10  ;;  %v1195_v10 = vld [vmem:[#allocation10 + $0x7c0] sm:$0xff] }
 0x354   :  { %5071 = vmatpush1.bf16.msra.mxu0 %v5070_v37  ;;  %v974_v37 = vld [vmem:[#allocation10 + $0xd8] sm:$0xff] }
 0x355   :  { %5199 = vmatpush1.bf16.msra.mxu1 %v5198_v38  ;;  %5073 = vmatprep.subr.bf16.mxu0 %v5072_v53  ;;  %v5090_v38 = vpack.c.bf16 %v1959_v30, %v1943_v29  ;;  %v5218_v53 = vpack.c.bf16 %v1961_v33, %v1945_v31  ;;  %v5362_v30 = vpack.c.bf16 %v1069_v24, %v1053_v22  ;;  %v1099_v33 = vld [vmem:[#allocation10 + $0x4c0] sm:$0xff] }
 0x356   :  { %5201 = vmatprep.subr.bf16.mxu1 %v5200_v46  ;;  %v5348_v46 = vpack.c.bf16 %v974_v37, %v958_v36  ;;  %v1101_v36 = vld [vmem:[#allocation10 + $0x4d0] sm:$0xff]  ;;  %v1116_v37 = vld [vmem:[#allocation10 + $0x548] sm:$0xff]  ;;  %v1227_v22 = vld [vmem:[#allocation10 + $0x8c0] sm:$0xff] }
 0x357   :  { %v5366_v45 = vpack.c.bf16 %v1101_v36, %v1085_v34  ;;  %v1259_v34 = vld [vmem:[#allocation10 + $0x9c0] sm:$0xff] }
 0x358   :  { %5075 = vmatpush1.bf16.msra.mxu0 %v5074_v51  ;;  %v990_v51 = vld [vmem:[#allocation10 + $0x158] sm:$0xff] }
 0x359   :  { %5203 = vmatpush1.bf16.msra.mxu1 %v5202_v52  ;;  %5077 = vmatprep.subr.bf16.mxu0 %v5076_v43  ;;  %v1006_v52 = vld [vmem:[#allocation10 + $0x1d8] sm:$0xff]  ;;  %v5350_v43 = vpack.c.bf16 %v973_v57, %v957_v47  ;;  %v1115_v47 = vld [vmem:[#allocation10 + $0x540] sm:$0xff] }
 0x35a   :  { %5205 = vmatprep.subr.bf16.mxu1 %v5204_v58  ;;  %v5224_v58 = vpack.c.bf16 %v1004_v49, %v988_v48  ;;  %v5352_v63 = vpack.c.bf16 %v1006_v52, %v990_v51  ;;  %v1131_v57 = vld [vmem:[#allocation10 + $0x5c0] sm:$0xff]  ;;  %v1117_v48 = vld [vmem:[#allocation10 + $0x550] sm:$0xff]  ;;  %v1148_v51 = vld [vmem:[#allocation10 + $0x648] sm:$0xff] }
 0x35b   :  { %v1164_v52 = vld [vmem:[#allocation10 + $0x6c8] sm:$0xff] }
 0x35c   :  { %5079 = vmatpush1.bf16.msra.mxu0 %v5078_v0  ;;  %v1022_v0 = vld [vmem:[#allocation10 + $0x258] sm:$0xff] }
 0x35d   :  { %5207 = vmatpush1.bf16.msra.mxu1 %v5206_v2  ;;  %5081 = vmatprep.subr.bf16.mxu0 %v5080_v3  ;;  %v1038_v2 = vld [vmem:[#allocation10 + $0x2d8] sm:$0xff]  ;;  %v5226_v3 = vpack.c.bf16 %v1003_v55, %v987_v54  ;;  %v5242_v55 = vpack.c.bf16 %v1131_v57, %v1115_v47  ;;  %v1275_v57 = vld [vmem:[#allocation10 + $0xa40] sm:$0xff] }
 0x35e   :  { %5209 = vmatprep.subr.bf16.mxu1 %v5208_v8  ;;  %v1019_v8 = vld [vmem:[#allocation10 + $0x240] sm:$0xff]  ;;  %v5356_v11 = vpack.c.bf16 %v1038_v2, %v1022_v0  ;;  %v1166_v54 = vld [vmem:[#allocation10 + $0x6d8] sm:$0xff]  ;;  %v1180_v0 = vld [vmem:[#allocation10 + $0x748] sm:$0xff] }
 0x35f   :  { %v5230_v17 = vpack.c.bf16 %v1035_v9, %v1019_v8  ;;  %v1196_v2 = vld [vmem:[#allocation10 + $0x7c8] sm:$0xff]  ;;  %v1179_v9 = vld [vmem:[#allocation10 + $0x740] sm:$0xff] }
 0x360   :  { %5083 = vmatpush1.bf16.msra.mxu0 %v5082_v14  ;;  %v1068_v14 = vld [vmem:[#allocation10 + $0x3c8] sm:$0xff]  ;;  %v5248_v8 = vpack.c.bf16 %v1196_v2, %v1180_v0  ;;  %v1325_v0 = vld [vmem:[#allocation10 + $0xbd0] sm:$0xff] }
 0x361   :  { %5211 = vmatpush1.bf16.msra.mxu1 %v5210_v15  ;;  %5085 = vmatprep.subr.bf16.mxu0 %v5084_v16  ;;  %v1054_v15 = vld [vmem:[#allocation10 + $0x358] sm:$0xff]  ;;  %v5232_v19 = vpack.c.bf16 %v1068_v14, %v1052_v13  ;;  %v1197_v13 = vld [vmem:[#allocation10 + $0x7d0] sm:$0xff]  ;;  %v1212_v14 = vld [vmem:[#allocation10 + $0x848] sm:$0xff] }
 0x362   :  { %5213 = vmatprep.subr.bf16.mxu1 %v5212_v20  ;;  %v1070_v16 = vld [vmem:[#allocation10 + $0x3d8] sm:$0xff]  ;;  %v1051_v20 = vld [vmem:[#allocation10 + $0x340] sm:$0xff]  ;;  %v1340_v2 = vld [vmem:[#allocation10 + $0xc48] sm:$0xff] }
 0x363   :  { %v5360_v23 = vpack.c.bf16 %v1070_v16, %v1054_v15  ;;  %v5234_v29 = vpack.c.bf16 %v1067_v21, %v1051_v20  ;;  %v1228_v15 = vld [vmem:[#allocation10 + $0x8c8] sm:$0xff]  ;;  %v1214_v16 = vld [vmem:[#allocation10 + $0x858] sm:$0xff]  ;;  %v1211_v21 = vld [vmem:[#allocation10 + $0x840] sm:$0xff] }
 0x364   :  { %5087 = vmatpush1.bf16.msra.mxu0 %v5086_v26  ;;  %v1100_v26 = vld [vmem:[#allocation10 + $0x4c8] sm:$0xff]  ;;  %v5252_v20 = vpack.c.bf16 %v1228_v15, %v1212_v14  ;;  %v1357_v14 = vld [vmem:[#allocation10 + $0xcd0] sm:$0xff] }
 0x365   :  { %5215 = vmatpush1.bf16.msra.mxu1 %v5214_v27  ;;  %5089 = vmatprep.subr.bf16.mxu0 %v5088_v28  ;;  %v1086_v27 = vld [vmem:[#allocation10 + $0x458] sm:$0xff]  ;;  %v5236_v31 = vpack.c.bf16 %v1100_v26, %v1084_v25  ;;  %v1229_v25 = vld [vmem:[#allocation10 + $0x8d0] sm:$0xff]  ;;  %v1244_v26 = vld [vmem:[#allocation10 + $0x948] sm:$0xff] }
 0x366   :  { %5217 = vmatprep.subr.bf16.mxu1 %v5216_v32  ;;  %v1102_v28 = vld [vmem:[#allocation10 + $0x4d8] sm:$0xff]  ;;  %v1083_v32 = vld [vmem:[#allocation10 + $0x440] sm:$0xff]  ;;  %v1372_v15 = vld [vmem:[#allocation10 + $0xd48] sm:$0xff] }
 0x367   :  { %v5364_v35 = vpack.c.bf16 %v1102_v28, %v1086_v27  ;;  %v5238_v40 = vpack.c.bf16 %v1099_v33, %v1083_v32  ;;  %v1260_v27 = vld [vmem:[#allocation10 + $0x9c8] sm:$0xff]  ;;  %v1246_v28 = vld [vmem:[#allocation10 + $0x958] sm:$0xff]  ;;  %v1243_v33 = vld [vmem:[#allocation10 + $0x940] sm:$0xff] }
 0x368   :  { %5091 = vmatpush1.bf16.msra.mxu0 %v5090_v38  ;;  %v1132_v38 = vld [vmem:[#allocation10 + $0x5c8] sm:$0xff]  ;;  %v5256_v32 = vpack.c.bf16 %v1260_v27, %v1244_v26  ;;  %v1389_v26 = vld [vmem:[#allocation10 + $0xdd0] sm:$0xff] }
 0x369   :  { %5219 = vmatpush1.bf16.msra.mxu1 %v5218_v53  ;;  %5221 = vmatprep.subr.bf16.mxu0 %v5220_v39  ;;  %v1118_v53 = vld [vmem:[#allocation10 + $0x558] sm:$0xff]  ;;  %v1404_v27 = vld [vmem:[#allocation10 + $0xe48] sm:$0xff] }
 0x36a   :  { %5349 = vmatprep.subr.bf16.mxu1 %v5348_v46  ;;  %v1134_v39 = vld [vmem:[#allocation10 + $0x5d8] sm:$0xff]  ;;  %v5240_v46 = vpack.c.bf16 %v1132_v38, %v1116_v37  ;;  %v1261_v37 = vld [vmem:[#allocation10 + $0x9d0] sm:$0xff]  ;;  %v1276_v38 = vld [vmem:[#allocation10 + $0xa48] sm:$0xff] }
 0x36b   :  { %2475 = vmatmul.mubr.f32.vlgmr.msra.gmra.mrb[6].mxu0 %v6048_v62  ;;  %v5368_v49 = vpack.c.bf16 %v1134_v39, %v1118_v53  ;;  %v1292_v53 = vld [vmem:[#allocation10 + $0xac8] sm:$0xff]  ;;  %v1278_v39 = vld [vmem:[#allocation10 + $0xa58] sm:$0xff] }
 0x36c   :  { %2617 = vmatmul.mubr.f32.vlgmr.msra.gmra.mrb[6].mxu1 %v6048_v62  ;;  %5223 = vmatpush1.bf16.msra.mxu0 %v5222_v50  ;;  %v1133_v50 = vld [vmem:[#allocation10 + $0x5d0] sm:$0xff]  ;;  %v5260_v47 = vpack.c.bf16 %v1292_v53, %v1276_v38  ;;  %v1436_v53 = vld [vmem:[#allocation10 + $0xf48] sm:$0xff] }
 0x36d   :  { %2687 = vmatprep.mubr.f32.mxu0 %v6049_v4  ;;  %5351 = vmatpush1.bf16.msra.mxu1 %v5350_v43  ;;  %v1150_v43 = vld [vmem:[#allocation10 + $0x658] sm:$0xff]  ;;  %v5370_v56 = vpack.c.bf16 %v1133_v50, %v1117_v48  ;;  %v1291_v48 = vld [vmem:[#allocation10 + $0xac0] sm:$0xff]  ;;  %v1421_v38 = vld [vmem:[#allocation10 + $0xed0] sm:$0xff] }
 0x36e   :  { %2829 = vmatprep.mubr.f32.mxu1 %v6049_v4  ;;  %5225 = vmatprep.subr.bf16.mxu0 %v5224_v58  ;;  %v5244_v58 = vpack.c.bf16 %v1164_v52, %v1148_v51  ;;  %v5372_v62 = vpack.c.bf16 %v1166_v54, %v1150_v43  ;;  %v1198_v4 = vld [vmem:[#allocation10 + $0x7d8] sm:$0xff]  ;;  %v1293_v51 = vld [vmem:[#allocation10 + $0xad0] sm:$0xff]  ;;  %v1308_v52 = vld [vmem:[#allocation10 + $0xb48] sm:$0xff] }
 0x36f   :  { %5353 = vmatprep.subr.bf16.mxu1 %v5352_v63  ;;  %v1165_v63 = vld [vmem:[#allocation10 + $0x6d0] sm:$0xff]  ;;  %v1324_v43 = vld [vmem:[#allocation10 + $0xbc8] sm:$0xff]  ;;  %v1310_v54 = vld [vmem:[#allocation10 + $0xb58] sm:$0xff] }
 0x370   :  { %5227 = vmatpush1.bf16.msra.mxu0 %v5226_v3  ;;  %v1182_v3 = vld [vmem:[#allocation10 + $0x758] sm:$0xff] }
 0x371   :  { %5355 = vmatpush1.bf16.msra.mxu1 %v5354_v5  ;;  %5229 = vmatprep.subr.bf16.mxu0 %v5228_v6  ;;  %v5246_v5 = vpack.c.bf16 %v1163_v60, %v1147_v59  ;;  %v5374_v6 = vpack.c.bf16 %v1165_v63, %v1149_v61  ;;  %v5376_v12 = vpack.c.bf16 %v1198_v4, %v1182_v3  ;;  %v1307_v60 = vld [vmem:[#allocation10 + $0xb40] sm:$0xff]  ;;  %v1356_v3 = vld [vmem:[#allocation10 + $0xcc8] sm:$0xff]  ;;  %v1342_v4 = vld [vmem:[#allocation10 + $0xc58] sm:$0xff] }
 0x372   :  { %5357 = vmatprep.subr.bf16.mxu1 %v5356_v11  ;;  %v1181_v11 = vld [vmem:[#allocation10 + $0x750] sm:$0xff]  ;;  %v5264_v59 = vpack.c.bf16 %v1324_v43, %v1308_v52  ;;  %v1323_v61 = vld [vmem:[#allocation10 + $0xbc0] sm:$0xff]  ;;  %v1468_v43 = vld [vmem:[#allocation10 + $0x1048] sm:$0xff] }
 0x373   :  { %v1453_v52 = vld [vmem:[#allocation10 + $0xfd0] sm:$0xff] }
 0x374   :  { %5231 = vmatpush1.bf16.msra.mxu0 %v5230_v17  ;;  %v1230_v17 = vld [vmem:[#allocation10 + $0x8d8] sm:$0xff] }
 0x375   :  { %5359 = vmatpush1.bf16.msra.mxu1 %v5358_v18  ;;  %5233 = vmatprep.subr.bf16.mxu0 %v5232_v19  ;;  %v5250_v18 = vpack.c.bf16 %v1195_v10, %v1179_v9  ;;  %v5378_v19 = vpack.c.bf16 %v1197_v13, %v1181_v11  ;;  %v5380_v24 = vpack.c.bf16 %v1230_v17, %v1214_v16  ;;  %v1339_v10 = vld [vmem:[#allocation10 + $0xc40] sm:$0xff]  ;;  %v1388_v16 = vld [vmem:[#allocation10 + $0xdc8] sm:$0xff]  ;;  %v1374_v17 = vld [vmem:[#allocation10 + $0xd58] sm:$0xff] }
 0x376   :  { %5361 = vmatprep.subr.bf16.mxu1 %v5360_v23  ;;  %v1213_v23 = vld [vmem:[#allocation10 + $0x850] sm:$0xff]  ;;  %v5268_v9 = vpack.c.bf16 %v1356_v3, %v1340_v2  ;;  %v1355_v11 = vld [vmem:[#allocation10 + $0xcc0] sm:$0xff]  ;;  %v1500_v3 = vld [vmem:[#allocation10 + $0x1148] sm:$0xff] }
 0x377   :  { %v1485_v2 = vld [vmem:[#allocation10 + $0x10d0] sm:$0xff] }
 0x378   :  { %5235 = vmatpush1.bf16.msra.mxu0 %v5234_v29  ;;  %v1262_v29 = vld [vmem:[#allocation10 + $0x9d8] sm:$0xff] }
 0x379   :  { %5363 = vmatpush1.bf16.msra.mxu1 %v5362_v30  ;;  %5237 = vmatprep.subr.bf16.mxu0 %v5236_v31  ;;  %v5254_v30 = vpack.c.bf16 %v1227_v22, %v1211_v21  ;;  %v5382_v31 = vpack.c.bf16 %v1229_v25, %v1213_v23  ;;  %v5384_v36 = vpack.c.bf16 %v1262_v29, %v1246_v28  ;;  %v1371_v22 = vld [vmem:[#allocation10 + $0xd40] sm:$0xff]  ;;  %v1420_v28 = vld [vmem:[#allocation10 + $0xec8] sm:$0xff]  ;;  %v1406_v29 = vld [vmem:[#allocation10 + $0xe58] sm:$0xff] }
 0x37a   :  { %5365 = vmatprep.subr.bf16.mxu1 %v5364_v35  ;;  %v1245_v35 = vld [vmem:[#allocation10 + $0x950] sm:$0xff]  ;;  %v5272_v21 = vpack.c.bf16 %v1388_v16, %v1372_v15  ;;  %v1387_v23 = vld [vmem:[#allocation10 + $0xdc0] sm:$0xff]  ;;  %v1532_v15 = vld [vmem:[#allocation10 + $0x1248] sm:$0xff] }
 0x37b   :  { %v1548_v16 = vld [vmem:[#allocation10 + $0x12c8] sm:$0xff] }
 0x37c   :  { %5239 = vmatpush1.bf16.msra.mxu0 %v5238_v40  ;;  %v1294_v40 = vld [vmem:[#allocation10 + $0xad8] sm:$0xff] }
 0x37d   :  { %5367 = vmatpush1.bf16.msra.mxu1 %v5366_v45  ;;  %5241 = vmatprep.subr.bf16.mxu0 %v5240_v46  ;;  %v5258_v45 = vpack.c.bf16 %v1259_v34, %v1243_v33  ;;  %v5386_v46 = vpack.c.bf16 %v1261_v37, %v1245_v35  ;;  %v5388_v50 = vpack.c.bf16 %v1294_v40, %v1278_v39  ;;  %v1403_v34 = vld [vmem:[#allocation10 + $0xe40] sm:$0xff]  ;;  %v1452_v39 = vld [vmem:[#allocation10 + $0xfc8] sm:$0xff]  ;;  %v1438_v40 = vld [vmem:[#allocation10 + $0xf58] sm:$0xff] }
 0x37e   :  { %5369 = vmatprep.subr.bf16.mxu1 %v5368_v49  ;;  %v1277_v49 = vld [vmem:[#allocation10 + $0xa50] sm:$0xff]  ;;  %v5276_v33 = vpack.c.bf16 %v1420_v28, %v1404_v27  ;;  %v1419_v35 = vld [vmem:[#allocation10 + $0xec0] sm:$0xff] }
 0x37f   :  { %v1533_v27 = vld [vmem:[#allocation10 + $0x1250] sm:$0xff] }
 0x380   :  { %5243 = vmatpush1.bf16.msra.mxu0 %v5242_v55  ;;  %v1326_v55 = vld [vmem:[#allocation10 + $0xbd8] sm:$0xff] }
 0x381   :  { %5371 = vmatpush1.bf16.msra.mxu1 %v5370_v56  ;;  %5245 = vmatprep.subr.bf16.mxu0 %v5244_v58  ;;  %v5262_v56 = vpack.c.bf16 %v1291_v48, %v1275_v57  ;;  %v5390_v58 = vpack.c.bf16 %v1293_v51, %v1277_v49  ;;  %v5392_v63 = vpack.c.bf16 %v1326_v55, %v1310_v54  ;;  %v1435_v48 = vld [vmem:[#allocation10 + $0xf40] sm:$0xff]  ;;  %v1484_v54 = vld [vmem:[#allocation10 + $0x10c8] sm:$0xff]  ;;  %v1470_v55 = vld [vmem:[#allocation10 + $0x1058] sm:$0xff] }
 0x382   :  { %5373 = vmatprep.subr.bf16.mxu1 %v5372_v62  ;;  %v1309_v62 = vld [vmem:[#allocation10 + $0xb50] sm:$0xff]  ;;  %v5280_v57 = vpack.c.bf16 %v1452_v39, %v1436_v53  ;;  %v1451_v49 = vld [vmem:[#allocation10 + $0xfc0] sm:$0xff] }
 0x383   :  { %v1565_v53 = vld [vmem:[#allocation10 + $0x1350] sm:$0xff] }
 0x384   :  { %5247 = vmatpush1.bf16.msra.mxu0 %v5246_v5  ;;  %v1358_v5 = vld [vmem:[#allocation10 + $0xcd8] sm:$0xff] }
 0x385   :  { %5375 = vmatpush1.bf16.msra.mxu1 %v5374_v6  ;;  %5249 = vmatprep.subr.bf16.mxu0 %v5248_v8  ;;  %v5266_v6 = vpack.c.bf16 %v1323_v61, %v1307_v60  ;;  %v5394_v8 = vpack.c.bf16 %v1325_v0, %v1309_v62  ;;  %v5396_v13 = vpack.c.bf16 %v1358_v5, %v1342_v4  ;;  %v1467_v61 = vld [vmem:[#allocation10 + $0x1040] sm:$0xff]  ;;  %v1469_v0 = vld [vmem:[#allocation10 + $0x1050] sm:$0xff]  ;;  %v1516_v4 = vld [vmem:[#allocation10 + $0x11c8] sm:$0xff] }
 0x386   :  { %5377 = vmatprep.subr.bf16.mxu1 %v5376_v12  ;;  %v1341_v12 = vld [vmem:[#allocation10 + $0xc50] sm:$0xff]  ;;  %v5284_v60 = vpack.c.bf16 %v1484_v54, %v1468_v43  ;;  %v1483_v62 = vld [vmem:[#allocation10 + $0x10c0] sm:$0xff] }
 0x387   :  { %v5286_v5 = vpack.c.bf16 %v1483_v62, %v1467_v61  ;;  %v1597_v43 = vld [vmem:[#allocation10 + $0x1450] sm:$0xff]  ;;  %v1971_v62 = vld [vmem:[#allocation11] sm:$0xff] }
 0x388   :  { %5251 = vmatpush1.bf16.msra.mxu0 %v5250_v18  ;;  %v1390_v18 = vld [vmem:[#allocation10 + $0xdd8] sm:$0xff] }
 0x389   :  { %5379 = vmatpush1.bf16.msra.mxu1 %v5378_v19  ;;  %5253 = vmatprep.subr.bf16.mxu0 %v5252_v20  ;;  %v5270_v19 = vpack.c.bf16 %v1355_v11, %v1339_v10  ;;  %v5398_v20 = vpack.c.bf16 %v1357_v14, %v1341_v12  ;;  %v5400_v25 = vpack.c.bf16 %v1390_v18, %v1374_v17  ;;  %v1499_v10 = vld [vmem:[#allocation10 + $0x1140] sm:$0xff]  ;;  %v1501_v12 = vld [vmem:[#allocation10 + $0x1150] sm:$0xff] }
 0x38a   :  { %5381 = vmatprep.subr.bf16.mxu1 %v5380_v24  ;;  %v1373_v24 = vld [vmem:[#allocation10 + $0xd50] sm:$0xff]  ;;  %v1515_v11 = vld [vmem:[#allocation10 + $0x11c0] sm:$0xff] }
 0x38b   :  { %v1517_v14 = vld [vmem:[#allocation10 + $0x11d0] sm:$0xff] }
 0x38c   :  { %5255 = vmatpush1.bf16.msra.mxu0 %v5254_v30  ;;  %v1422_v30 = vld [vmem:[#allocation10 + $0xed8] sm:$0xff] }
 0x38d   :  { %5383 = vmatpush1.bf16.msra.mxu1 %v5382_v31  ;;  %5257 = vmatprep.subr.bf16.mxu0 %v5256_v32  ;;  %v5274_v31 = vpack.c.bf16 %v1387_v23, %v1371_v22  ;;  %v5402_v32 = vpack.c.bf16 %v1389_v26, %v1373_v24  ;;  %v5404_v37 = vpack.c.bf16 %v1422_v30, %v1406_v29  ;;  %v6050_v17 = vld [vmem:[#allocation17] sm:$0xff]  ;;  %v6051_v22 = vld [vmem:[#allocation17 + $0x18] sm:$0xff]  ;;  %v1547_v26 = vld [vmem:[#allocation10 + $0x12c0] sm:$0xff] }
 0x38e   :  { %5385 = vmatprep.subr.bf16.mxu1 %v5384_v36  ;;  %v1405_v36 = vld [vmem:[#allocation10 + $0xe50] sm:$0xff]  ;;  %v5418_v23 = vpack.c.bf16 %v1517_v14, %v1501_v12  ;;  %v5292_v24 = vpack.c.bf16 %v1548_v16, %v1532_v15  ;;  %v1564_v30 = vld [vmem:[#allocation10 + $0x1348] sm:$0xff]  ;;  %v1662_v12 = vld [vmem:[#allocation10 + $0x1658] sm:$0xff]  ;;  %v1982_v14 = vrot.slane %v1971_v62, %v6550_v44  ;;  %v1990_v15 = vrot.slane %v1971_v62, %v6560_v7 }
 0x38f   :  { %v1549_v29 = vld [vmem:[#allocation10 + $0x12d0] sm:$0xff] }
 0x390   :  { %5259 = vmatpush1.bf16.msra.mxu0 %v5258_v45  ;;  %v1454_v45 = vld [vmem:[#allocation10 + $0xfd8] sm:$0xff] }
 0x391   :  { %5387 = vmatpush1.bf16.msra.mxu1 %v5386_v46  ;;  %5261 = vmatprep.subr.bf16.mxu0 %v5260_v47  ;;  %v5278_v46 = vpack.c.bf16 %v1419_v35, %v1403_v34  ;;  %v5406_v47 = vpack.c.bf16 %v1421_v38, %v1405_v36  ;;  %v5408_v51 = vpack.c.bf16 %v1454_v45, %v1438_v40  ;;  %v1579_v38 = vld [vmem:[#allocation10 + $0x13c0] sm:$0xff]  ;;  %v1581_v40 = vld [vmem:[#allocation10 + $0x13d0] sm:$0xff]  ;;  %v1596_v45 = vld [vmem:[#allocation10 + $0x1448] sm:$0xff] }
 0x392   :  { %5389 = vmatprep.subr.bf16.mxu1 %v5388_v50  ;;  %v1437_v50 = vld [vmem:[#allocation10 + $0xf50] sm:$0xff]  ;;  %v5422_v35 = vpack.c.bf16 %v1549_v29, %v1533_v27  ;;  %v1708_v27 = vld [vmem:[#allocation10 + $0x17c8] sm:$0xff] }
 0x394   :  { %5263 = vmatpush1.bf16.msra.mxu0 %v5262_v56  ;;  %v1486_v56 = vld [vmem:[#allocation10 + $0x10d8] sm:$0xff] }
 0x395   :  { %5391 = vmatpush1.bf16.msra.mxu1 %v5390_v58  ;;  %5265 = vmatprep.subr.bf16.mxu0 %v5264_v59  ;;  %v5282_v58 = vpack.c.bf16 %v1451_v49, %v1435_v48  ;;  %v5410_v59 = vpack.c.bf16 %v1453_v52, %v1437_v50  ;;  %v5426_v49 = vpack.c.bf16 %v1581_v40, %v1565_v53  ;;  %v1611_v52 = vld [vmem:[#allocation10 + $0x14c0] sm:$0xff] }
 0x396   :  { %5393 = vmatprep.subr.bf16.mxu1 %v5392_v63  ;;  %v5412_v63 = vpack.c.bf16 %v1486_v56, %v1470_v55  ;;  %v1613_v55 = vld [vmem:[#allocation10 + $0x14d0] sm:$0xff]  ;;  %v1628_v56 = vld [vmem:[#allocation10 + $0x1548] sm:$0xff]  ;;  %v1691_v40 = vld [vmem:[#allocation10 + $0x1740] sm:$0xff] }
 0x398   :  { %5267 = vmatpush1.bf16.msra.mxu0 %v5266_v6  ;;  %v1502_v6 = vld [vmem:[#allocation10 + $0x1158] sm:$0xff] }
 0x399   :  { %5395 = vmatpush1.bf16.msra.mxu1 %v5394_v8  ;;  %5269 = vmatprep.subr.bf16.mxu0 %v5268_v9  ;;  %v1518_v8 = vld [vmem:[#allocation10 + $0x11d8] sm:$0xff]  ;;  %v5414_v9 = vpack.c.bf16 %v1485_v2, %v1469_v0  ;;  %v1627_v2 = vld [vmem:[#allocation10 + $0x1540] sm:$0xff] }
 0x39a   :  { %5397 = vmatprep.subr.bf16.mxu1 %v5396_v13  ;;  %v5288_v13 = vpack.c.bf16 %v1516_v4, %v1500_v3  ;;  %v5416_v18 = vpack.c.bf16 %v1518_v8, %v1502_v6  ;;  %v1643_v3 = vld [vmem:[#allocation10 + $0x15c0] sm:$0xff]  ;;  %v1629_v4 = vld [vmem:[#allocation10 + $0x1550] sm:$0xff]  ;;  %v1660_v8 = vld [vmem:[#allocation10 + $0x1648] sm:$0xff] }
 0x39b   :  { %v1645_v6 = vld [vmem:[#allocation10 + $0x15d0] sm:$0xff]  ;;  %v5306_v16 = vpack.c.bf16 %v1643_v3, %v1627_v2  ;;  %v1758_v2 = vld [vmem:[#allocation10 + $0x1958] sm:$0xff] }
 0x39c   :  { %5271 = vmatpush1.bf16.msra.mxu0 %v5270_v19  ;;  %v1534_v19 = vld [vmem:[#allocation10 + $0x1258] sm:$0xff] }
 0x39d   :  { %5399 = vmatpush1.bf16.msra.mxu1 %v5398_v20  ;;  %5273 = vmatprep.subr.bf16.mxu0 %v5272_v21  ;;  %v1550_v20 = vld [vmem:[#allocation10 + $0x12d8] sm:$0xff]  ;;  %v5290_v21 = vpack.c.bf16 %v1515_v11, %v1499_v10  ;;  %v1978_v10 = vrot.slane %v1971_v62, %v6545_v42  ;;  %v1986_v11 = vrot.slane %v1971_v62, %v6557_v1  ;;  %v1741_v62 = vld [vmem:[#allocation10 + $0x18d0] sm:$0xff] }
 0x39e   :  { %5401 = vmatprep.subr.bf16.mxu1 %v5400_v25  ;;  %v1531_v25 = vld [vmem:[#allocation10 + $0x1240] sm:$0xff]  ;;  %v5420_v28 = vpack.c.bf16 %v1550_v20, %v1534_v19  ;;  %v1774_v3 = vld [vmem:[#allocation10 + $0x19d8] sm:$0xff] }
 0x39f   :  { %v5294_v34 = vpack.c.bf16 %v1547_v26, %v1531_v25  ;;  %v1659_v19 = vld [vmem:[#allocation10 + $0x1640] sm:$0xff]  ;;  %v1677_v25 = vld [vmem:[#allocation10 + $0x16d0] sm:$0xff]  ;;  %v1692_v26 = vld [vmem:[#allocation10 + $0x1748] sm:$0xff] }
 0x3a0   :  { %5275 = vmatpush1.bf16.msra.mxu0 %v5274_v31  ;;  %v1580_v31 = vld [vmem:[#allocation10 + $0x13c8] sm:$0xff]  ;;  %v1675_v20 = vld [vmem:[#allocation10 + $0x16c0] sm:$0xff] }
 0x3a1   :  { %5403 = vmatpush1.bf16.msra.mxu1 %v5402_v32  ;;  %5277 = vmatprep.subr.bf16.mxu0 %v5276_v33  ;;  %v1566_v32 = vld [vmem:[#allocation10 + $0x1358] sm:$0xff]  ;;  %v5296_v36 = vpack.c.bf16 %v1580_v31, %v1564_v30 }
 0x3a2   :  { %5405 = vmatprep.subr.bf16.mxu1 %v5404_v37  ;;  %v1582_v33 = vld [vmem:[#allocation10 + $0x13d8] sm:$0xff]  ;;  %v1563_v37 = vld [vmem:[#allocation10 + $0x1340] sm:$0xff] }
 0x3a3   :  { %v5424_v39 = vpack.c.bf16 %v1582_v33, %v1566_v32  ;;  %v5298_v48 = vpack.c.bf16 %v1579_v38, %v1563_v37  ;;  %v1694_v32 = vld [vmem:[#allocation10 + $0x1758] sm:$0xff] }
 0x3a4   :  { %5279 = vmatpush1.bf16.msra.mxu0 %v5278_v46  ;;  %v1612_v46 = vld [vmem:[#allocation10 + $0x14c8] sm:$0xff]  ;;  %v1710_v33 = vld [vmem:[#allocation10 + $0x17d8] sm:$0xff] }
 0x3a5   :  { %5407 = vmatpush1.bf16.msra.mxu1 %v5406_v47  ;;  %5281 = vmatprep.subr.bf16.mxu0 %v5280_v57  ;;  %v1598_v47 = vld [vmem:[#allocation10 + $0x1458] sm:$0xff]  ;;  %v5300_v50 = vpack.c.bf16 %v1612_v46, %v1596_v45  ;;  %v1707_v45 = vld [vmem:[#allocation10 + $0x17c0] sm:$0xff]  ;;  %v1693_v46 = vld [vmem:[#allocation10 + $0x1750] sm:$0xff] }
 0x3a6   :  { %5409 = vmatprep.subr.bf16.mxu1 %v5408_v51  ;;  %v1614_v57 = vld [vmem:[#allocation10 + $0x14d8] sm:$0xff]  ;;  %v1595_v51 = vld [vmem:[#allocation10 + $0x1440] sm:$0xff] }
 0x3a7   :  { %v5428_v54 = vpack.c.bf16 %v1614_v57, %v1598_v47  ;;  %v5302_v61 = vpack.c.bf16 %v1611_v52, %v1595_v51  ;;  %v1740_v51 = vld [vmem:[#allocation10 + $0x18c8] sm:$0xff]  ;;  %v1726_v52 = vld [vmem:[#allocation10 + $0x1858] sm:$0xff] }
 0x3a8   :  { %5283 = vmatpush1.bf16.msra.mxu0 %v5282_v58  ;;  %v1644_v58 = vld [vmem:[#allocation10 + $0x15c8] sm:$0xff] }
 0x3a9   :  { %5411 = vmatpush1.bf16.msra.mxu1 %v5410_v59  ;;  %5285 = vmatprep.subr.bf16.mxu0 %v5284_v60  ;;  %v1630_v59 = vld [vmem:[#allocation10 + $0x1558] sm:$0xff]  ;;  %v5304_v0 = vpack.c.bf16 %v1644_v58, %v1628_v56  ;;  %v1723_v58 = vld [vmem:[#allocation10 + $0x1840] sm:$0xff] }
 0x3aa   :  { %5413 = vmatprep.subr.bf16.mxu1 %v5412_v63  ;;  %v1646_v60 = vld [vmem:[#allocation10 + $0x15d8] sm:$0xff]  ;;  %v5430_v63 = vpack.c.bf16 %v1613_v55, %v1597_v43 }
 0x3ab   :  { %2688 = vmatmul.mubr.f32.vlgmr.msra.gmra.mrb[8].mxu0 %v6050_v17  ;;  %v1742_v43 = vld [vmem:[#allocation10 + $0x18d8] sm:$0xff] }
 0x3ac   :  { %2830 = vmatmul.mubr.f32.vlgmr.msra.gmra.mrb[8].mxu1 %v6050_v17  ;;  %5287 = vmatpush1.bf16.msra.mxu0 %v5286_v5  ;;  %v5432_v5 = vpack.c.bf16 %v1646_v60, %v1630_v59  ;;  %v5434_v17 = vpack.c.bf16 %v1645_v6, %v1629_v4  ;;  %v1739_v59 = vld [vmem:[#allocation10 + $0x18c0] sm:$0xff]  ;;  %v1725_v60 = vld [vmem:[#allocation10 + $0x1850] sm:$0xff] }
 0x3ad   :  { %2758 = vmatprep.mubr.f32.mxu0 %v6051_v22  ;;  %5415 = vmatpush1.bf16.msra.mxu1 %v5414_v9  ;;  %v1676_v9 = vld [vmem:[#allocation10 + $0x16c8] sm:$0xff]  ;;  %v5318_v4 = vpack.c.bf16 %v1739_v59, %v1723_v58  ;;  %v1883_v59 = vld [vmem:[#allocation10 + $0x1d40] sm:$0xff] }
 0x3ae   :  { %2900 = vmatprep.mubr.f32.mxu1 %v6051_v22  ;;  %5289 = vmatprep.subr.bf16.mxu0 %v5288_v13  ;;  %v1678_v13 = vld [vmem:[#allocation10 + $0x16d8] sm:$0xff] }
 0x3af   :  { %5417 = vmatprep.subr.bf16.mxu1 %v5416_v18  ;;  %v5308_v18 = vpack.c.bf16 %v1676_v9, %v1660_v8  ;;  %v1755_v8 = vld [vmem:[#allocation10 + $0x1940] sm:$0xff] }
 0x3b0   :  { %5291 = vmatpush1.bf16.msra.mxu0 %v5290_v21  ;;  %v1661_v21 = vld [vmem:[#allocation10 + $0x1650] sm:$0xff]  ;;  %v1771_v9 = vld [vmem:[#allocation10 + $0x19c0] sm:$0xff] }
 0x3b1   :  { %5419 = vmatpush1.bf16.msra.mxu1 %v5418_v23  ;;  %5293 = vmatprep.subr.bf16.mxu0 %v5292_v24  ;;  %v5436_v24 = vpack.c.bf16 %v1678_v13, %v1662_v12  ;;  %v5438_v53 = vpack.c.bf16 %v1677_v25, %v1661_v21  ;;  %v1773_v12 = vld [vmem:[#allocation10 + $0x19d0] sm:$0xff]  ;;  %v1788_v13 = vld [vmem:[#allocation10 + $0x1a48] sm:$0xff]  ;;  %v1803_v21 = vld [vmem:[#allocation10 + $0x1ac0] sm:$0xff] }
 0x3b2   :  { %5421 = vmatprep.subr.bf16.mxu1 %v5420_v28  ;;  %v1820_v25 = vld [vmem:[#allocation10 + $0x1b48] sm:$0xff] }
 0x3b4   :  { %5295 = vmatpush1.bf16.msra.mxu0 %v5294_v34 }
 0x3b5   :  { %5423 = vmatpush1.bf16.msra.mxu1 %v5422_v35  ;;  %5297 = vmatprep.subr.bf16.mxu0 %v5296_v36  ;;  %v5310_v36 = vpack.c.bf16 %v1675_v20, %v1659_v19  ;;  %v1787_v20 = vld [vmem:[#allocation10 + $0x1a40] sm:$0xff] }
 0x3b6   :  { %5425 = vmatprep.subr.bf16.mxu1 %v5424_v39  ;;  %v5312_v39 = vpack.c.bf16 %v1708_v27, %v1692_v26  ;;  %v1836_v26 = vld [vmem:[#allocation10 + $0x1bc8] sm:$0xff]  ;;  %v1822_v27 = vld [vmem:[#allocation10 + $0x1b58] sm:$0xff] }
 0x3b8   :  { %5299 = vmatpush1.bf16.msra.mxu0 %v5298_v48  ;;  %v5440_v48 = vpack.c.bf16 %v1710_v33, %v1694_v32  ;;  %v1819_v32 = vld [vmem:[#allocation10 + $0x1b40] sm:$0xff] }
 0x3b9   :  { %5427 = vmatpush1.bf16.msra.mxu1 %v5426_v49  ;;  %5301 = vmatprep.subr.bf16.mxu0 %v5300_v50  ;;  %v1709_v49 = vld [vmem:[#allocation10 + $0x17d0] sm:$0xff]  ;;  %v1724_v50 = vld [vmem:[#allocation10 + $0x1848] sm:$0xff]  ;;  %v1835_v33 = vld [vmem:[#allocation10 + $0x1bc0] sm:$0xff] }
 0x3ba   :  { %5429 = vmatprep.subr.bf16.mxu1 %v5428_v54  ;;  %v5314_v54 = vpack.c.bf16 %v1707_v45, %v1691_v40  ;;  %v5442_v55 = vpack.c.bf16 %v1709_v49, %v1693_v46  ;;  %v5316_v56 = vpack.c.bf16 %v1740_v51, %v1724_v50  ;;  %v5330_v40 = vpack.c.bf16 %v1835_v33, %v1819_v32  ;;  %v1869_v50 = vld [vmem:[#allocation10 + $0x1cd0] sm:$0xff]  ;;  %v1884_v51 = vld [vmem:[#allocation10 + $0x1d48] sm:$0xff]  ;;  %v959_v33 = vld [vmem:[#allocation10 + $0x60] sm:$0xff] }
 0x3bc   :  { %5303 = vmatpush1.bf16.msra.mxu0 %v5302_v61  ;;  %v5444_v61 = vpack.c.bf16 %v1742_v43, %v1726_v52  ;;  %v1900_v52 = vld [vmem:[#allocation10 + $0x1dc8] sm:$0xff]  ;;  %v1886_v43 = vld [vmem:[#allocation10 + $0x1d58] sm:$0xff] }
 0x3bd   :  { %5431 = vmatpush1.bf16.msra.mxu1 %v5430_v63  ;;  %5305 = vmatprep.subr.bf16.mxu0 %v5304_v0  ;;  %v1756_v63 = vld [vmem:[#allocation10 + $0x1948] sm:$0xff]  ;;  %v5336_v58 = vpack.c.bf16 %v1900_v52, %v1884_v51 }
 0x3be   :  { %v2192_v22 = vpop.f32.mrb[4].mxu0  ;;  %v2334_v23 = vpop.f32.mrb[4].mxu1  ;;  %5433 = vmatprep.subr.bf16.mxu1 %v5432_v5  ;;  %v1772_v0 = vld [vmem:[#allocation10 + $0x19c8] sm:$0xff]  ;;  %v5446_v5 = vpack.c.bf16 %v1741_v62, %v1725_v60  ;;  %v1899_v60 = vld [vmem:[#allocation10 + $0x1dc0] sm:$0xff] }
 0x3bf   :  { %v5992_v28 = vadd.f32 %v2192_v22, %v1978_v10  ;;  %v5994_v29 = vadd.f32 %v2334_v23, %v1986_v11  ;;  %v2194_v30 = vpop.f32.mrb[5].mxu0  ;;  %v2336_v31 = vpop.f32.mrb[5].mxu1  ;;  %v5320_v6 = vpack.c.bf16 %v1772_v0, %v1756_v63  ;;  %v1757_v10 = vld [vmem:[#allocation10 + $0x1950] sm:$0xff]  ;;  %v5448_v11 = vpack.c.bf16 %v1774_v3, %v1758_v2  ;;  %v1916_v0 = vld [vmem:[#allocation10 + $0x1e48] sm:$0xff]  ;;  %v1918_v3 = vld [vmem:[#allocation10 + $0x1e58] sm:$0xff] }
 0x3c0   :  { %v5993_v34 = vadd.f32 %v2194_v30, %v1982_v14  ;;  %v5995_v35 = vadd.f32 %v2336_v31, %v1990_v15  ;;  %5307 = vmatpush1.bf16.msra.mxu0 %v5306_v16  ;;  %v1804_v14 = vld [vmem:[#allocation10 + $0x1ac8] sm:$0xff]  ;;  %v1790_v15 = vld [vmem:[#allocation10 + $0x1a58] sm:$0xff]  ;;  %v1789_v22 = vld [vmem:[#allocation10 + $0x1a50] sm:$0xff]  ;;  %v5328_v31 = vpack.c.bf16 %v1836_v26, %v1820_v25 }
 0x3c1   :  { %v3191_v37 = vmax.f32 %v5992_v28, 0.0  ;;  %v3193_v38 = vmax.f32 %v5994_v29, 0.0  ;;  %5435 = vmatpush1.bf16.msra.mxu1 %v5434_v17  ;;  %5309 = vmatprep.subr.bf16.mxu0 %v5308_v18  ;;  %v1806_v16 = vld [vmem:[#allocation10 + $0x1ad8] sm:$0xff]  ;;  %v5322_v17 = vpack.c.bf16 %v1771_v9, %v1755_v8  ;;  %v5450_v18 = vpack.c.bf16 %v1773_v12, %v1757_v10  ;;  %v1901_v63 = vld [vmem:[#allocation10 + $0x1dd0] sm:$0xff]  ;;  %v1932_v2 = vld [vmem:[#allocation10 + $0x1ec8] sm:$0xff] }
 0x3c2   :  { %v3192_v47 = vmax.f32 %v5993_v34, 0.0  ;;  %v3194_v57 = vmax.f32 %v5995_v35, 0.0  ;;  %5437 = vmatprep.subr.bf16.mxu1 %v5436_v24  ;;  %v5324_v19 = vpack.c.bf16 %v1804_v14, %v1788_v13  ;;  %v5452_v23 = vpack.c.bf16 %v1806_v16, %v1790_v15  ;;  %v1805_v24 = vld [vmem:[#allocation10 + $0x1ad0] sm:$0xff]  ;;  %v1838_v28 = vld [vmem:[#allocation10 + $0x1bd8] sm:$0xff]  ;;  %v1915_v9 = vld [vmem:[#allocation10 + $0x1e40] sm:$0xff] }
 0x3c3   :  { %3207 = vst [vmem:[#allocation19] sm:$0xff] %v3191_v37  ;;  %3209 = vst [vmem:[#allocation19 + $0x10] sm:$0xff] %v3193_v38  ;;  %v5326_v29 = vpack.c.bf16 %v1803_v21, %v1787_v20  ;;  %v5454_v30 = vpack.c.bf16 %v1805_v24, %v1789_v22  ;;  %v1821_v34 = vld [vmem:[#allocation10 + $0x1b50] sm:$0xff]  ;;  %v5456_v35 = vpack.c.bf16 %v1838_v28, %v1822_v27  ;;  %v1852_v37 = vld [vmem:[#allocation10 + $0x1c48] sm:$0xff] }
 0x3c4   :  { %3208 = vst [vmem:[#allocation19 + $0x8] sm:$0xff] %v3192_v47  ;;  %3210 = vst [vmem:[#allocation19 + $0x18] sm:$0xff] %v3194_v57  ;;  %5311 = vmatpush1.bf16.msra.mxu0 %v5310_v36  ;;  %v1837_v36 = vld [vmem:[#allocation10 + $0x1bd0] sm:$0xff]  ;;  %v1868_v38 = vld [vmem:[#allocation10 + $0x1cc8] sm:$0xff]  ;;  %v5340_v8 = vpack.c.bf16 %v1932_v2, %v1916_v0 }
 0x3c5   :  { %5439 = vmatpush1.bf16.msra.mxu1 %v5438_v53  ;;  %5313 = vmatprep.subr.bf16.mxu0 %v5312_v39  ;;  %v1854_v53 = vld [vmem:[#allocation10 + $0x1c58] sm:$0xff]  ;;  %v5458_v45 = vpack.c.bf16 %v1837_v36, %v1821_v34  ;;  %v5332_v46 = vpack.c.bf16 %v1868_v38, %v1852_v37  ;;  %v1851_v47 = vld [vmem:[#allocation10 + $0x1c40] sm:$0xff]  ;;  %v1933_v13 = vld [vmem:[#allocation10 + $0x1ed0] sm:$0xff] }
 0x3c6   :  { %5441 = vmatprep.subr.bf16.mxu1 %v5440_v48  ;;  %v1870_v39 = vld [vmem:[#allocation10 + $0x1cd8] sm:$0xff]  ;;  %v1867_v57 = vld [vmem:[#allocation10 + $0x1cc0] sm:$0xff]  ;;  %v1853_v48 = vld [vmem:[#allocation10 + $0x1c50] sm:$0xff] }
 0x3c7   :  { %v5460_v49 = vpack.c.bf16 %v1870_v39, %v1854_v53  ;;  %v1931_v10 = vld [vmem:[#allocation10 + $0x1ec0] sm:$0xff]  ;;  %v1948_v14 = vld [vmem:[#allocation10 + $0x1f48] sm:$0xff]  ;;  %v1950_v16 = vld [vmem:[#allocation10 + $0x1f58] sm:$0xff] }
 0x3c8   :  { %5315 = vmatpush1.bf16.msra.mxu0 %v5314_v54  ;;  %v1902_v54 = vld [vmem:[#allocation10 + $0x1dd8] sm:$0xff]  ;;  %v1964_v15 = vld [vmem:[#allocation10 + $0x1fc8] sm:$0xff]  ;;  %v1947_v21 = vld [vmem:[#allocation10 + $0x1f40] sm:$0xff] }
 0x3c9   :  { %5443 = vmatpush1.bf16.msra.mxu1 %v5442_v55  ;;  %5317 = vmatprep.subr.bf16.mxu0 %v5316_v56  ;;  %v5334_v55 = vpack.c.bf16 %v1867_v57, %v1851_v47  ;;  %v5462_v56 = vpack.c.bf16 %v1869_v50, %v1853_v48  ;;  %v5464_v62 = vpack.c.bf16 %v1902_v54, %v1886_v43  ;;  %v1963_v22 = vld [vmem:[#allocation10 + $0x1fc0] sm:$0xff]  ;;  %v1965_v25 = vld [vmem:[#allocation10 + $0x1fd0] sm:$0xff]  ;;  %v960_v26 = vld [vmem:[#allocation10 + $0x68] sm:$0xff] }
 0x3ca   :  { %5445 = vmatprep.subr.bf16.mxu1 %v5444_v61  ;;  %v1885_v61 = vld [vmem:[#allocation10 + $0x1d50] sm:$0xff]  ;;  %v5344_v20 = vpack.c.bf16 %v1964_v15, %v1948_v14  ;;  %v976_v27 = vld [vmem:[#allocation10 + $0xe8] sm:$0xff]  ;;  %v962_v28 = vld [vmem:[#allocation10 + $0x78] sm:$0xff] }
 0x3cb   :  { %v5476_v32 = vpack.c.bf16 %v976_v27, %v960_v26  ;;  %v975_v34 = vld [vmem:[#allocation10 + $0xe0] sm:$0xff]  ;;  %v961_v36 = vld [vmem:[#allocation10 + $0x70] sm:$0xff]  ;;  %v992_v38 = vld [vmem:[#allocation10 + $0x168] sm:$0xff] }
 0x3cc   :  { %5319 = vmatpush1.bf16.msra.mxu0 %v5318_v4  ;;  %v1934_v4 = vld [vmem:[#allocation10 + $0x1ed8] sm:$0xff]  ;;  %v977_v37 = vld [vmem:[#allocation10 + $0xf0] sm:$0xff]  ;;  %v1008_v53 = vld [vmem:[#allocation10 + $0x1e8] sm:$0xff]  ;;  %v5478_v39 = vpack.c.bf16 %v975_v34, %v959_v33 }
 0x3cd   :  { %5447 = vmatpush1.bf16.msra.mxu1 %v5446_v5  ;;  %5321 = vmatprep.subr.bf16.mxu0 %v5320_v6  ;;  %v5338_v5 = vpack.c.bf16 %v1899_v60, %v1883_v59  ;;  %v5466_v6 = vpack.c.bf16 %v1901_v63, %v1885_v61  ;;  %v5468_v12 = vpack.c.bf16 %v1934_v4, %v1918_v3  ;;  %v991_v47 = vld [vmem:[#allocation10 + $0x160] sm:$0xff]  ;;  %v993_v48 = vld [vmem:[#allocation10 + $0x170] sm:$0xff]  ;;  %v1024_v51 = vld [vmem:[#allocation10 + $0x268] sm:$0xff] }
 0x3ce   :  { %5449 = vmatprep.subr.bf16.mxu1 %v5448_v11  ;;  %v1917_v11 = vld [vmem:[#allocation10 + $0x1e50] sm:$0xff]  ;;  %v1007_v57 = vld [vmem:[#allocation10 + $0x1e0] sm:$0xff]  ;;  %v1040_v52 = vld [vmem:[#allocation10 + $0x2e8] sm:$0xff] }
 0x3cf   :  { %v1009_v50 = vld [vmem:[#allocation10 + $0x1f0] sm:$0xff]  ;;  %v6052_v43 = vld [vmem:[#allocation17 + $0x10] sm:$0xff]  ;;  %v6053_v59 = vld [vmem:[#allocation17 + $0x8] sm:$0xff]  ;;  %v5484_v61 = vpack.c.bf16 %v1040_v52, %v1024_v51 }
 0x3d0   :  { %5323 = vmatpush1.bf16.msra.mxu0 %v5322_v17  ;;  %v1966_v17 = vld [vmem:[#allocation10 + $0x1fd8] sm:$0xff]  ;;  %v5610_v60 = vpack.c.bf16 %v1009_v50, %v993_v48  ;;  %v1039_v63 = vld [vmem:[#allocation10 + $0x2e0] sm:$0xff]  ;;  %v1025_v0 = vld [vmem:[#allocation10 + $0x270] sm:$0xff] }
 0x3d1   :  { %5451 = vmatpush1.bf16.msra.mxu1 %v5450_v18  ;;  %5325 = vmatprep.subr.bf16.mxu0 %v5324_v19  ;;  %v5342_v18 = vpack.c.bf16 %v1931_v10, %v1915_v9  ;;  %v5470_v19 = vpack.c.bf16 %v1933_v13, %v1917_v11  ;;  %v5472_v24 = vpack.c.bf16 %v1966_v17, %v1950_v16  ;;  %v1041_v3 = vld [vmem:[#allocation10 + $0x2f0] sm:$0xff]  ;;  %v1056_v4 = vld [vmem:[#allocation10 + $0x368] sm:$0xff]  ;;  %v1071_v13 = vld [vmem:[#allocation10 + $0x3e0] sm:$0xff] }
 0x3d2   :  { %5453 = vmatprep.subr.bf16.mxu1 %v5452_v23  ;;  %v1949_v23 = vld [vmem:[#allocation10 + $0x1f50] sm:$0xff]  ;;  %v5614_v10 = vpack.c.bf16 %v1041_v3, %v1025_v0  ;;  %v1088_v17 = vld [vmem:[#allocation10 + $0x468] sm:$0xff]  ;;  %v1151_v50 = vld [vmem:[#allocation10 + $0x660] sm:$0xff] }
 0x3d3   :  { %v1057_v14 = vld [vmem:[#allocation10 + $0x370] sm:$0xff]  ;;  %v1167_v51 = vld [vmem:[#allocation10 + $0x6e0] sm:$0xff] }
 0x3d4   :  { %5327 = vmatpush1.bf16.msra.mxu0 %v5326_v29  ;;  %v978_v29 = vld [vmem:[#allocation10 + $0xf8] sm:$0xff]  ;;  %v1073_v16 = vld [vmem:[#allocation10 + $0x3f0] sm:$0xff]  ;;  %v1199_v0 = vld [vmem:[#allocation10 + $0x7e0] sm:$0xff] }
 0x3d5   :  { %5455 = vmatpush1.bf16.msra.mxu1 %v5454_v30  ;;  %5329 = vmatprep.subr.bf16.mxu0 %v5328_v31  ;;  %v5346_v30 = vpack.c.bf16 %v1963_v22, %v1947_v21  ;;  %v5474_v31 = vpack.c.bf16 %v1965_v25, %v1949_v23  ;;  %v5618_v22 = vpack.c.bf16 %v1073_v16, %v1057_v14  ;;  %v1103_v25 = vld [vmem:[#allocation10 + $0x4e0] sm:$0xff]  ;;  %v1089_v26 = vld [vmem:[#allocation10 + $0x470] sm:$0xff] }
 0x3d6   :  { %5457 = vmatprep.subr.bf16.mxu1 %v5456_v35  ;;  %v5604_v35 = vpack.c.bf16 %v978_v29, %v962_v28  ;;  %v1105_v28 = vld [vmem:[#allocation10 + $0x4f0] sm:$0xff]  ;;  %v1120_v29 = vld [vmem:[#allocation10 + $0x568] sm:$0xff]  ;;  %v1231_v14 = vld [vmem:[#allocation10 + $0x8e0] sm:$0xff] }
 0x3d7   :  { %v5622_v34 = vpack.c.bf16 %v1105_v28, %v1089_v26  ;;  %v1153_v52 = vld [vmem:[#allocation10 + $0x670] sm:$0xff]  ;;  %v1263_v26 = vld [vmem:[#allocation10 + $0x9e0] sm:$0xff] }
 0x3d8   :  { %5331 = vmatpush1.bf16.msra.mxu0 %v5330_v40  ;;  %v994_v40 = vld [vmem:[#allocation10 + $0x178] sm:$0xff] }
 0x3d9   :  { %5459 = vmatpush1.bf16.msra.mxu1 %v5458_v45  ;;  %5333 = vmatprep.subr.bf16.mxu0 %v5332_v46  ;;  %v1010_v45 = vld [vmem:[#allocation10 + $0x1f8] sm:$0xff]  ;;  %v5606_v46 = vpack.c.bf16 %v977_v37, %v961_v36  ;;  %v1119_v36 = vld [vmem:[#allocation10 + $0x560] sm:$0xff] }
 0x3da   :  { %5461 = vmatprep.subr.bf16.mxu1 %v5460_v49  ;;  %v5480_v49 = vpack.c.bf16 %v1008_v53, %v992_v38  ;;  %v5608_v54 = vpack.c.bf16 %v1010_v45, %v994_v40  ;;  %v1135_v37 = vld [vmem:[#allocation10 + $0x5e0] sm:$0xff]  ;;  %v1121_v38 = vld [vmem:[#allocation10 + $0x570] sm:$0xff]  ;;  %v1152_v40 = vld [vmem:[#allocation10 + $0x668] sm:$0xff] }
 0x3db   :  { %v1168_v45 = vld [vmem:[#allocation10 + $0x6e8] sm:$0xff] }
 0x3dc   :  { %5335 = vmatpush1.bf16.msra.mxu0 %v5334_v55  ;;  %v1026_v55 = vld [vmem:[#allocation10 + $0x278] sm:$0xff] }
 0x3dd   :  { %5463 = vmatpush1.bf16.msra.mxu1 %v5462_v56  ;;  %5337 = vmatprep.subr.bf16.mxu0 %v5336_v58  ;;  %v1042_v56 = vld [vmem:[#allocation10 + $0x2f8] sm:$0xff]  ;;  %v5482_v58 = vpack.c.bf16 %v1007_v57, %v991_v47  ;;  %v5498_v57 = vpack.c.bf16 %v1135_v37, %v1119_v36  ;;  %v1279_v37 = vld [vmem:[#allocation10 + $0xa60] sm:$0xff] }
 0x3de   :  { %5465 = vmatprep.subr.bf16.mxu1 %v5464_v62  ;;  %v1023_v62 = vld [vmem:[#allocation10 + $0x260] sm:$0xff]  ;;  %v5612_v2 = vpack.c.bf16 %v1042_v56, %v1026_v55  ;;  %v1170_v47 = vld [vmem:[#allocation10 + $0x6f8] sm:$0xff]  ;;  %v1184_v55 = vld [vmem:[#allocation10 + $0x768] sm:$0xff] }
 0x3df   :  { %v5486_v9 = vpack.c.bf16 %v1039_v63, %v1023_v62  ;;  %v1200_v56 = vld [vmem:[#allocation10 + $0x7e8] sm:$0xff]  ;;  %v1183_v63 = vld [vmem:[#allocation10 + $0x760] sm:$0xff] }
 0x3e0   :  { %5339 = vmatpush1.bf16.msra.mxu0 %v5338_v5  ;;  %v1072_v5 = vld [vmem:[#allocation10 + $0x3e8] sm:$0xff]  ;;  %v5504_v62 = vpack.c.bf16 %v1200_v56, %v1184_v55  ;;  %v1329_v55 = vld [vmem:[#allocation10 + $0xbf0] sm:$0xff] }
 0x3e1   :  { %5467 = vmatpush1.bf16.msra.mxu1 %v5466_v6  ;;  %5341 = vmatprep.subr.bf16.mxu0 %v5340_v8  ;;  %v1058_v6 = vld [vmem:[#allocation10 + $0x378] sm:$0xff]  ;;  %v5488_v11 = vpack.c.bf16 %v1072_v5, %v1056_v4  ;;  %v1201_v4 = vld [vmem:[#allocation10 + $0x7f0] sm:$0xff]  ;;  %v1216_v5 = vld [vmem:[#allocation10 + $0x868] sm:$0xff] }
 0x3e2   :  { %5469 = vmatprep.subr.bf16.mxu1 %v5468_v12  ;;  %v1074_v8 = vld [vmem:[#allocation10 + $0x3f8] sm:$0xff]  ;;  %v1055_v12 = vld [vmem:[#allocation10 + $0x360] sm:$0xff]  ;;  %v1344_v56 = vld [vmem:[#allocation10 + $0xc68] sm:$0xff] }
 0x3e3   :  { %v5616_v15 = vpack.c.bf16 %v1074_v8, %v1058_v6  ;;  %v5490_v21 = vpack.c.bf16 %v1071_v13, %v1055_v12  ;;  %v1232_v6 = vld [vmem:[#allocation10 + $0x8e8] sm:$0xff]  ;;  %v1218_v8 = vld [vmem:[#allocation10 + $0x878] sm:$0xff]  ;;  %v1215_v13 = vld [vmem:[#allocation10 + $0x860] sm:$0xff] }
 0x3e4   :  { %5343 = vmatpush1.bf16.msra.mxu0 %v5342_v18  ;;  %v1104_v18 = vld [vmem:[#allocation10 + $0x4e8] sm:$0xff]  ;;  %v5508_v12 = vpack.c.bf16 %v1232_v6, %v1216_v5  ;;  %v1361_v5 = vld [vmem:[#allocation10 + $0xcf0] sm:$0xff] }
 0x3e5   :  { %5471 = vmatpush1.bf16.msra.mxu1 %v5470_v19  ;;  %5345 = vmatprep.subr.bf16.mxu0 %v5344_v20  ;;  %v1090_v19 = vld [vmem:[#allocation10 + $0x478] sm:$0xff]  ;;  %v5492_v23 = vpack.c.bf16 %v1104_v18, %v1088_v17  ;;  %v1233_v17 = vld [vmem:[#allocation10 + $0x8f0] sm:$0xff]  ;;  %v1248_v18 = vld [vmem:[#allocation10 + $0x968] sm:$0xff] }
 0x3e6   :  { %5473 = vmatprep.subr.bf16.mxu1 %v5472_v24  ;;  %v1106_v20 = vld [vmem:[#allocation10 + $0x4f8] sm:$0xff]  ;;  %v1087_v24 = vld [vmem:[#allocation10 + $0x460] sm:$0xff]  ;;  %v1376_v6 = vld [vmem:[#allocation10 + $0xd68] sm:$0xff] }
 0x3e7   :  { %v5620_v27 = vpack.c.bf16 %v1106_v20, %v1090_v19  ;;  %v5494_v33 = vpack.c.bf16 %v1103_v25, %v1087_v24  ;;  %v1264_v19 = vld [vmem:[#allocation10 + $0x9e8] sm:$0xff]  ;;  %v1250_v20 = vld [vmem:[#allocation10 + $0x978] sm:$0xff]  ;;  %v1247_v25 = vld [vmem:[#allocation10 + $0x960] sm:$0xff] }
 0x3e8   :  { %5347 = vmatpush1.bf16.msra.mxu0 %v5346_v30  ;;  %v1136_v30 = vld [vmem:[#allocation10 + $0x5e8] sm:$0xff]  ;;  %v5512_v24 = vpack.c.bf16 %v1264_v19, %v1248_v18  ;;  %v1393_v18 = vld [vmem:[#allocation10 + $0xdf0] sm:$0xff] }
 0x3e9   :  { %5475 = vmatpush1.bf16.msra.mxu1 %v5474_v31  ;;  %5477 = vmatprep.subr.bf16.mxu0 %v5476_v32  ;;  %v1122_v31 = vld [vmem:[#allocation10 + $0x578] sm:$0xff]  ;;  %v1408_v19 = vld [vmem:[#allocation10 + $0xe68] sm:$0xff] }
 0x3ea   :  { %5605 = vmatprep.subr.bf16.mxu1 %v5604_v35  ;;  %v1138_v32 = vld [vmem:[#allocation10 + $0x5f8] sm:$0xff]  ;;  %v5496_v35 = vpack.c.bf16 %v1136_v30, %v1120_v29  ;;  %v1265_v29 = vld [vmem:[#allocation10 + $0x9f0] sm:$0xff]  ;;  %v1280_v30 = vld [vmem:[#allocation10 + $0xa68] sm:$0xff] }
 0x3eb   :  { %2759 = vmatmul.mubr.f32.vlgmr.msra.gmra.mrb[8].mxu0 %v6052_v43  ;;  %v5624_v53 = vpack.c.bf16 %v1138_v32, %v1122_v31  ;;  %v1296_v31 = vld [vmem:[#allocation10 + $0xae8] sm:$0xff]  ;;  %v1282_v32 = vld [vmem:[#allocation10 + $0xa78] sm:$0xff] }
 0x3ec   :  { %2901 = vmatmul.mubr.f32.vlgmr.msra.gmra.mrb[8].mxu1 %v6052_v43  ;;  %5479 = vmatpush1.bf16.msra.mxu0 %v5478_v39  ;;  %v1137_v39 = vld [vmem:[#allocation10 + $0x5f0] sm:$0xff]  ;;  %v5516_v36 = vpack.c.bf16 %v1296_v31, %v1280_v30  ;;  %v1440_v31 = vld [vmem:[#allocation10 + $0xf68] sm:$0xff] }
 0x3ed   :  { %2971 = vmatprep.mubr.f32.mxu0 %v6053_v59  ;;  %5607 = vmatpush1.bf16.msra.mxu1 %v5606_v46  ;;  %v1154_v46 = vld [vmem:[#allocation10 + $0x678] sm:$0xff]  ;;  %v5626_v48 = vpack.c.bf16 %v1137_v39, %v1121_v38  ;;  %v1295_v38 = vld [vmem:[#allocation10 + $0xae0] sm:$0xff]  ;;  %v1425_v30 = vld [vmem:[#allocation10 + $0xef0] sm:$0xff] }
 0x3ee   :  { %3113 = vmatprep.mubr.f32.mxu1 %v6053_v59  ;;  %5481 = vmatprep.subr.bf16.mxu0 %v5480_v49  ;;  %v5500_v49 = vpack.c.bf16 %v1168_v45, %v1152_v40  ;;  %v5628_v43 = vpack.c.bf16 %v1170_v47, %v1154_v46  ;;  %v1202_v59 = vld [vmem:[#allocation10 + $0x7f8] sm:$0xff]  ;;  %v1297_v40 = vld [vmem:[#allocation10 + $0xaf0] sm:$0xff]  ;;  %v1312_v45 = vld [vmem:[#allocation10 + $0xb68] sm:$0xff] }
 0x3ef   :  { %5609 = vmatprep.subr.bf16.mxu1 %v5608_v54  ;;  %v1169_v54 = vld [vmem:[#allocation10 + $0x6f0] sm:$0xff]  ;;  %v1328_v46 = vld [vmem:[#allocation10 + $0xbe8] sm:$0xff]  ;;  %v1314_v47 = vld [vmem:[#allocation10 + $0xb78] sm:$0xff] }
 0x3f0   :  { %5483 = vmatpush1.bf16.msra.mxu0 %v5482_v58  ;;  %v1186_v58 = vld [vmem:[#allocation10 + $0x778] sm:$0xff] }
 0x3f1   :  { %5611 = vmatpush1.bf16.msra.mxu1 %v5610_v60  ;;  %5485 = vmatprep.subr.bf16.mxu0 %v5484_v61  ;;  %v5502_v60 = vpack.c.bf16 %v1167_v51, %v1151_v50  ;;  %v5630_v61 = vpack.c.bf16 %v1169_v54, %v1153_v52  ;;  %v5632_v3 = vpack.c.bf16 %v1202_v59, %v1186_v58  ;;  %v1311_v51 = vld [vmem:[#allocation10 + $0xb60] sm:$0xff]  ;;  %v1360_v58 = vld [vmem:[#allocation10 + $0xce8] sm:$0xff]  ;;  %v1346_v59 = vld [vmem:[#allocation10 + $0xc78] sm:$0xff] }
 0x3f2   :  { %5613 = vmatprep.subr.bf16.mxu1 %v5612_v2  ;;  %v1185_v2 = vld [vmem:[#allocation10 + $0x770] sm:$0xff]  ;;  %v5520_v50 = vpack.c.bf16 %v1328_v46, %v1312_v45  ;;  %v1327_v52 = vld [vmem:[#allocation10 + $0xbe0] sm:$0xff]  ;;  %v1472_v46 = vld [vmem:[#allocation10 + $0x1068] sm:$0xff] }
 0x3f3   :  { %v1457_v45 = vld [vmem:[#allocation10 + $0xff0] sm:$0xff] }
 0x3f4   :  { %5487 = vmatpush1.bf16.msra.mxu0 %v5486_v9  ;;  %v1234_v9 = vld [vmem:[#allocation10 + $0x8f8] sm:$0xff] }
 0x3f5   :  { %5615 = vmatpush1.bf16.msra.mxu1 %v5614_v10  ;;  %5489 = vmatprep.subr.bf16.mxu0 %v5488_v11  ;;  %v5506_v10 = vpack.c.bf16 %v1199_v0, %v1183_v63  ;;  %v5634_v11 = vpack.c.bf16 %v1201_v4, %v1185_v2  ;;  %v5636_v16 = vpack.c.bf16 %v1234_v9, %v1218_v8  ;;  %v1343_v0 = vld [vmem:[#allocation10 + $0xc60] sm:$0xff]  ;;  %v1392_v8 = vld [vmem:[#allocation10 + $0xde8] sm:$0xff]  ;;  %v1378_v9 = vld [vmem:[#allocation10 + $0xd78] sm:$0xff] }
 0x3f6   :  { %5617 = vmatprep.subr.bf16.mxu1 %v5616_v15  ;;  %v1217_v15 = vld [vmem:[#allocation10 + $0x870] sm:$0xff]  ;;  %v5524_v63 = vpack.c.bf16 %v1360_v58, %v1344_v56  ;;  %v1359_v2 = vld [vmem:[#allocation10 + $0xce0] sm:$0xff]  ;;  %v1504_v58 = vld [vmem:[#allocation10 + $0x1168] sm:$0xff] }
 0x3f7   :  { %v1489_v56 = vld [vmem:[#allocation10 + $0x10f0] sm:$0xff] }
 0x3f8   :  { %5491 = vmatpush1.bf16.msra.mxu0 %v5490_v21  ;;  %v1266_v21 = vld [vmem:[#allocation10 + $0x9f8] sm:$0xff] }
 0x3f9   :  { %5619 = vmatpush1.bf16.msra.mxu1 %v5618_v22  ;;  %5493 = vmatprep.subr.bf16.mxu0 %v5492_v23  ;;  %v5510_v22 = vpack.c.bf16 %v1231_v14, %v1215_v13  ;;  %v5638_v23 = vpack.c.bf16 %v1233_v17, %v1217_v15  ;;  %v5640_v28 = vpack.c.bf16 %v1266_v21, %v1250_v20  ;;  %v1375_v14 = vld [vmem:[#allocation10 + $0xd60] sm:$0xff]  ;;  %v1424_v20 = vld [vmem:[#allocation10 + $0xee8] sm:$0xff]  ;;  %v1410_v21 = vld [vmem:[#allocation10 + $0xe78] sm:$0xff] }
 0x3fa   :  { %5621 = vmatprep.subr.bf16.mxu1 %v5620_v27  ;;  %v1249_v27 = vld [vmem:[#allocation10 + $0x970] sm:$0xff]  ;;  %v5528_v13 = vpack.c.bf16 %v1392_v8, %v1376_v6  ;;  %v1391_v15 = vld [vmem:[#allocation10 + $0xde0] sm:$0xff]  ;;  %v1536_v6 = vld [vmem:[#allocation10 + $0x1268] sm:$0xff] }
 0x3fb   :  { %v1552_v8 = vld [vmem:[#allocation10 + $0x12e8] sm:$0xff] }
 0x3fc   :  { %5495 = vmatpush1.bf16.msra.mxu0 %v5494_v33  ;;  %v1298_v33 = vld [vmem:[#allocation10 + $0xaf8] sm:$0xff] }
 0x3fd   :  { %5623 = vmatpush1.bf16.msra.mxu1 %v5622_v34  ;;  %5497 = vmatprep.subr.bf16.mxu0 %v5496_v35  ;;  %v5514_v34 = vpack.c.bf16 %v1263_v26, %v1247_v25  ;;  %v5642_v35 = vpack.c.bf16 %v1265_v29, %v1249_v27  ;;  %v5644_v39 = vpack.c.bf16 %v1298_v33, %v1282_v32  ;;  %v1407_v26 = vld [vmem:[#allocation10 + $0xe60] sm:$0xff]  ;;  %v1456_v32 = vld [vmem:[#allocation10 + $0xfe8] sm:$0xff]  ;;  %v1442_v33 = vld [vmem:[#allocation10 + $0xf78] sm:$0xff] }
 0x3fe   :  { %5625 = vmatprep.subr.bf16.mxu1 %v5624_v53  ;;  %v1281_v53 = vld [vmem:[#allocation10 + $0xa70] sm:$0xff]  ;;  %v5532_v25 = vpack.c.bf16 %v1424_v20, %v1408_v19  ;;  %v1423_v27 = vld [vmem:[#allocation10 + $0xee0] sm:$0xff] }
 0x3ff   :  { %v1537_v19 = vld [vmem:[#allocation10 + $0x1270] sm:$0xff] }
 0x400   :  { %5499 = vmatpush1.bf16.msra.mxu0 %v5498_v57  ;;  %v1330_v57 = vld [vmem:[#allocation10 + $0xbf8] sm:$0xff] }
 0x401   :  { %5627 = vmatpush1.bf16.msra.mxu1 %v5626_v48  ;;  %5501 = vmatprep.subr.bf16.mxu0 %v5500_v49  ;;  %v5518_v48 = vpack.c.bf16 %v1295_v38, %v1279_v37  ;;  %v5646_v49 = vpack.c.bf16 %v1297_v40, %v1281_v53  ;;  %v5648_v54 = vpack.c.bf16 %v1330_v57, %v1314_v47  ;;  %v1439_v38 = vld [vmem:[#allocation10 + $0xf60] sm:$0xff]  ;;  %v1488_v47 = vld [vmem:[#allocation10 + $0x10e8] sm:$0xff]  ;;  %v1474_v57 = vld [vmem:[#allocation10 + $0x1078] sm:$0xff] }
 0x402   :  { %5629 = vmatprep.subr.bf16.mxu1 %v5628_v43  ;;  %v1313_v43 = vld [vmem:[#allocation10 + $0xb70] sm:$0xff]  ;;  %v5536_v37 = vpack.c.bf16 %v1456_v32, %v1440_v31  ;;  %v1455_v53 = vld [vmem:[#allocation10 + $0xfe0] sm:$0xff] }
 0x403   :  { %v1569_v31 = vld [vmem:[#allocation10 + $0x1370] sm:$0xff] }
 0x404   :  { %5503 = vmatpush1.bf16.msra.mxu0 %v5502_v60  ;;  %v1362_v60 = vld [vmem:[#allocation10 + $0xcf8] sm:$0xff] }
 0x405   :  { %5631 = vmatpush1.bf16.msra.mxu1 %v5630_v61  ;;  %5505 = vmatprep.subr.bf16.mxu0 %v5504_v62  ;;  %v5522_v61 = vpack.c.bf16 %v1327_v52, %v1311_v51  ;;  %v5650_v62 = vpack.c.bf16 %v1329_v55, %v1313_v43  ;;  %v5652_v4 = vpack.c.bf16 %v1362_v60, %v1346_v59  ;;  %v1471_v52 = vld [vmem:[#allocation10 + $0x1060] sm:$0xff]  ;;  %v1473_v55 = vld [vmem:[#allocation10 + $0x1070] sm:$0xff]  ;;  %v1520_v59 = vld [vmem:[#allocation10 + $0x11e8] sm:$0xff] }
 0x406   :  { %5633 = vmatprep.subr.bf16.mxu1 %v5632_v3  ;;  %v1345_v3 = vld [vmem:[#allocation10 + $0xc70] sm:$0xff]  ;;  %v5540_v51 = vpack.c.bf16 %v1488_v47, %v1472_v46  ;;  %v1487_v43 = vld [vmem:[#allocation10 + $0x10e0] sm:$0xff] }
 0x407   :  { %v5542_v60 = vpack.c.bf16 %v1487_v43, %v1471_v52  ;;  %v1601_v46 = vld [vmem:[#allocation10 + $0x1470] sm:$0xff]  ;;  %v1650_v52 = vld [vmem:[#allocation10 + $0x15f8] sm:$0xff] }
 0x408   :  { %5507 = vmatpush1.bf16.msra.mxu0 %v5506_v10  ;;  %v1394_v10 = vld [vmem:[#allocation10 + $0xdf8] sm:$0xff] }
 0x409   :  { %5635 = vmatpush1.bf16.msra.mxu1 %v5634_v11  ;;  %5509 = vmatprep.subr.bf16.mxu0 %v5508_v12  ;;  %v5526_v11 = vpack.c.bf16 %v1359_v2, %v1343_v0  ;;  %v5654_v12 = vpack.c.bf16 %v1361_v5, %v1345_v3  ;;  %v5656_v17 = vpack.c.bf16 %v1394_v10, %v1378_v9  ;;  %v1503_v0 = vld [vmem:[#allocation10 + $0x1160] sm:$0xff]  ;;  %v1505_v3 = vld [vmem:[#allocation10 + $0x1170] sm:$0xff] }
 0x40a   :  { %5637 = vmatprep.subr.bf16.mxu1 %v5636_v16  ;;  %v1377_v16 = vld [vmem:[#allocation10 + $0xd70] sm:$0xff]  ;;  %v1519_v2 = vld [vmem:[#allocation10 + $0x11e0] sm:$0xff] }
 0x40b   :  { %v1521_v5 = vld [vmem:[#allocation10 + $0x11f0] sm:$0xff] }
 0x40c   :  { %5511 = vmatpush1.bf16.msra.mxu0 %v5510_v22  ;;  %v1426_v22 = vld [vmem:[#allocation10 + $0xef8] sm:$0xff] }
 0x40d   :  { %5639 = vmatpush1.bf16.msra.mxu1 %v5638_v23  ;;  %5513 = vmatprep.subr.bf16.mxu0 %v5512_v24  ;;  %v5530_v23 = vpack.c.bf16 %v1391_v15, %v1375_v14  ;;  %v5658_v24 = vpack.c.bf16 %v1393_v18, %v1377_v16  ;;  %v5660_v29 = vpack.c.bf16 %v1426_v22, %v1410_v21  ;;  %v6054_v9 = vld [vmem:[#allocation17] sm:$0xff]  ;;  %v6055_v14 = vld [vmem:[#allocation17 + $0x18] sm:$0xff]  ;;  %v1551_v18 = vld [vmem:[#allocation10 + $0x12e0] sm:$0xff] }
 0x40e   :  { %5641 = vmatprep.subr.bf16.mxu1 %v5640_v28  ;;  %v1409_v28 = vld [vmem:[#allocation10 + $0xe70] sm:$0xff]  ;;  %v5674_v15 = vpack.c.bf16 %v1521_v5, %v1505_v3  ;;  %v5548_v16 = vpack.c.bf16 %v1552_v8, %v1536_v6  ;;  %v1568_v22 = vld [vmem:[#allocation10 + $0x1368] sm:$0xff]  ;;  %v1666_v6 = vld [vmem:[#allocation10 + $0x1678] sm:$0xff] }
 0x40f   :  { %v1553_v21 = vld [vmem:[#allocation10 + $0x12f0] sm:$0xff]  ;;  %v1680_v3 = vld [vmem:[#allocation10 + $0x16e8] sm:$0xff]  ;;  %v1682_v8 = vld [vmem:[#allocation10 + $0x16f8] sm:$0xff] }
 0x410   :  { %5515 = vmatpush1.bf16.msra.mxu0 %v5514_v34  ;;  %v1458_v34 = vld [vmem:[#allocation10 + $0xff8] sm:$0xff] }
 0x411   :  { %5643 = vmatpush1.bf16.msra.mxu1 %v5642_v35  ;;  %5517 = vmatprep.subr.bf16.mxu0 %v5516_v36  ;;  %v5534_v35 = vpack.c.bf16 %v1423_v27, %v1407_v26  ;;  %v5662_v36 = vpack.c.bf16 %v1425_v30, %v1409_v28  ;;  %v5664_v40 = vpack.c.bf16 %v1458_v34, %v1442_v33  ;;  %v1583_v30 = vld [vmem:[#allocation10 + $0x13e0] sm:$0xff]  ;;  %v1585_v33 = vld [vmem:[#allocation10 + $0x13f0] sm:$0xff]  ;;  %v1600_v34 = vld [vmem:[#allocation10 + $0x1468] sm:$0xff] }
 0x412   :  { %5645 = vmatprep.subr.bf16.mxu1 %v5644_v39  ;;  %v1441_v39 = vld [vmem:[#allocation10 + $0xf70] sm:$0xff]  ;;  %v5678_v27 = vpack.c.bf16 %v1553_v21, %v1537_v19  ;;  %v5692_v19 = vpack.c.bf16 %v1682_v8, %v1666_v6  ;;  %v1696_v21 = vld [vmem:[#allocation10 + $0x1768] sm:$0xff]  ;;  %v1759_v8 = vld [vmem:[#allocation10 + $0x1960] sm:$0xff] }
 0x414   :  { %5519 = vmatpush1.bf16.msra.mxu0 %v5518_v48  ;;  %v1490_v48 = vld [vmem:[#allocation10 + $0x10f8] sm:$0xff] }
 0x415   :  { %5647 = vmatpush1.bf16.msra.mxu1 %v5646_v49  ;;  %5521 = vmatprep.subr.bf16.mxu0 %v5520_v50  ;;  %v5538_v49 = vpack.c.bf16 %v1455_v53, %v1439_v38  ;;  %v5666_v50 = vpack.c.bf16 %v1457_v45, %v1441_v39  ;;  %v5682_v53 = vpack.c.bf16 %v1585_v33, %v1569_v31  ;;  %v1615_v45 = vld [vmem:[#allocation10 + $0x14e0] sm:$0xff] }
 0x416   :  { %5649 = vmatprep.subr.bf16.mxu1 %v5648_v54  ;;  %v5668_v54 = vpack.c.bf16 %v1490_v48, %v1474_v57  ;;  %v1617_v57 = vld [vmem:[#allocation10 + $0x14f0] sm:$0xff]  ;;  %v1632_v48 = vld [vmem:[#allocation10 + $0x1568] sm:$0xff] }
 0x418   :  { %5523 = vmatpush1.bf16.msra.mxu0 %v5522_v61  ;;  %v1506_v61 = vld [vmem:[#allocation10 + $0x1178] sm:$0xff] }
 0x419   :  { %5651 = vmatpush1.bf16.msra.mxu1 %v5650_v62  ;;  %5525 = vmatprep.subr.bf16.mxu0 %v5524_v63  ;;  %v1522_v62 = vld [vmem:[#allocation10 + $0x11f8] sm:$0xff]  ;;  %v5670_v63 = vpack.c.bf16 %v1489_v56, %v1473_v55  ;;  %v1997_v55 = vsub.s32 5, %v6542_v41  ;;  %v5686_v56 = vpack.c.bf16 %v1617_v57, %v1601_v46  ;;  %v1728_v46 = vld [vmem:[#allocation10 + $0x1868] sm:$0xff] }
 0x41a   :  { %5653 = vmatprep.subr.bf16.mxu1 %v5652_v4  ;;  %v5544_v4 = vpack.c.bf16 %v1520_v59, %v1504_v58  ;;  %v5672_v10 = vpack.c.bf16 %v1522_v62, %v1506_v61  ;;  %v2005_v58 = vsub.s32 7, %v6542_v41  ;;  %v1647_v61 = vld [vmem:[#allocation10 + $0x15e0] sm:$0xff]  ;;  %v1633_v62 = vld [vmem:[#allocation10 + $0x1570] sm:$0xff] }
 0x41c   :  { %5527 = vmatpush1.bf16.msra.mxu0 %v5526_v11  ;;  %v1538_v11 = vld [vmem:[#allocation10 + $0x1278] sm:$0xff] }
 0x41d   :  { %5655 = vmatpush1.bf16.msra.mxu1 %v5654_v12  ;;  %5529 = vmatprep.subr.bf16.mxu0 %v5528_v13  ;;  %v1554_v12 = vld [vmem:[#allocation10 + $0x12f8] sm:$0xff]  ;;  %v5546_v13 = vpack.c.bf16 %v1519_v2, %v1503_v0  ;;  %v1649_v0 = vld [vmem:[#allocation10 + $0x15f0] sm:$0xff]  ;;  %v1664_v2 = vld [vmem:[#allocation10 + $0x1668] sm:$0xff] }
 0x41e   :  { %5657 = vmatprep.subr.bf16.mxu1 %v5656_v17  ;;  %v1535_v17 = vld [vmem:[#allocation10 + $0x1260] sm:$0xff]  ;;  %v5676_v20 = vpack.c.bf16 %v1554_v12, %v1538_v11 }
 0x41f   :  { %v5550_v26 = vpack.c.bf16 %v1551_v18, %v1535_v17  ;;  %v1665_v17 = vld [vmem:[#allocation10 + $0x1670] sm:$0xff] }
 0x420   :  { %5531 = vmatpush1.bf16.msra.mxu0 %v5530_v23  ;;  %v1584_v23 = vld [vmem:[#allocation10 + $0x13e8] sm:$0xff] }
 0x421   :  { %5659 = vmatpush1.bf16.msra.mxu1 %v5658_v24  ;;  %5533 = vmatprep.subr.bf16.mxu0 %v5532_v25  ;;  %v1570_v24 = vld [vmem:[#allocation10 + $0x1378] sm:$0xff]  ;;  %v5552_v28 = vpack.c.bf16 %v1584_v23, %v1568_v22  ;;  %v1712_v22 = vld [vmem:[#allocation10 + $0x17e8] sm:$0xff] }
 0x422   :  { %5661 = vmatprep.subr.bf16.mxu1 %v5660_v29  ;;  %v1586_v25 = vld [vmem:[#allocation10 + $0x13f8] sm:$0xff]  ;;  %v1567_v29 = vld [vmem:[#allocation10 + $0x1360] sm:$0xff] }
 0x423   :  { %v5680_v32 = vpack.c.bf16 %v1586_v25, %v1570_v24  ;;  %v5554_v38 = vpack.c.bf16 %v1583_v30, %v1567_v29 }
 0x424   :  { %5535 = vmatpush1.bf16.msra.mxu0 %v5534_v35  ;;  %v1616_v35 = vld [vmem:[#allocation10 + $0x14e8] sm:$0xff] }
 0x425   :  { %5663 = vmatpush1.bf16.msra.mxu1 %v5662_v36  ;;  %5537 = vmatprep.subr.bf16.mxu0 %v5536_v37  ;;  %v1602_v36 = vld [vmem:[#allocation10 + $0x1478] sm:$0xff]  ;;  %v5556_v39 = vpack.c.bf16 %v1616_v35, %v1600_v34  ;;  %v5568_v35 = vpack.c.bf16 %v1712_v22, %v1696_v21  ;;  %v1807_v21 = vld [vmem:[#allocation10 + $0x1ae0] sm:$0xff]  ;;  %v1793_v22 = vld [vmem:[#allocation10 + $0x1a70] sm:$0xff] }
 0x426   :  { %5665 = vmatprep.subr.bf16.mxu1 %v5664_v40  ;;  %v1618_v37 = vld [vmem:[#allocation10 + $0x14f8] sm:$0xff]  ;;  %v1599_v40 = vld [vmem:[#allocation10 + $0x1460] sm:$0xff] }
 0x427   :  { %v5684_v47 = vpack.c.bf16 %v1618_v37, %v1602_v36  ;;  %v5558_v43 = vpack.c.bf16 %v1615_v45, %v1599_v40  ;;  %v1695_v36 = vld [vmem:[#allocation10 + $0x1760] sm:$0xff]  ;;  %v1713_v45 = vld [vmem:[#allocation10 + $0x17f0] sm:$0xff] }
 0x428   :  { %5539 = vmatpush1.bf16.msra.mxu0 %v5538_v49  ;;  %v1648_v49 = vld [vmem:[#allocation10 + $0x15e8] sm:$0xff]  ;;  %v1711_v37 = vld [vmem:[#allocation10 + $0x17e0] sm:$0xff] }
 0x429   :  { %5667 = vmatpush1.bf16.msra.mxu1 %v5666_v50  ;;  %5541 = vmatprep.subr.bf16.mxu0 %v5540_v51  ;;  %v1993_v50 = vsub.s32 4, %v6542_v41  ;;  %v1634_v51 = vld [vmem:[#allocation10 + $0x1578] sm:$0xff]  ;;  %v5560_v59 = vpack.c.bf16 %v1648_v49, %v1632_v48 }
 0x42a   :  { %5669 = vmatprep.subr.bf16.mxu1 %v5668_v54  ;;  %v2001_v54 = vsub.s32 6, %v6542_v41  ;;  %v1730_v48 = vld [vmem:[#allocation10 + $0x1878] sm:$0xff] }
 0x42b   :  { %2972 = vmatmul.mubr.f32.vlgmr.msra.gmra.mrb[10].mxu0 %v6054_v9  ;;  %v1746_v49 = vld [vmem:[#allocation10 + $0x18f8] sm:$0xff] }
 0x42c   :  { %3114 = vmatmul.mubr.f32.vlgmr.msra.gmra.mrb[10].mxu1 %v6054_v9  ;;  %5543 = vmatpush1.bf16.msra.mxu0 %v5542_v60  ;;  %v1631_v60 = vld [vmem:[#allocation10 + $0x1560] sm:$0xff] }
 0x42d   :  { %3042 = vmatprep.mubr.f32.mxu0 %v6055_v14  ;;  %5671 = vmatpush1.bf16.msra.mxu1 %v5670_v63  ;;  %v5688_v63 = vpack.c.bf16 %v1650_v52, %v1634_v51  ;;  %v5562_v11 = vpack.c.bf16 %v1647_v61, %v1631_v60  ;;  %v5570_v51 = vpack.c.bf16 %v1711_v37, %v1695_v36  ;;  %v1729_v60 = vld [vmem:[#allocation10 + $0x1870] sm:$0xff]  ;;  %v1823_v37 = vld [vmem:[#allocation10 + $0x1b60] sm:$0xff] }
 0x42e   :  { %3184 = vmatprep.mubr.f32.mxu1 %v6055_v14  ;;  %5545 = vmatprep.subr.bf16.mxu0 %v5544_v4  ;;  %v6056_v4 = vld [vmem:[#allocation11] sm:$0xff]  ;;  %v5564_v14 = vpack.c.bf16 %v1680_v3, %v1664_v2  ;;  %v5700_v61 = vpack.c.bf16 %v1746_v49, %v1730_v48  ;;  %v1762_v2 = vld [vmem:[#allocation10 + $0x1978] sm:$0xff]  ;;  %v1872_v48 = vld [vmem:[#allocation10 + $0x1ce8] sm:$0xff] }
 0x42f   :  { %5673 = vmatprep.subr.bf16.mxu1 %v5672_v10  ;;  %v1994_v5 = vrot.slane %v6056_v4, %v1993_v50  ;;  %v2002_v9 = vrot.slane %v6056_v4, %v2001_v54  ;;  %v1998_v10 = vrot.slane %v6056_v4, %v1997_v55  ;;  %v2006_v12 = vrot.slane %v6056_v4, %v2005_v58  ;;  %v1778_v3 = vld [vmem:[#allocation10 + $0x19f8] sm:$0xff] }
 0x430   :  { %5547 = vmatpush1.bf16.msra.mxu0 %v5546_v13  ;;  %v5690_v13 = vpack.c.bf16 %v1649_v0, %v1633_v62  ;;  %v1745_v62 = vld [vmem:[#allocation10 + $0x18f0] sm:$0xff]  ;;  %v1776_v0 = vld [vmem:[#allocation10 + $0x19e8] sm:$0xff]  ;;  %v1858_v49 = vld [vmem:[#allocation10 + $0x1c78] sm:$0xff] }
 0x431   :  { %5675 = vmatpush1.bf16.msra.mxu1 %v5674_v15  ;;  %5549 = vmatprep.subr.bf16.mxu0 %v5548_v16  ;;  %v1663_v15 = vld [vmem:[#allocation10 + $0x1660] sm:$0xff] }
 0x432   :  { %5677 = vmatprep.subr.bf16.mxu1 %v5676_v20  ;;  %v1679_v16 = vld [vmem:[#allocation10 + $0x16e0] sm:$0xff]  ;;  %v1681_v20 = vld [vmem:[#allocation10 + $0x16f0] sm:$0xff] }
 0x433   :  { %v5566_v31 = vpack.c.bf16 %v1679_v16, %v1663_v15  ;;  %v5694_v34 = vpack.c.bf16 %v1681_v20, %v1665_v17  ;;  %v1794_v15 = vld [vmem:[#allocation10 + $0x1a78] sm:$0xff]  ;;  %v1791_v20 = vld [vmem:[#allocation10 + $0x1a60] sm:$0xff] }
 0x434   :  { %5551 = vmatpush1.bf16.msra.mxu0 %v5550_v26  ;;  %v1698_v26 = vld [vmem:[#allocation10 + $0x1778] sm:$0xff] }
 0x435   :  { %5679 = vmatpush1.bf16.msra.mxu1 %v5678_v27  ;;  %5553 = vmatprep.subr.bf16.mxu0 %v5552_v28  ;;  %v1714_v27 = vld [vmem:[#allocation10 + $0x17f8] sm:$0xff] }
 0x436   :  { %5681 = vmatprep.subr.bf16.mxu1 %v5680_v32  ;;  %v5696_v40 = vpack.c.bf16 %v1714_v27, %v1698_v26  ;;  %v1810_v16 = vld [vmem:[#allocation10 + $0x1af8] sm:$0xff]  ;;  %v1824_v26 = vld [vmem:[#allocation10 + $0x1b68] sm:$0xff] }
 0x437   :  { %v1840_v27 = vld [vmem:[#allocation10 + $0x1be8] sm:$0xff] }
 0x438   :  { %5555 = vmatpush1.bf16.msra.mxu0 %v5554_v38  ;;  %v1697_v38 = vld [vmem:[#allocation10 + $0x1770] sm:$0xff]  ;;  %v5584_v36 = vpack.c.bf16 %v1840_v27, %v1824_v26  ;;  %v1952_v27 = vld [vmem:[#allocation10 + $0x1f68] sm:$0xff] }
 0x439   :  { %5683 = vmatpush1.bf16.msra.mxu1 %v5682_v53  ;;  %5557 = vmatprep.subr.bf16.mxu0 %v5556_v39  ;;  %v5698_v52 = vpack.c.bf16 %v1713_v45, %v1697_v38  ;;  %v1839_v38 = vld [vmem:[#allocation10 + $0x1be0] sm:$0xff]  ;;  %v1937_v26 = vld [vmem:[#allocation10 + $0x1ef0] sm:$0xff] }
 0x43a   :  { %5685 = vmatprep.subr.bf16.mxu1 %v5684_v47  ;;  %v1744_v47 = vld [vmem:[#allocation10 + $0x18e8] sm:$0xff] }
 0x43c   :  { %5559 = vmatpush1.bf16.msra.mxu0 %v5558_v43  ;;  %v5572_v43 = vpack.c.bf16 %v1744_v47, %v1728_v46  ;;  %v1841_v46 = vld [vmem:[#allocation10 + $0x1bf0] sm:$0xff]  ;;  %v1856_v47 = vld [vmem:[#allocation10 + $0x1c68] sm:$0xff] }
 0x43d   :  { %5687 = vmatpush1.bf16.msra.mxu1 %v5686_v56  ;;  %5561 = vmatprep.subr.bf16.mxu0 %v5560_v59  ;;  %v1727_v56 = vld [vmem:[#allocation10 + $0x1860] sm:$0xff] }
 0x43e   :  { %v2476_v18 = vpop.f32.mrb[6].mxu0  ;;  %5689 = vmatprep.subr.bf16.mxu1 %v5688_v63  ;;  %v1743_v59 = vld [vmem:[#allocation10 + $0x18e0] sm:$0xff]  ;;  %v1760_v63 = vld [vmem:[#allocation10 + $0x1968] sm:$0xff] }
 0x43f   :  { %v6603_v23 = vadd.f32 %v2476_v18, %v1994_v5  ;;  %v2618_v24 = vpop.f32.mrb[6].mxu1  ;;  %v2478_v25 = vpop.f32.mrb[7].mxu0  ;;  %v5574_v4 = vpack.c.bf16 %v1743_v59, %v1727_v56  ;;  %v5702_v5 = vpack.c.bf16 %v1745_v62, %v1729_v60  ;;  %v5576_v6 = vpack.c.bf16 %v1776_v0, %v1760_v63  ;;  %v1855_v59 = vld [vmem:[#allocation10 + $0x1c60] sm:$0xff]  ;;  %v1873_v63 = vld [vmem:[#allocation10 + $0x1cf0] sm:$0xff]  ;;  %v1888_v0 = vld [vmem:[#allocation10 + $0x1d68] sm:$0xff] }
 0x440   :  { %v6605_v28 = vadd.f32 %v2618_v24, %v2002_v9  ;;  %v6607_v29 = vadd.f32 %v2478_v25, %v1998_v10  ;;  %v2620_v30 = vpop.f32.mrb[7].mxu1  ;;  %5563 = vmatpush1.bf16.msra.mxu0 %v5562_v11  ;;  %v1775_v9 = vld [vmem:[#allocation10 + $0x19e0] sm:$0xff]  ;;  %v1761_v10 = vld [vmem:[#allocation10 + $0x1970] sm:$0xff]  ;;  %v5704_v11 = vpack.c.bf16 %v1778_v3, %v1762_v2  ;;  %v5708_v24 = vpack.c.bf16 %v1810_v16, %v1794_v15  ;;  %v1904_v2 = vld [vmem:[#allocation10 + $0x1de8] sm:$0xff] }
 0x441   :  { %v3195_v32 = vmax.f32 %v6603_v23, 0.0  ;;  %v6610_v33 = vadd.f32 %v2620_v30, %v2006_v12  ;;  %5691 = vmatpush1.bf16.msra.mxu1 %v5690_v13  ;;  %5565 = vmatprep.subr.bf16.mxu0 %v5564_v14  ;;  %v1777_v12 = vld [vmem:[#allocation10 + $0x19f0] sm:$0xff]  ;;  %v1792_v13 = vld [vmem:[#allocation10 + $0x1a68] sm:$0xff]  ;;  %v5578_v17 = vpack.c.bf16 %v1775_v9, %v1759_v8  ;;  %v1826_v30 = vld [vmem:[#allocation10 + $0x1b78] sm:$0xff]  ;;  %v5588_v56 = vpack.c.bf16 %v1872_v48, %v1856_v47 }
 0x442   :  { %v3197_v53 = vmax.f32 %v6605_v28, 0.0  ;;  %v3196_v39 = vmax.f32 %v6607_v29, 0.0  ;;  %5693 = vmatprep.subr.bf16.mxu1 %v5692_v19  ;;  %v1808_v14 = vld [vmem:[#allocation10 + $0x1ae8] sm:$0xff]  ;;  %v5706_v18 = vpack.c.bf16 %v1777_v12, %v1761_v10  ;;  %v1809_v25 = vld [vmem:[#allocation10 + $0x1af0] sm:$0xff]  ;;  %v1871_v60 = vld [vmem:[#allocation10 + $0x1ce0] sm:$0xff]  ;;  %v5592_v8 = vpack.c.bf16 %v1904_v2, %v1888_v0 }
 0x443   :  { %3211 = vst [vmem:[#allocation19 + $0x20] sm:$0xff] %v3195_v32  ;;  %v3198_v57 = vmax.f32 %v6610_v33, 0.0  ;;  %v5580_v19 = vpack.c.bf16 %v1808_v14, %v1792_v13  ;;  %v1890_v3 = vld [vmem:[#allocation10 + $0x1d78] sm:$0xff]  ;;  %v1887_v9 = vld [vmem:[#allocation10 + $0x1d60] sm:$0xff]  ;;  %v1905_v13 = vld [vmem:[#allocation10 + $0x1df0] sm:$0xff] }
 0x444   :  { %3213 = vst [vmem:[#allocation19 + $0x30] sm:$0xff] %v3197_v53  ;;  %3212 = vst [vmem:[#allocation19 + $0x28] sm:$0xff] %v3196_v39  ;;  %5567 = vmatpush1.bf16.msra.mxu0 %v5566_v31  ;;  %v1842_v31 = vld [vmem:[#allocation10 + $0x1bf8] sm:$0xff]  ;;  %v1903_v10 = vld [vmem:[#allocation10 + $0x1de0] sm:$0xff] }
 0x445   :  { %3214 = vst [vmem:[#allocation19 + $0x38] sm:$0xff] %v3198_v57  ;;  %5695 = vmatpush1.bf16.msra.mxu1 %v5694_v34  ;;  %5569 = vmatprep.subr.bf16.mxu0 %v5568_v35  ;;  %v5582_v34 = vpack.c.bf16 %v1807_v21, %v1791_v20  ;;  %v5710_v35 = vpack.c.bf16 %v1809_v25, %v1793_v22  ;;  %v1920_v14 = vld [vmem:[#allocation10 + $0x1e68] sm:$0xff]  ;;  %v1922_v16 = vld [vmem:[#allocation10 + $0x1e78] sm:$0xff]  ;;  %v1919_v21 = vld [vmem:[#allocation10 + $0x1e60] sm:$0xff] }
 0x446   :  { %5697 = vmatprep.subr.bf16.mxu1 %v5696_v40  ;;  %v1825_v40 = vld [vmem:[#allocation10 + $0x1b70] sm:$0xff]  ;;  %v5712_v45 = vpack.c.bf16 %v1842_v31, %v1826_v30  ;;  %v1936_v15 = vld [vmem:[#allocation10 + $0x1ee8] sm:$0xff]  ;;  %v1935_v22 = vld [vmem:[#allocation10 + $0x1ee0] sm:$0xff] }
 0x447   :  { %v5596_v20 = vpack.c.bf16 %v1936_v15, %v1920_v14  ;;  %v1968_v30 = vld [vmem:[#allocation10 + $0x1fe8] sm:$0xff]  ;;  %v1954_v31 = vld [vmem:[#allocation10 + $0x1f78] sm:$0xff]  ;;  %v1969_v47 = vld [vmem:[#allocation10 + $0x1ff0] sm:$0xff] }
 0x448   :  { %5571 = vmatpush1.bf16.msra.mxu0 %v5570_v51  ;;  %v1874_v51 = vld [vmem:[#allocation10 + $0x1cf8] sm:$0xff]  ;;  %v3239_v48 = vld [vmem:[#allocation13 + $0x80] sm:$0xff]  ;;  %v3241_v2 = vld [vmem:[#allocation13 + $0x90] sm:$0xff] }
 0x449   :  { %5699 = vmatpush1.bf16.msra.mxu1 %v5698_v52  ;;  %5573 = vmatprep.subr.bf16.mxu0 %v5572_v43  ;;  %v5586_v52 = vpack.c.bf16 %v1839_v38, %v1823_v37  ;;  %v5714_v43 = vpack.c.bf16 %v1841_v46, %v1825_v40  ;;  %v5716_v62 = vpack.c.bf16 %v1874_v51, %v1858_v49  ;;  %v1951_v38 = vld [vmem:[#allocation10 + $0x1f60] sm:$0xff]  ;;  %v3240_v49 = vld [vmem:[#allocation13 + $0x88] sm:$0xff]  ;;  %v3271_v51 = vld [vmem:[#allocation13 + $0x180] sm:$0xff] }
 0x44a   :  { %5701 = vmatprep.subr.bf16.mxu1 %v5700_v61  ;;  %v1857_v61 = vld [vmem:[#allocation10 + $0x1c70] sm:$0xff]  ;;  %v5600_v37 = vpack.c.bf16 %v1968_v30, %v1952_v27  ;;  %v1967_v40 = vld [vmem:[#allocation10 + $0x1fe0] sm:$0xff]  ;;  %v3256_v0 = vld [vmem:[#allocation13 + $0x108] sm:$0xff] }
 0x44b   :  { %v3243_v14 = vld [vmem:[#allocation13 + $0xa0] sm:$0xff]  ;;  %v3244_v15 = vld [vmem:[#allocation13 + $0xa8] sm:$0xff]  ;;  %v3374_v23 = vld [vmem:[#allocation13 + $0x4b8] sm:$0xff] }
 0x44c   :  { %5575 = vmatpush1.bf16.msra.mxu0 %v5574_v4  ;;  %v1906_v4 = vld [vmem:[#allocation10 + $0x1df8] sm:$0xff]  ;;  %v3259_v27 = vld [vmem:[#allocation13 + $0x120] sm:$0xff] }
 0x44d   :  { %5703 = vmatpush1.bf16.msra.mxu1 %v5702_v5  ;;  %5577 = vmatprep.subr.bf16.mxu0 %v5576_v6  ;;  %v5590_v5 = vpack.c.bf16 %v1871_v60, %v1855_v59  ;;  %v5718_v6 = vpack.c.bf16 %v1873_v63, %v1857_v61  ;;  %v5720_v12 = vpack.c.bf16 %v1906_v4, %v1890_v3  ;;  %v3223_v60 = vld [vmem:[#allocation13] sm:$0xff]  ;;  %v3224_v61 = vld [vmem:[#allocation13 + $0x8] sm:$0xff]  ;;  %v3242_v3 = vld [vmem:[#allocation13 + $0x98] sm:$0xff] }
 0x44e   :  { %5705 = vmatprep.subr.bf16.mxu1 %v5704_v11  ;;  %v1889_v11 = vld [vmem:[#allocation10 + $0x1d70] sm:$0xff]  ;;  %v5732_v59 = vpack.c.bf16 %v3240_v49, %v3239_v48  ;;  %v5734_v4 = vpack.c.bf16 %v3224_v61, %v3223_v60  ;;  %v3230_v48 = vld [vmem:[#allocation13 + $0x38] sm:$0xff]  ;;  %v3261_v49 = vld [vmem:[#allocation13 + $0x130] sm:$0xff] }
 0x44f   :  { %v3255_v63 = vld [vmem:[#allocation13 + $0x100] sm:$0xff]  ;;  %v3280_v60 = vld [vmem:[#allocation13 + $0x1c8] sm:$0xff] }
 0x450   :  { %5579 = vmatpush1.bf16.msra.mxu0 %v5578_v17  ;;  %v1938_v17 = vld [vmem:[#allocation10 + $0x1ef8] sm:$0xff]  ;;  %v6059_v30 = vld [vmem:[#allocation19 + $0x18] sm:$0xff] }
 0x451   :  { %5707 = vmatpush1.bf16.msra.mxu1 %v5706_v18  ;;  %5581 = vmatprep.subr.bf16.mxu0 %v5580_v19  ;;  %v5594_v18 = vpack.c.bf16 %v1903_v10, %v1887_v9  ;;  %v5722_v19 = vpack.c.bf16 %v1905_v13, %v1889_v11  ;;  %v5724_v25 = vpack.c.bf16 %v1938_v17, %v1922_v16  ;;  %v3225_v9 = vld [vmem:[#allocation13 + $0x10] sm:$0xff]  ;;  %v3226_v10 = vld [vmem:[#allocation13 + $0x18] sm:$0xff] }
 0x452   :  { %5709 = vmatprep.subr.bf16.mxu1 %v5708_v24  ;;  %v1921_v24 = vld [vmem:[#allocation10 + $0x1e70] sm:$0xff]  ;;  %v3257_v11 = vld [vmem:[#allocation13 + $0x110] sm:$0xff]  ;;  %v3258_v13 = vld [vmem:[#allocation13 + $0x118] sm:$0xff] }
 0x453   :  { %v6057_v16 = vld [vmem:[#allocation17 + $0x10] sm:$0xff] }
 0x454   :  { %5583 = vmatpush1.bf16.msra.mxu0 %v5582_v34  ;;  %v1970_v34 = vld [vmem:[#allocation10 + $0x1ff8] sm:$0xff] }
 0x455   :  { %5711 = vmatpush1.bf16.msra.mxu1 %v5710_v35  ;;  %5585 = vmatprep.subr.bf16.mxu0 %v5584_v36  ;;  %v5598_v35 = vpack.c.bf16 %v1935_v22, %v1919_v21  ;;  %v5726_v36 = vpack.c.bf16 %v1937_v26, %v1921_v24  ;;  %v5728_v46 = vpack.c.bf16 %v1970_v34, %v1954_v31  ;;  %v6058_v21 = vld [vmem:[#allocation19 + $0x8] sm:$0xff] }
 0x456   :  { %5713 = vmatprep.subr.bf16.mxu1 %v5712_v45  ;;  %v1953_v45 = vld [vmem:[#allocation10 + $0x1f70] sm:$0xff]  ;;  %v5770_v22 = vpack.c.bf16 %v3258_v13, %v3257_v11  ;;  %v5740_v24 = vpack.c.bf16 %v3244_v15, %v3243_v14  ;;  %v3228_v26 = vld [vmem:[#allocation13 + $0x28] sm:$0xff]  ;;  %v3233_v14 = vld [vmem:[#allocation13 + $0x50] sm:$0xff] }
 0x457   :  { %v3260_v34 = vld [vmem:[#allocation13 + $0x128] sm:$0xff]  ;;  %v3234_v15 = vld [vmem:[#allocation13 + $0x58] sm:$0xff] }
 0x458   :  { %5587 = vmatpush1.bf16.msra.mxu0 %v5586_v52  ;;  %v3272_v52 = vld [vmem:[#allocation13 + $0x188] sm:$0xff] }
 0x459   :  { %5715 = vmatpush1.bf16.msra.mxu1 %v5714_v43  ;;  %5589 = vmatprep.subr.bf16.mxu0 %v5588_v56  ;;  %v5602_v43 = vpack.c.bf16 %v1967_v40, %v1951_v38  ;;  %v5730_v56 = vpack.c.bf16 %v1969_v47, %v1953_v45  ;;  %v3278_v38 = vld [vmem:[#allocation13 + $0x1b8] sm:$0xff]  ;;  %v5774_v45 = vpack.c.bf16 %v3260_v34, %v3259_v27  ;;  %v3229_v47 = vld [vmem:[#allocation13 + $0x30] sm:$0xff]  ;;  %v3235_v27 = vld [vmem:[#allocation13 + $0x60] sm:$0xff] }
 0x45a   :  { %5717 = vmatprep.subr.bf16.mxu1 %v5716_v62  ;;  %v5764_v62 = vpack.c.bf16 %v3272_v52, %v3271_v51  ;;  %v3262_v52 = vld [vmem:[#allocation13 + $0x138] sm:$0xff]  ;;  %v5746_v61 = vpack.c.bf16 %v3230_v48, %v3229_v47  ;;  %v3237_v48 = vld [vmem:[#allocation13 + $0x70] sm:$0xff] }
 0x45c   :  { %5591 = vmatpush1.bf16.msra.mxu0 %v5590_v5  ;;  %v3273_v5 = vld [vmem:[#allocation13 + $0x190] sm:$0xff] }
 0x45d   :  { %5719 = vmatpush1.bf16.msra.mxu1 %v5718_v6  ;;  %5593 = vmatprep.subr.bf16.mxu0 %v5592_v8  ;;  %v3274_v6 = vld [vmem:[#allocation13 + $0x198] sm:$0xff]  ;;  %v5766_v8 = vpack.c.bf16 %v3256_v0, %v3255_v63  ;;  %v3231_v0 = vld [vmem:[#allocation13 + $0x40] sm:$0xff] }
 0x45e   :  { %5721 = vmatprep.subr.bf16.mxu1 %v5720_v12  ;;  %v5736_v12 = vpack.c.bf16 %v3242_v3, %v3241_v2  ;;  %v5768_v17 = vpack.c.bf16 %v3274_v6, %v3273_v5  ;;  %v3232_v2 = vld [vmem:[#allocation13 + $0x48] sm:$0xff]  ;;  %v3263_v3 = vld [vmem:[#allocation13 + $0x140] sm:$0xff]  ;;  %v3249_v6 = vld [vmem:[#allocation13 + $0xd0] sm:$0xff] }
 0x45f   :  { %v3264_v5 = vld [vmem:[#allocation13 + $0x148] sm:$0xff]  ;;  %v5750_v11 = vpack.c.bf16 %v3232_v2, %v3231_v0  ;;  %v3287_v2 = vld [vmem:[#allocation13 + $0x200] sm:$0xff] }
 0x460   :  { %5595 = vmatpush1.bf16.msra.mxu0 %v5594_v18  ;;  %v3275_v18 = vld [vmem:[#allocation13 + $0x1a0] sm:$0xff] }
 0x461   :  { %5723 = vmatpush1.bf16.msra.mxu1 %v5722_v19  ;;  %5597 = vmatprep.subr.bf16.mxu0 %v5596_v20  ;;  %v3276_v19 = vld [vmem:[#allocation13 + $0x1a8] sm:$0xff]  ;;  %v5738_v20 = vpack.c.bf16 %v3226_v10, %v3225_v9  ;;  %v3281_v9 = vld [vmem:[#allocation13 + $0x1d0] sm:$0xff]  ;;  %v3282_v10 = vld [vmem:[#allocation13 + $0x1d8] sm:$0xff] }
 0x462   :  { %5725 = vmatprep.subr.bf16.mxu1 %v5724_v25  ;;  %v3227_v25 = vld [vmem:[#allocation13 + $0x20] sm:$0xff]  ;;  %v5772_v31 = vpack.c.bf16 %v3276_v19, %v3275_v18  ;;  %v3266_v18 = vld [vmem:[#allocation13 + $0x158] sm:$0xff] }
 0x463   :  { %v5742_v40 = vpack.c.bf16 %v3228_v26, %v3227_v25  ;;  %v3251_v19 = vld [vmem:[#allocation13 + $0xe0] sm:$0xff] }
 0x464   :  { %5599 = vmatpush1.bf16.msra.mxu0 %v5598_v35  ;;  %v3245_v35 = vld [vmem:[#allocation13 + $0xb0] sm:$0xff] }
 0x465   :  { %5727 = vmatpush1.bf16.msra.mxu1 %v5726_v36  ;;  %5601 = vmatprep.subr.bf16.mxu0 %v5600_v37  ;;  %v3246_v36 = vld [vmem:[#allocation13 + $0xb8] sm:$0xff]  ;;  %v3277_v37 = vld [vmem:[#allocation13 + $0x1b0] sm:$0xff] }
 0x466   :  { %5729 = vmatprep.subr.bf16.mxu1 %v5728_v46  ;;  %v5744_v46 = vpack.c.bf16 %v3246_v36, %v3245_v35  ;;  %v5776_v51 = vpack.c.bf16 %v3278_v38, %v3277_v37  ;;  %v3268_v35 = vld [vmem:[#allocation13 + $0x168] sm:$0xff]  ;;  %v3253_v36 = vld [vmem:[#allocation13 + $0xf0] sm:$0xff]  ;;  %v3254_v37 = vld [vmem:[#allocation13 + $0xf8] sm:$0xff] }
 0x467   :  { %v3285_v38 = vld [vmem:[#allocation13 + $0x1f0] sm:$0xff]  ;;  %v5760_v47 = vpack.c.bf16 %v3254_v37, %v3253_v36  ;;  %v3323_v36 = vld [vmem:[#allocation13 + $0x320] sm:$0xff] }
 0x468   :  { %5603 = vmatpush1.bf16.msra.mxu0 %v5602_v43  ;;  %v3247_v43 = vld [vmem:[#allocation13 + $0xc0] sm:$0xff] }
 0x469   :  { %5731 = vmatpush1.bf16.msra.mxu1 %v5730_v56  ;;  %5733 = vmatprep.subr.bf16.mxu0 %v5732_v59  ;;  %v3248_v56 = vld [vmem:[#allocation13 + $0xc8] sm:$0xff]  ;;  %v3279_v59 = vld [vmem:[#allocation13 + $0x1c0] sm:$0xff] }
 0x46a   :  { %5765 = vmatprep.subr.bf16.mxu1 %v5764_v62  ;;  %v5778_v62 = vpack.c.bf16 %v3262_v52, %v3261_v49  ;;  %v5748_v63 = vpack.c.bf16 %v3248_v56, %v3247_v43  ;;  %v3238_v49 = vld [vmem:[#allocation13 + $0x78] sm:$0xff]  ;;  %v3303_v56 = vld [vmem:[#allocation13 + $0x280] sm:$0xff] }
 0x46b   :  { %3043 = vmatmul.mubr.f32.vlgmr.msra.gmra.mrb[10].mxu0 %v6057_v16  ;;  %v3270_v43 = vld [vmem:[#allocation13 + $0x178] sm:$0xff] }
 0x46c   :  { %3185 = vmatmul.mubr.f32.vlgmr.msra.gmra.mrb[10].mxu1 %v6057_v16  ;;  %5735 = vmatpush3.bf16.msra.mxu0 %v5734_v4  ;;  %v5780_v4 = vpack.c.bf16 %v3280_v60, %v3279_v59  ;;  %v3265_v16 = vld [vmem:[#allocation13 + $0x150] sm:$0xff]  ;;  %v3304_v59 = vld [vmem:[#allocation13 + $0x288] sm:$0xff]  ;;  %v3335_v60 = vld [vmem:[#allocation13 + $0x380] sm:$0xff] }
 0x46d   :  { %3550 = vmatprep.mubr.f32.mxu0 %v6058_v21  ;;  %5767 = vmatpush3.bf16.msra.mxu1 %v5766_v8  ;;  %v3250_v8 = vld [vmem:[#allocation13 + $0xd8] sm:$0xff]  ;;  %v3283_v21 = vld [vmem:[#allocation13 + $0x1e0] sm:$0xff]  ;;  %v5786_v25 = vpack.c.bf16 %v3266_v18, %v3265_v16  ;;  %v5796_v0 = vpack.c.bf16 %v3304_v59, %v3303_v56  ;;  %v3321_v16 = vld [vmem:[#allocation13 + $0x310] sm:$0xff] }
 0x46e   :  { %3620 = vmatprep.mubr.f32.mxu1 %v6059_v30  ;;  %5737 = vmatprep.subr.bf16.mxu0 %v5736_v12  ;;  %v5782_v12 = vpack.c.bf16 %v3264_v5, %v3263_v3  ;;  %v5752_v13 = vpack.c.bf16 %v3250_v8, %v3249_v6  ;;  %v3236_v30 = vld [vmem:[#allocation13 + $0x68] sm:$0xff]  ;;  %v3319_v5 = vld [vmem:[#allocation13 + $0x300] sm:$0xff]  ;;  %v3305_v8 = vld [vmem:[#allocation13 + $0x290] sm:$0xff] }
 0x46f   :  { %5769 = vmatprep.subr.bf16.mxu1 %v5768_v17  ;;  %v5784_v17 = vpack.c.bf16 %v3282_v10, %v3281_v9  ;;  %v3288_v3 = vld [vmem:[#allocation13 + $0x208] sm:$0xff]  ;;  %v3306_v9 = vld [vmem:[#allocation13 + $0x298] sm:$0xff]  ;;  %v3343_v59 = vld [vmem:[#allocation13 + $0x3c0] sm:$0xff] }
 0x470   :  { %5739 = vmatpush3.bf16.msra.mxu0 %v5738_v20  ;;  %v3252_v20 = vld [vmem:[#allocation13 + $0xe8] sm:$0xff]  ;;  %v5798_v10 = vpack.c.bf16 %v3288_v3, %v3287_v2  ;;  %v3322_v18 = vld [vmem:[#allocation13 + $0x318] sm:$0xff]  ;;  %v3327_v3 = vld [vmem:[#allocation13 + $0x340] sm:$0xff] }
 0x471   :  { %5771 = vmatpush3.bf16.msra.mxu1 %v5770_v22  ;;  %5741 = vmatprep.subr.bf16.mxu0 %v5740_v24  ;;  %v3284_v22 = vld [vmem:[#allocation13 + $0x1e8] sm:$0xff]  ;;  %v5754_v24 = vpack.c.bf16 %v3234_v15, %v3233_v14  ;;  %v5756_v26 = vpack.c.bf16 %v3252_v20, %v3251_v19  ;;  %v3289_v14 = vld [vmem:[#allocation13 + $0x210] sm:$0xff]  ;;  %v3290_v15 = vld [vmem:[#allocation13 + $0x218] sm:$0xff] }
 0x472   :  { %5773 = vmatprep.subr.bf16.mxu1 %v5772_v31  ;;  %v3267_v31 = vld [vmem:[#allocation13 + $0x160] sm:$0xff]  ;;  %v5788_v34 = vpack.c.bf16 %v3284_v22, %v3283_v21  ;;  %v3320_v6 = vld [vmem:[#allocation13 + $0x308] sm:$0xff] }
 0x473   :  { %v3307_v19 = vld [vmem:[#allocation13 + $0x2a0] sm:$0xff]  ;;  %v3308_v20 = vld [vmem:[#allocation13 + $0x2a8] sm:$0xff] }
 0x474   :  { %5743 = vmatpush3.bf16.msra.mxu0 %v5742_v40  ;;  %v3286_v40 = vld [vmem:[#allocation13 + $0x1f8] sm:$0xff]  ;;  %v6060_v21 = vld [vmem:[#allocation19] sm:$0xff] }
 0x475   :  { %5775 = vmatpush3.bf16.msra.mxu1 %v5774_v45  ;;  %5745 = vmatprep.subr.bf16.mxu0 %v5744_v46  ;;  %v5758_v45 = vpack.c.bf16 %v3236_v30, %v3235_v27  ;;  %v5790_v46 = vpack.c.bf16 %v3268_v35, %v3267_v31  ;;  %v5792_v52 = vpack.c.bf16 %v3286_v40, %v3285_v38  ;;  %v3292_v35 = vld [vmem:[#allocation13 + $0x228] sm:$0xff]  ;;  %v3309_v40 = vld [vmem:[#allocation13 + $0x2b0] sm:$0xff] }
 0x476   :  { %5777 = vmatprep.subr.bf16.mxu1 %v5776_v51  ;;  %v3269_v51 = vld [vmem:[#allocation13 + $0x170] sm:$0xff]  ;;  %v5802_v27 = vpack.c.bf16 %v3290_v15, %v3289_v14  ;;  %v5834_v30 = vpack.c.bf16 %v3322_v18, %v3321_v16  ;;  %v5804_v31 = vpack.c.bf16 %v3308_v20, %v3307_v19  ;;  %v3324_v38 = vld [vmem:[#allocation13 + $0x328] sm:$0xff]  ;;  %v3298_v15 = vld [vmem:[#allocation13 + $0x258] sm:$0xff] }
 0x477   :  { %v3312_v56 = vld [vmem:[#allocation13 + $0x2c8] sm:$0xff]  ;;  %v3297_v14 = vld [vmem:[#allocation13 + $0x250] sm:$0xff]  ;;  %v3330_v18 = vld [vmem:[#allocation13 + $0x358] sm:$0xff] }
 0x478   :  { %5747 = vmatpush3.bf16.msra.mxu0 %v5746_v61  ;;  %v3336_v61 = vld [vmem:[#allocation13 + $0x388] sm:$0xff]  ;;  %v3329_v16 = vld [vmem:[#allocation13 + $0x350] sm:$0xff]  ;;  %v3315_v19 = vld [vmem:[#allocation13 + $0x2e0] sm:$0xff] }
 0x479   :  { %5779 = vmatpush3.bf16.msra.mxu1 %v5778_v62  ;;  %5749 = vmatprep.subr.bf16.mxu0 %v5748_v63  ;;  %v5762_v62 = vpack.c.bf16 %v3238_v49, %v3237_v48  ;;  %v5794_v63 = vpack.c.bf16 %v3270_v43, %v3269_v51  ;;  %v3293_v49 = vld [vmem:[#allocation13 + $0x230] sm:$0xff]  ;;  %v3294_v51 = vld [vmem:[#allocation13 + $0x238] sm:$0xff]  ;;  %v3311_v43 = vld [vmem:[#allocation13 + $0x2c0] sm:$0xff] }
 0x47a   :  { %5781 = vmatprep.subr.bf16.mxu1 %v5780_v4  ;;  %v5828_v4 = vpack.c.bf16 %v3336_v61, %v3335_v60  ;;  %v3344_v60 = vld [vmem:[#allocation13 + $0x3c8] sm:$0xff]  ;;  %v5810_v61 = vpack.c.bf16 %v3294_v51, %v3293_v49  ;;  %v3334_v51 = vld [vmem:[#allocation13 + $0x378] sm:$0xff] }
 0x47b   :  { %v3296_v2 = vld [vmem:[#allocation13 + $0x248] sm:$0xff] }
 0x47c   :  { %5751 = vmatpush3.bf16.msra.mxu0 %v5750_v11  ;;  %v3337_v11 = vld [vmem:[#allocation13 + $0x390] sm:$0xff]  ;;  %v3316_v20 = vld [vmem:[#allocation13 + $0x2e8] sm:$0xff] }
 0x47d   :  { %5783 = vmatpush3.bf16.msra.mxu1 %v5782_v12  ;;  %5753 = vmatprep.subr.bf16.mxu0 %v5752_v13  ;;  %v3338_v12 = vld [vmem:[#allocation13 + $0x398] sm:$0xff]  ;;  %v5830_v13 = vpack.c.bf16 %v3320_v6, %v3319_v5  ;;  %v3328_v5 = vld [vmem:[#allocation13 + $0x348] sm:$0xff]  ;;  %v3313_v6 = vld [vmem:[#allocation13 + $0x2d0] sm:$0xff] }
 0x47e   :  { %5785 = vmatprep.subr.bf16.mxu1 %v5784_v17  ;;  %v5800_v17 = vpack.c.bf16 %v3306_v9, %v3305_v8  ;;  %v5832_v22 = vpack.c.bf16 %v3338_v12, %v3337_v11  ;;  %v3314_v8 = vld [vmem:[#allocation13 + $0x2d8] sm:$0xff]  ;;  %v3345_v9 = vld [vmem:[#allocation13 + $0x3d0] sm:$0xff]  ;;  %v5846_v12 = vpack.c.bf16 %v3328_v5, %v3327_v3 }
 0x47f   :  { %v3369_v3 = vld [vmem:[#allocation13 + $0x490] sm:$0xff] }
 0x480   :  { %5755 = vmatpush3.bf16.msra.mxu0 %v5754_v24  ;;  %v3339_v24 = vld [vmem:[#allocation13 + $0x3a0] sm:$0xff]  ;;  %v3401_v5 = vld [vmem:[#allocation13 + $0x590] sm:$0xff] }
 0x481   :  { %5787 = vmatpush3.bf16.msra.mxu1 %v5786_v25  ;;  %5757 = vmatprep.subr.bf16.mxu0 %v5756_v26  ;;  %v3340_v25 = vld [vmem:[#allocation13 + $0x3a8] sm:$0xff]  ;;  %v6061_v26 = vld [vmem:[#allocation19 + $0x10] sm:$0xff] }
 0x482   :  { %5789 = vmatprep.subr.bf16.mxu1 %v5788_v34  ;;  %v3291_v34 = vld [vmem:[#allocation13 + $0x220] sm:$0xff]  ;;  %v5836_v37 = vpack.c.bf16 %v3340_v25, %v3339_v24  ;;  %v5818_v24 = vpack.c.bf16 %v3298_v15, %v3297_v14  ;;  %v5850_v25 = vpack.c.bf16 %v3330_v18, %v3329_v16  ;;  %v3386_v15 = vld [vmem:[#allocation13 + $0x518] sm:$0xff] }
 0x483   :  { %v5806_v29 = vpack.c.bf16 %v3292_v35, %v3291_v34  ;;  %v3332_v35 = vld [vmem:[#allocation13 + $0x368] sm:$0xff]  ;;  %v3371_v16 = vld [vmem:[#allocation13 + $0x4a0] sm:$0xff] }
 0x484   :  { %5759 = vmatpush3.bf16.msra.mxu0 %v5758_v45  ;;  %v3310_v45 = vld [vmem:[#allocation13 + $0x2b8] sm:$0xff]  ;;  %v3403_v18 = vld [vmem:[#allocation13 + $0x5a0] sm:$0xff] }
 0x485   :  { %5791 = vmatpush3.bf16.msra.mxu1 %v5790_v46  ;;  %5761 = vmatprep.subr.bf16.mxu0 %v5760_v47  ;;  %v3341_v46 = vld [vmem:[#allocation13 + $0x3b0] sm:$0xff]  ;;  %v3342_v47 = vld [vmem:[#allocation13 + $0x3b8] sm:$0xff]  ;;  %v5808_v48 = vpack.c.bf16 %v3310_v45, %v3309_v40 }
 0x486   :  { %5793 = vmatprep.subr.bf16.mxu1 %v5792_v52  ;;  %v3325_v52 = vld [vmem:[#allocation13 + $0x330] sm:$0xff]  ;;  %v5840_v33 = vpack.c.bf16 %v3342_v47, %v3341_v46  ;;  %v3350_v40 = vld [vmem:[#allocation13 + $0x3f8] sm:$0xff] }
 0x488   :  { %5763 = vmatpush3.bf16.msra.mxu0 %v5762_v62 }
 0x489   :  { %5795 = vmatpush3.bf16.msra.mxu1 %v5794_v63  ;;  %5797 = vmatprep.subr.bf16.mxu0 %v5796_v0  ;;  %v5812_v63 = vpack.c.bf16 %v3312_v56, %v3311_v43  ;;  %v3295_v0 = vld [vmem:[#allocation13 + $0x240] sm:$0xff]  ;;  %v3400_v43 = vld [vmem:[#allocation13 + $0x588] sm:$0xff] }
 0x48a   :  { %5829 = vmatprep.subr.bf16.mxu1 %v5828_v4  ;;  %v5844_v4 = vpack.c.bf16 %v3344_v60, %v3343_v59  ;;  %v5814_v11 = vpack.c.bf16 %v3296_v2, %v3295_v0  ;;  %v3384_v2 = vld [vmem:[#allocation13 + $0x508] sm:$0xff] }
 0x48b   :  { %3551 = vmatmul.mubr.f32.vlgmr.msra.gmra.mrb[12].mxu0 %v6060_v21  ;;  %v3347_v21 = vld [vmem:[#allocation13 + $0x3e0] sm:$0xff] }
 0x48c   :  { %3621 = vmatmul.mubr.f32.vlgmr.msra.gmra.mrb[12].mxu1 %v6061_v26  ;;  %5799 = vmatpush3.bf16.msra.mxu0 %v5798_v10  ;;  %v3346_v10 = vld [vmem:[#allocation13 + $0x3d8] sm:$0xff]  ;;  %v5820_v26 = vpack.c.bf16 %v3316_v20, %v3315_v19  ;;  %v3404_v19 = vld [vmem:[#allocation13 + $0x5a8] sm:$0xff] }
 0x48d   :  { %3690 = vmatprep.mubr.f32.mxu0 %v3196_v39  ;;  %5831 = vmatpush3.bf16.msra.mxu1 %v5830_v13  ;;  %v5838_v39 = vpack.c.bf16 %v3324_v38, %v3323_v36  ;;  %v5816_v13 = vpack.c.bf16 %v3314_v8, %v3313_v6  ;;  %v3317_v36 = vld [vmem:[#allocation13 + $0x2f0] sm:$0xff]  ;;  %v3402_v6 = vld [vmem:[#allocation13 + $0x598] sm:$0xff] }
 0x48e   :  { %3760 = vmatprep.mubr.f32.mxu1 %v3198_v57  ;;  %5801 = vmatprep.subr.bf16.mxu0 %v5800_v17  ;;  %v3326_v57 = vld [vmem:[#allocation13 + $0x338] sm:$0xff]  ;;  %v5848_v17 = vpack.c.bf16 %v3346_v10, %v3345_v9  ;;  %v3349_v38 = vld [vmem:[#allocation13 + $0x3f0] sm:$0xff]  ;;  %v5896_v14 = vpack.c.bf16 %v3402_v6, %v3401_v5 }
 0x48f   :  { %5833 = vmatprep.subr.bf16.mxu1 %v5832_v22  ;;  %v5842_v62 = vpack.c.bf16 %v3326_v57, %v3325_v52  ;;  %v3348_v22 = vld [vmem:[#allocation13 + $0x3e8] sm:$0xff]  ;;  %v5856_v49 = vpack.c.bf16 %v3350_v40, %v3349_v38  ;;  %v3367_v52 = vld [vmem:[#allocation13 + $0x480] sm:$0xff]  ;;  %v3389_v38 = vld [vmem:[#allocation13 + $0x530] sm:$0xff] }
 0x490   :  { %5803 = vmatpush3.bf16.msra.mxu0 %v5802_v27  ;;  %v3299_v27 = vld [vmem:[#allocation13 + $0x260] sm:$0xff]  ;;  %v5852_v34 = vpack.c.bf16 %v3348_v22, %v3347_v21  ;;  %v3362_v5 = vld [vmem:[#allocation13 + $0x458] sm:$0xff]  ;;  %v3393_v6 = vld [vmem:[#allocation13 + $0x550] sm:$0xff] }
 0x491   :  { %5835 = vmatpush3.bf16.msra.mxu1 %v5834_v30  ;;  %5805 = vmatprep.subr.bf16.mxu0 %v5804_v31  ;;  %v3300_v30 = vld [vmem:[#allocation13 + $0x268] sm:$0xff]  ;;  %v3331_v31 = vld [vmem:[#allocation13 + $0x360] sm:$0xff] }
 0x492   :  { %5837 = vmatprep.subr.bf16.mxu1 %v5836_v37  ;;  %v3318_v37 = vld [vmem:[#allocation13 + $0x2f8] sm:$0xff]  ;;  %v5822_v45 = vpack.c.bf16 %v3300_v30, %v3299_v27  ;;  %v5854_v46 = vpack.c.bf16 %v3332_v35, %v3331_v31  ;;  %v3399_v57 = vld [vmem:[#allocation13 + $0x580] sm:$0xff]  ;;  %v5900_v27 = vpack.c.bf16 %v3404_v19, %v3403_v18  ;;  %v3388_v30 = vld [vmem:[#allocation13 + $0x528] sm:$0xff] }
 0x493   :  { %v5824_v47 = vpack.c.bf16 %v3318_v37, %v3317_v36  ;;  %v5892_v0 = vpack.c.bf16 %v3400_v43, %v3399_v57  ;;  %v3373_v31 = vld [vmem:[#allocation13 + $0x4b0] sm:$0xff]  ;;  %v3358_v37 = vld [vmem:[#allocation13 + $0x438] sm:$0xff]  ;;  %v3391_v57 = vld [vmem:[#allocation13 + $0x540] sm:$0xff] }
 0x494   :  { %5807 = vmatpush3.bf16.msra.mxu0 %v5806_v29  ;;  %v3301_v29 = vld [vmem:[#allocation13 + $0x270] sm:$0xff] }
 0x495   :  { %5839 = vmatpush3.bf16.msra.mxu1 %v5838_v39  ;;  %5809 = vmatprep.subr.bf16.mxu0 %v5808_v48  ;;  %v3302_v39 = vld [vmem:[#allocation13 + $0x278] sm:$0xff]  ;;  %v3333_v48 = vld [vmem:[#allocation13 + $0x370] sm:$0xff] }
 0x496   :  { %5841 = vmatprep.subr.bf16.mxu1 %v5840_v33  ;;  %v3368_v33 = vld [vmem:[#allocation13 + $0x488] sm:$0xff]  ;;  %v5826_v56 = vpack.c.bf16 %v3302_v39, %v3301_v29  ;;  %v5858_v59 = vpack.c.bf16 %v3334_v51, %v3333_v48  ;;  %v3357_v36 = vld [vmem:[#allocation13 + $0x430] sm:$0xff]  ;;  %v3407_v29 = vld [vmem:[#allocation13 + $0x5c0] sm:$0xff] }
 0x497   :  { %v5860_v60 = vpack.c.bf16 %v3368_v33, %v3367_v52  ;;  %v3408_v39 = vld [vmem:[#allocation13 + $0x5c8] sm:$0xff]  ;;  %v5874_v48 = vpack.c.bf16 %v3358_v37, %v3357_v36  ;;  %v3359_v52 = vld [vmem:[#allocation13 + $0x440] sm:$0xff] }
 0x498   :  { %5811 = vmatpush3.bf16.msra.mxu0 %v5810_v61  ;;  %v3351_v61 = vld [vmem:[#allocation13 + $0x400] sm:$0xff]  ;;  %v3360_v33 = vld [vmem:[#allocation13 + $0x448] sm:$0xff]  ;;  %v5908_v43 = vpack.c.bf16 %v3408_v39, %v3407_v29 }
 0x499   :  { %5843 = vmatpush3.bf16.msra.mxu1 %v5842_v62  ;;  %5813 = vmatprep.subr.bf16.mxu0 %v5812_v63  ;;  %v3352_v62 = vld [vmem:[#allocation13 + $0x408] sm:$0xff]  ;;  %v3383_v63 = vld [vmem:[#allocation13 + $0x500] sm:$0xff] }
 0x49a   :  { %5845 = vmatprep.subr.bf16.mxu1 %v5844_v4  ;;  %v3370_v4 = vld [vmem:[#allocation13 + $0x498] sm:$0xff]  ;;  %v5862_v8 = vpack.c.bf16 %v3352_v62, %v3351_v61  ;;  %v5894_v9 = vpack.c.bf16 %v3384_v2, %v3383_v63  ;;  %v3409_v61 = vld [vmem:[#allocation13 + $0x5d0] sm:$0xff]  ;;  %v5878_v63 = vpack.c.bf16 %v3360_v33, %v3359_v52  ;;  %v3463_v33 = vld [vmem:[#allocation13 + $0x780] sm:$0xff] }
 0x49b   :  { %v5864_v10 = vpack.c.bf16 %v3370_v4, %v3369_v3  ;;  %v3410_v62 = vld [vmem:[#allocation13 + $0x5d8] sm:$0xff]  ;;  %v3361_v4 = vld [vmem:[#allocation13 + $0x450] sm:$0xff] }
 0x49c   :  { %5815 = vmatpush3.bf16.msra.mxu0 %v5814_v11  ;;  %v3353_v11 = vld [vmem:[#allocation13 + $0x410] sm:$0xff] }
 0x49d   :  { %5847 = vmatpush3.bf16.msra.mxu1 %v5846_v12  ;;  %5817 = vmatprep.subr.bf16.mxu0 %v5816_v13  ;;  %v3354_v12 = vld [vmem:[#allocation13 + $0x418] sm:$0xff]  ;;  %v3385_v13 = vld [vmem:[#allocation13 + $0x510] sm:$0xff] }
 0x49e   :  { %5849 = vmatprep.subr.bf16.mxu1 %v5848_v17  ;;  %v3372_v17 = vld [vmem:[#allocation13 + $0x4a8] sm:$0xff]  ;;  %v5866_v20 = vpack.c.bf16 %v3354_v12, %v3353_v11  ;;  %v5898_v21 = vpack.c.bf16 %v3386_v15, %v3385_v13  ;;  %v3411_v13 = vld [vmem:[#allocation13 + $0x5e0] sm:$0xff] }
 0x49f   :  { %v5868_v22 = vpack.c.bf16 %v3372_v17, %v3371_v16  ;;  %v3380_v11 = vld [vmem:[#allocation13 + $0x4e8] sm:$0xff]  ;;  %v5882_v17 = vpack.c.bf16 %v3362_v5, %v3361_v4  ;;  %v3434_v4 = vld [vmem:[#allocation13 + $0x698] sm:$0xff]  ;;  %v3465_v5 = vld [vmem:[#allocation13 + $0x790] sm:$0xff] }
 0x4a0   :  { %5819 = vmatpush3.bf16.msra.mxu0 %v5818_v24  ;;  %v3355_v24 = vld [vmem:[#allocation13 + $0x420] sm:$0xff] }
 0x4a1   :  { %5851 = vmatpush3.bf16.msra.mxu1 %v5850_v25  ;;  %5821 = vmatprep.subr.bf16.mxu0 %v5820_v26  ;;  %v3356_v25 = vld [vmem:[#allocation13 + $0x428] sm:$0xff]  ;;  %v3387_v26 = vld [vmem:[#allocation13 + $0x520] sm:$0xff] }
 0x4a2   :  { %5853 = vmatprep.subr.bf16.mxu1 %v5852_v34  ;;  %v3406_v34 = vld [vmem:[#allocation13 + $0x5b8] sm:$0xff]  ;;  %v5870_v35 = vpack.c.bf16 %v3356_v25, %v3355_v24  ;;  %v5902_v28 = vpack.c.bf16 %v3388_v30, %v3387_v26  ;;  %v3395_v25 = vld [vmem:[#allocation13 + $0x560] sm:$0xff]  ;;  %v3396_v26 = vld [vmem:[#allocation13 + $0x568] sm:$0xff] }
 0x4a3   :  { %v5918_v37 = vpack.c.bf16 %v3396_v26, %v3395_v25  ;;  %v3451_v25 = vld [vmem:[#allocation13 + $0x720] sm:$0xff] }
 0x4a4   :  { %5823 = vmatpush3.bf16.msra.mxu0 %v5822_v45  ;;  %v3390_v45 = vld [vmem:[#allocation13 + $0x538] sm:$0xff] }
 0x4a5   :  { %5855 = vmatpush3.bf16.msra.mxu1 %v5854_v46  ;;  %5825 = vmatprep.subr.bf16.mxu0 %v5824_v47  ;;  %v3375_v46 = vld [vmem:[#allocation13 + $0x4c0] sm:$0xff]  ;;  %v3376_v47 = vld [vmem:[#allocation13 + $0x4c8] sm:$0xff] }
 0x4a6   :  { %5857 = vmatprep.subr.bf16.mxu1 %v5856_v49  ;;  %v5906_v49 = vpack.c.bf16 %v3390_v45, %v3389_v38  ;;  %v5876_v51 = vpack.c.bf16 %v3376_v47, %v3375_v46  ;;  %v3365_v38 = vld [vmem:[#allocation13 + $0x470] sm:$0xff] }
 0x4a7   :  { %v3397_v45 = vld [vmem:[#allocation13 + $0x570] sm:$0xff] }
 0x4a8   :  { %5827 = vmatpush3.bf16.msra.mxu0 %v5826_v56  ;;  %v3392_v56 = vld [vmem:[#allocation13 + $0x548] sm:$0xff] }
 0x4a9   :  { %5859 = vmatpush3.bf16.msra.mxu1 %v5858_v59  ;;  %5861 = vmatprep.subr.bf16.mxu0 %v5860_v60  ;;  %v3377_v59 = vld [vmem:[#allocation13 + $0x4d0] sm:$0xff]  ;;  %v3378_v60 = vld [vmem:[#allocation13 + $0x4d8] sm:$0xff]  ;;  %v5910_v2 = vpack.c.bf16 %v3392_v56, %v3391_v57  ;;  %v3464_v57 = vld [vmem:[#allocation13 + $0x788] sm:$0xff] }
 0x4aa   :  { %5893 = vmatprep.subr.bf16.mxu1 %v5892_v0  ;;  %v6631_v0 = vld [vmem:[#allocation11 + $0x8] sm:$0xff]  ;;  %v5880_v3 = vpack.c.bf16 %v3378_v60, %v3377_v59  ;;  %v3415_v60 = vld [vmem:[#allocation13 + $0x600] sm:$0xff] }
 0x4ab   :  { %3691 = vmatmul.mubr.f32.vlgmr.msra.gmra.mrb[14].mxu0 %v3195_v32  ;;  %v3405_v32 = vld [vmem:[#allocation13 + $0x5b0] sm:$0xff]  ;;  %v2010_v12 = vrot.slane %v6631_v0, %v6545_v42  ;;  %v2018_v15 = vrot.slane %v6631_v0, %v6557_v1  ;;  %v2014_v16 = vrot.slane %v6631_v0, %v6550_v44  ;;  %v2022_v18 = vrot.slane %v6631_v0, %v6560_v7 }
 0x4ac   :  { %3761 = vmatmul.mubr.f32.vlgmr.msra.gmra.mrb[14].mxu1 %v3197_v53  ;;  %5863 = vmatpush3.bf16.msra.mxu0 %v5862_v8  ;;  %v5872_v53 = vpack.c.bf16 %v3374_v23, %v3373_v31  ;;  %v5904_v40 = vpack.c.bf16 %v3406_v34, %v3405_v32  ;;  %v5912_v8 = vpack.c.bf16 %v3410_v62, %v3409_v61  ;;  %v3382_v31 = vld [vmem:[#allocation13 + $0x4f8] sm:$0xff]  ;;  %v3413_v23 = vld [vmem:[#allocation13 + $0x5f0] sm:$0xff]  ;;  %v3416_v61 = vld [vmem:[#allocation13 + $0x608] sm:$0xff] }
 0x4ad   :  { %5895 = vmatpush3.bf16.msra.mxu1 %v5894_v9  ;;  %5865 = vmatprep.subr.bf16.mxu0 %v5864_v10  ;;  %v3394_v9 = vld [vmem:[#allocation13 + $0x558] sm:$0xff]  ;;  %v3379_v10 = vld [vmem:[#allocation13 + $0x4e0] sm:$0xff] }
 0x4ae   :  { %5897 = vmatprep.subr.bf16.mxu1 %v5896_v14  ;;  %v3412_v14 = vld [vmem:[#allocation13 + $0x5e8] sm:$0xff]  ;;  %v5914_v19 = vpack.c.bf16 %v3394_v9, %v3393_v6  ;;  %v3414_v32 = vld [vmem:[#allocation13 + $0x5f8] sm:$0xff]  ;;  %v3447_v62 = vld [vmem:[#allocation13 + $0x700] sm:$0xff] }
 0x4af   :  { %v5916_v24 = vpack.c.bf16 %v3412_v14, %v3411_v13  ;;  %v5920_v39 = vpack.c.bf16 %v3414_v32, %v3413_v23  ;;  %v3466_v6 = vld [vmem:[#allocation13 + $0x798] sm:$0xff]  ;;  %v3449_v13 = vld [vmem:[#allocation13 + $0x710] sm:$0xff] }
 0x4b0   :  { %5867 = vmatpush3.bf16.msra.mxu0 %v5866_v20  ;;  %v5884_v20 = vpack.c.bf16 %v3380_v11, %v3379_v10  ;;  %v3417_v11 = vld [vmem:[#allocation13 + $0x610] sm:$0xff]  ;;  %v5960_v14 = vpack.c.bf16 %v3466_v6, %v3465_v5  ;;  %v3443_v5 = vld [vmem:[#allocation13 + $0x6e0] sm:$0xff]  ;;  %v3444_v6 = vld [vmem:[#allocation13 + $0x6e8] sm:$0xff] }
 0x4b1   :  { %5899 = vmatpush3.bf16.msra.mxu1 %v5898_v21  ;;  %5869 = vmatprep.subr.bf16.mxu0 %v5868_v22  ;;  %v3363_v21 = vld [vmem:[#allocation13 + $0x460] sm:$0xff]  ;;  %v3364_v22 = vld [vmem:[#allocation13 + $0x468] sm:$0xff] }
 0x4b2   :  { %5901 = vmatprep.subr.bf16.mxu1 %v5900_v27  ;;  %v3381_v27 = vld [vmem:[#allocation13 + $0x4f0] sm:$0xff] }
 0x4b3   :  { %v5888_v29 = vpack.c.bf16 %v3382_v31, %v3381_v27  ;;  %v3452_v27 = vld [vmem:[#allocation13 + $0x728] sm:$0xff]  ;;  %v3470_v31 = vld [vmem:[#allocation13 + $0x7b8] sm:$0xff] }
 0x4b4   :  { %5871 = vmatpush3.bf16.msra.mxu0 %v5870_v35  ;;  %v5966_v32 = vpack.c.bf16 %v3452_v27, %v3451_v25  ;;  %v3429_v25 = vld [vmem:[#allocation13 + $0x670] sm:$0xff] }
 0x4b5   :  { %5903 = vmatpush3.bf16.msra.mxu1 %v5902_v28  ;;  %5873 = vmatprep.subr.bf16.mxu0 %v5872_v53  ;;  %v5886_v28 = vpack.c.bf16 %v3364_v22, %v3363_v21 }
 0x4b6   :  { %5905 = vmatprep.subr.bf16.mxu1 %v5904_v40  ;;  %v3366_v40 = vld [vmem:[#allocation13 + $0x478] sm:$0xff] }
 0x4b8   :  { %5875 = vmatpush3.bf16.msra.mxu0 %v5874_v48  ;;  %v3398_v48 = vld [vmem:[#allocation13 + $0x578] sm:$0xff] }
 0x4b9   :  { %5907 = vmatpush3.bf16.msra.mxu1 %v5906_v49  ;;  %5877 = vmatprep.subr.bf16.mxu0 %v5876_v51  ;;  %v3431_v49 = vld [vmem:[#allocation13 + $0x680] sm:$0xff]  ;;  %v3432_v51 = vld [vmem:[#allocation13 + $0x688] sm:$0xff]  ;;  %v5922_v56 = vpack.c.bf16 %v3398_v48, %v3397_v45 }
 0x4ba   :  { %5909 = vmatprep.subr.bf16.mxu1 %v5908_v43  ;;  %v5890_v43 = vpack.c.bf16 %v3366_v40, %v3365_v38  ;;  %v5924_v59 = vpack.c.bf16 %v3432_v51, %v3431_v49  ;;  %v3440_v38 = vld [vmem:[#allocation13 + $0x6c8] sm:$0xff]  ;;  %v3471_v40 = vld [vmem:[#allocation13 + $0x7c0] sm:$0xff] }
 0x4bb   :  { %v3472_v45 = vld [vmem:[#allocation13 + $0x7c8] sm:$0xff]  ;;  %v3455_v49 = vld [vmem:[#allocation13 + $0x740] sm:$0xff] }
 0x4bc   :  { %5879 = vmatpush3.bf16.msra.mxu0 %v5878_v63  ;;  %v5956_v63 = vpack.c.bf16 %v3464_v57, %v3463_v33  ;;  %v3424_v48 = vld [vmem:[#allocation13 + $0x648] sm:$0xff]  ;;  %v5972_v51 = vpack.c.bf16 %v3472_v45, %v3471_v40  ;;  %v3441_v33 = vld [vmem:[#allocation13 + $0x6d0] sm:$0xff]  ;;  %v3442_v57 = vld [vmem:[#allocation13 + $0x6d8] sm:$0xff] }
 0x4bd   :  { %5911 = vmatpush3.bf16.msra.mxu1 %v5910_v2  ;;  %5881 = vmatprep.subr.bf16.mxu0 %v5880_v3  ;;  %v3448_v2 = vld [vmem:[#allocation13 + $0x708] sm:$0xff]  ;;  %v3433_v3 = vld [vmem:[#allocation13 + $0x690] sm:$0xff] }
 0x4be   :  { %v2760_v42 = vpop.f32.mrb[8].mxu0  ;;  %5913 = vmatprep.subr.bf16.mxu1 %v5912_v8  ;;  %v5926_v8 = vpack.c.bf16 %v3416_v61, %v3415_v60  ;;  %v5958_v9 = vpack.c.bf16 %v3448_v2, %v3447_v62  ;;  %v5928_v10 = vpack.c.bf16 %v3434_v4, %v3433_v3  ;;  %v5944_v61 = vpack.c.bf16 %v3442_v57, %v3441_v33  ;;  %v3425_v62 = vld [vmem:[#allocation13 + $0x650] sm:$0xff]  ;;  %v3458_v4 = vld [vmem:[#allocation13 + $0x758] sm:$0xff] }
 0x4bf   :  { %v6641_v1 = vadd.f32 %v2760_v42, %v2010_v12  ;;  %v2902_v30 = vpop.f32.mrb[8].mxu1  ;;  %v2762_v44 = vpop.f32.mrb[9].mxu0  ;;  %v3418_v12 = vld [vmem:[#allocation13 + $0x618] sm:$0xff]  ;;  %v3419_v42 = vld [vmem:[#allocation13 + $0x620] sm:$0xff]  ;;  %v3457_v2 = vld [vmem:[#allocation13 + $0x750] sm:$0xff] }
 0x4c0   :  { %v6643_v34 = vadd.f32 %v2902_v30, %v2018_v15  ;;  %v6001_v7 = vadd.f32 %v2762_v44, %v2014_v16  ;;  %v2904_v35 = vpop.f32.mrb[9].mxu1  ;;  %5883 = vmatpush3.bf16.msra.mxu0 %v5882_v17  ;;  %v3450_v15 = vld [vmem:[#allocation13 + $0x718] sm:$0xff]  ;;  %v3435_v16 = vld [vmem:[#allocation13 + $0x6a0] sm:$0xff]  ;;  %v3436_v17 = vld [vmem:[#allocation13 + $0x6a8] sm:$0xff] }
 0x4c1   :  { %v3199_v53 = vmax.f32 %v6641_v1, 0.0  ;;  %v6003_v36 = vadd.f32 %v2904_v35, %v2022_v18  ;;  %5915 = vmatpush3.bf16.msra.mxu1 %v5914_v19  ;;  %5885 = vmatprep.subr.bf16.mxu0 %v5884_v20  ;;  %v3467_v18 = vld [vmem:[#allocation13 + $0x7a0] sm:$0xff]  ;;  %v3468_v19 = vld [vmem:[#allocation13 + $0x7a8] sm:$0xff]  ;;  %v5930_v20 = vpack.c.bf16 %v3418_v12, %v3417_v11  ;;  %v5962_v21 = vpack.c.bf16 %v3450_v15, %v3449_v13  ;;  %v3437_v1 = vld [vmem:[#allocation13 + $0x6b0] sm:$0xff] }
 0x4c2   :  { %v3201_v46 = vmax.f32 %v6643_v34, 0.0  ;;  %v3200_v47 = vmax.f32 %v6001_v7, 0.0  ;;  %5917 = vmatprep.subr.bf16.mxu1 %v5916_v24  ;;  %v5932_v22 = vpack.c.bf16 %v3436_v17, %v3435_v16  ;;  %v3420_v24 = vld [vmem:[#allocation13 + $0x628] sm:$0xff]  ;;  %v5964_v26 = vpack.c.bf16 %v3468_v19, %v3467_v18  ;;  %v3438_v30 = vld [vmem:[#allocation13 + $0x6b8] sm:$0xff]  ;;  %v3469_v44 = vld [vmem:[#allocation13 + $0x7b0] sm:$0xff] }
 0x4c3   :  { %3215 = vst [vmem:[#allocation19 + $0x40] sm:$0xff] %v3199_v53  ;;  %v3202_v52 = vmax.f32 %v6003_v36, 0.0  ;;  %v5934_v23 = vpack.c.bf16 %v3420_v24, %v3419_v42  ;;  %v5936_v34 = vpack.c.bf16 %v3438_v30, %v3437_v1  ;;  %v3421_v7 = vld [vmem:[#allocation13 + $0x630] sm:$0xff]  ;;  %v3422_v35 = vld [vmem:[#allocation13 + $0x638] sm:$0xff]  ;;  %v5978_v11 = vpack.c.bf16 %v3458_v4, %v3457_v2  ;;  %v3427_v13 = vld [vmem:[#allocation13 + $0x660] sm:$0xff] }
 0x4c4   :  { %3217 = vst [vmem:[#allocation19 + $0x50] sm:$0xff] %v3201_v46  ;;  %3216 = vst [vmem:[#allocation19 + $0x48] sm:$0xff] %v3200_v47  ;;  %5887 = vmatpush3.bf16.msra.mxu0 %v5886_v28  ;;  %3830 = vmatprep.mubr.f32.mxu0 %v3200_v47  ;;  %v3453_v28 = vld [vmem:[#allocation13 + $0x730] sm:$0xff]  ;;  %v3454_v36 = vld [vmem:[#allocation13 + $0x738] sm:$0xff]  ;;  %v5948_v12 = vpack.c.bf16 %v3444_v6, %v3443_v5 }
 0x4c5   :  { %3218 = vst [vmem:[#allocation19 + $0x58] sm:$0xff] %v3202_v52  ;;  %5919 = vmatpush3.bf16.msra.mxu1 %v5918_v37  ;;  %3900 = vmatprep.mubr.f32.mxu1 %v3202_v52  ;;  %v3439_v37 = vld [vmem:[#allocation13 + $0x6c0] sm:$0xff]  ;;  %v5970_v47 = vpack.c.bf16 %v3454_v36, %v3453_v28  ;;  %v3456_v52 = vld [vmem:[#allocation13 + $0x748] sm:$0xff]  ;;  %v3445_v18 = vld [vmem:[#allocation13 + $0x6f0] sm:$0xff] }
 0x4c6   :  { %5889 = vmatprep.subr.bf16.mxu0 %v5888_v29  ;;  %5921 = vmatprep.subr.bf16.mxu1 %v5920_v39  ;;  %v5940_v29 = vpack.c.bf16 %v3440_v38, %v3439_v37  ;;  %v3423_v39 = vld [vmem:[#allocation13 + $0x640] sm:$0xff]  ;;  %v5974_v60 = vpack.c.bf16 %v3456_v52, %v3455_v49  ;;  %v3460_v17 = vld [vmem:[#allocation13 + $0x768] sm:$0xff]  ;;  %v3446_v19 = vld [vmem:[#allocation13 + $0x6f8] sm:$0xff] }
 0x4c7   :  { %v3459_v15 = vld [vmem:[#allocation13 + $0x760] sm:$0xff]  ;;  %v5952_v24 = vpack.c.bf16 %v3446_v19, %v3445_v18  ;;  %v3461_v1 = vld [vmem:[#allocation13 + $0x770] sm:$0xff]  ;;  %v3462_v30 = vld [vmem:[#allocation13 + $0x778] sm:$0xff] }
 0x4c8   :  { %5891 = vmatpush3.bf16.msra.mxu0 %v5890_v43  ;;  %v3473_v43 = vld [vmem:[#allocation13 + $0x7d0] sm:$0xff]  ;;  %v5982_v42 = vpack.c.bf16 %v3460_v17, %v3459_v15 }
 0x4c9   :  { %5923 = vmatpush3.bf16.msra.mxu1 %v5922_v56  ;;  %5925 = vmatprep.subr.bf16.mxu0 %v5924_v59  ;;  %v3474_v56 = vld [vmem:[#allocation13 + $0x7d8] sm:$0xff]  ;;  %v5942_v59 = vpack.c.bf16 %v3424_v48, %v3423_v39 }
 0x4ca   :  { %5957 = vmatprep.subr.bf16.mxu1 %v5956_v63  ;;  %v3426_v63 = vld [vmem:[#allocation13 + $0x658] sm:$0xff]  ;;  %v5976_v3 = vpack.c.bf16 %v3474_v56, %v3473_v43 }
 0x4cb   :  { %3831 = vmatmul.mubr.f32.vlgmr.msra.gmra.mrb[16].mxu0 %v3199_v53  ;;  %v5968_v53 = vpack.c.bf16 %v3470_v31, %v3469_v44  ;;  %v5986_v31 = vpack.c.bf16 %v3462_v30, %v3461_v1 }
 0x4cc   :  { %3901 = vmatmul.mubr.f32.vlgmr.msra.gmra.mrb[16].mxu1 %v3201_v46  ;;  %5927 = vmatpush3.bf16.msra.mxu0 %v5926_v8  ;;  %v5938_v46 = vpack.c.bf16 %v3422_v35, %v3421_v7  ;;  %v3475_v8 = vld [vmem:[#allocation13 + $0x7e0] sm:$0xff]  ;;  %v2038_v7 = vrot.slane %v6631_v0, %v2005_v58 }
 0x4cd   :  { %5959 = vmatpush3.bf16.msra.mxu1 %v5958_v9  ;;  %5929 = vmatprep.subr.bf16.mxu0 %v5928_v10  ;;  %v3476_v9 = vld [vmem:[#allocation13 + $0x7e8] sm:$0xff]  ;;  %v5946_v10 = vpack.c.bf16 %v3426_v63, %v3425_v62  ;;  %v4107_v58 = vld [vmem:[#allocation14] ss:$0 sm:$0xff] }
 0x4ce   :  { %5961 = vmatprep.subr.bf16.mxu1 %v5960_v14  ;;  %v3428_v14 = vld [vmem:[#allocation13 + $0x668] sm:$0xff]  ;;  %v5980_v16 = vpack.c.bf16 %v3476_v9, %v3475_v8 }
 0x4d0   :  { %5931 = vmatpush3.bf16.msra.mxu0 %v5930_v20  ;;  %v3477_v20 = vld [vmem:[#allocation13 + $0x7f0] sm:$0xff] }
 0x4d1   :  { %5963 = vmatpush3.bf16.msra.mxu1 %v5962_v21  ;;  %5933 = vmatprep.subr.bf16.mxu0 %v5932_v22  ;;  %v3478_v21 = vld [vmem:[#allocation13 + $0x7f8] sm:$0xff]  ;;  %v5950_v22 = vpack.c.bf16 %v3428_v14, %v3427_v13 }
 0x4d2   :  { %5965 = vmatprep.subr.bf16.mxu1 %v5964_v26  ;;  %v3430_v26 = vld [vmem:[#allocation13 + $0x678] sm:$0xff]  ;;  %v5984_v27 = vpack.c.bf16 %v3478_v21, %v3477_v20 }
 0x4d3   :  { %v5954_v44 = vpack.c.bf16 %v3430_v26, %v3429_v25 }
 0x4d4   :  { %5935 = vmatpush3.bf16.msra.mxu0 %v5934_v23  ;;  %v2026_v23 = vrot.slane %v6631_v0, %v1993_v50 }
 0x4d5   :  { %5967 = vmatpush3.bf16.msra.mxu1 %v5966_v32  ;;  %5937 = vmatprep.subr.bf16.mxu0 %v5936_v34  ;;  %v2034_v32 = vrot.slane %v6631_v0, %v2001_v54  ;;  %v2030_v34 = vrot.slane %v6631_v0, %v1997_v55 }
 0x4d6   :  { %5969 = vmatprep.subr.bf16.mxu1 %v5968_v53 }
 0x4d8   :  { %5939 = vmatpush3.bf16.msra.mxu0 %v5938_v46 }
 0x4d9   :  { %5971 = vmatpush3.bf16.msra.mxu1 %v5970_v47  ;;  %5941 = vmatprep.subr.bf16.mxu0 %v5940_v29 }
 0x4da   :  { %5973 = vmatprep.subr.bf16.mxu1 %v5972_v51 }
 0x4dc   :  { %5943 = vmatpush3.bf16.msra.mxu0 %v5942_v59 }
 0x4dd   :  { %5975 = vmatpush3.bf16.msra.mxu1 %v5974_v60  ;;  %5945 = vmatprep.subr.bf16.mxu0 %v5944_v61 }
 0x4de   :  { %5977 = vmatprep.subr.bf16.mxu1 %v5976_v3 }
 0x4e0   :  { %5947 = vmatpush3.bf16.msra.mxu0 %v5946_v10 }
 0x4e1   :  { %5979 = vmatpush3.bf16.msra.mxu1 %v5978_v11  ;;  %5949 = vmatprep.subr.bf16.mxu0 %v5948_v12 }
 0x4e2   :  { %5981 = vmatprep.subr.bf16.mxu1 %v5980_v16 }
 0x4e4   :  { %5951 = vmatpush3.bf16.msra.mxu0 %v5950_v22 }
 0x4e5   :  { %5983 = vmatpush3.bf16.msra.mxu1 %v5982_v42  ;;  %5953 = vmatprep.subr.bf16.mxu0 %v5952_v24 }
 0x4e6   :  { %5985 = vmatprep.subr.bf16.mxu1 %v5984_v27 }
 0x4e8   :  { %5955 = vmatpush3.bf16.msra.mxu0 %v5954_v44 }
 0x4e9   :  { %5987 = vmatpush3.bf16.msra.mxu1 %v5986_v31 }
 0x53e   :  { %v3044_v35 = vpop.f32.mrb[10].mxu0 }
 0x53f   :  { %v6004_v28 = vadd.f32 %v3044_v35, %v2026_v23  ;;  %v3186_v53 = vpop.f32.mrb[10].mxu1  ;;  %v3046_v36 = vpop.f32.mrb[11].mxu0 }
 0x540   :  { %v6006_v37 = vadd.f32 %v3186_v53, %v2034_v32  ;;  %v6005_v38 = vadd.f32 %v3046_v36, %v2030_v34  ;;  %v3188_v40 = vpop.f32.mrb[11].mxu1 }
 0x541   :  { %v3203_v50 = vmax.f32 %v6004_v28, 0.0  ;;  %v6007_v45 = vadd.f32 %v3188_v40, %v2038_v7 }
 0x542   :  { %v3205_v46 = vmax.f32 %v6006_v37, 0.0  ;;  %v3204_v47 = vmax.f32 %v6005_v38, 0.0 }
 0x543   :  { %3219 = vst [vmem:[#allocation19 + $0x60] sm:$0xff] %v3203_v50  ;;  %v3206_v54 = vmax.f32 %v6007_v45, 0.0 }
 0x544   :  { %3221 = vst [vmem:[#allocation19 + $0x70] sm:$0xff] %v3205_v46  ;;  %3220 = vst [vmem:[#allocation19 + $0x68] sm:$0xff] %v3204_v47  ;;  %3970 = vmatprep.mubr.f32.mxu0 %v3204_v47 }
 0x545   :  { %3222 = vst [vmem:[#allocation19 + $0x78] sm:$0xff] %v3206_v54  ;;  %4040 = vmatprep.mubr.f32.mxu1 %v3206_v54  ;;  %3971 = vmatmul.mubr.f32.vlgmr.msra.gmra.mrb[18].mxu0 %v3203_v50 }
 0x546   :  { %4041 = vmatmul.mubr.f32.vlgmr.msra.gmra.mrb[18].mxu1 %v3205_v46 }
 0x55e   :  { %v4140_v41 = vpop.f32.mrb[12].mxu0 }
 0x55f   :  { %v4175_v55 = vpop.f32.mrb[12].mxu1  ;;  %v4141_v0 = vpop.f32.mrb[13].mxu0 }
 0x560   :  { %v4142_v29 = vadd.f32 %v4141_v0, %v4140_v41  ;;  %v4176_v39 = vpop.f32.mrb[13].mxu1 }
 0x561   :  { %v4177_v48 = vadd.f32 %v4176_v39, %v4175_v55 }
 0x562   :  { %v3553_v49 = vadd.f32 %v4142_v29, %v4107_v58 }
 0x564   :  { %v3623_v51 = vadd.f32 %v4177_v48, %v3553_v49 }
 0x57e   :  { %v4210_v52 = vpop.f32.mrb[14].mxu0 }
 0x57f   :  { %v4245_v33 = vpop.f32.mrb[14].mxu1  ;;  %v4211_v57 = vpop.f32.mrb[15].mxu0 }
 0x580   :  { %v4212_v43 = vadd.f32 %v4211_v57, %v4210_v52  ;;  %v4246_v56 = vpop.f32.mrb[15].mxu1 }
 0x581   :  { %v4247_v59 = vadd.f32 %v4246_v56, %v4245_v33 }
 0x582   :  { %v3693_v60 = vadd.f32 %v4212_v43, %v3623_v51 }
 0x584   :  { %v3763_v61 = vadd.f32 %v4247_v59, %v3693_v60 }
 0x59e   :  { %v4280_v62 = vpop.f32.mrb[16].mxu0 }
 0x59f   :  { %v4315_v63 = vpop.f32.mrb[16].mxu1  ;;  %v4281_v2 = vpop.f32.mrb[17].mxu0 }
 0x5a0   :  { %v4282_v3 = vadd.f32 %v4281_v2, %v4280_v62  ;;  %v4316_v4 = vpop.f32.mrb[17].mxu1 }
 0x5a1   :  { %v4317_v5 = vadd.f32 %v4316_v4, %v4315_v63 }
 0x5a2   :  { %v3833_v6 = vadd.f32 %v4282_v3, %v3763_v61 }
 0x5a3   :  { %6249 = shalt.err (!%p6246_p12)
}
 0x5a4   :  { %s6250_s30 = scalar_lea.hbm %s6717_s10, 512 }
 0x5a5   :  { %p6251_p13 = scmp.ne.s32.totalorder %s6717_s10, %s6250_s30  ;;  %p6254_p0 = scmp.lt.u32.totalorder %s6250_s30, %s6717_s10 }
 0x5a7   :  { %p6256_p1 = pnand %p6254_p0, %p6251_p13 }
 0x5a9   :  { %6259 = shalt.err (!%p6256_p1)
}
 0x5aa   :  { %4066 = dma.vmem_to_hbm [thread:$0]  %s4064_s24, 512, %s6717_s10, [#allocation18]   ;;  %v3903_v8 = vadd.f32 %v4317_v5, %v3833_v6 }
 0x5ab   :  { %s6260_s29 = scalar_lea.vmem %s4054_s21, 512  ;;  %p6265_p3 = scmp.lt.s32.totalorder %s4054_s21, %s4054_s21 }
 0x5ac   :  { %p6261_p2 = scmp.ne.s32.totalorder %s4054_s21, %s6260_s29  ;;  %p6266_p4 = scmp.lt.s32.totalorder %s6260_s29, %s6260_s29 }
 0x5ae   :  { %p6267_p5 = por %p6266_p4, %p6265_p3 }
 0x5b0   :  { %p6268_p6 = pnand %p6267_p5, %p6261_p2 }
 0x5b2   :  { %6271 = shalt.err (!%p6268_p6)
}
 0x5b3   :  { %s6272_s15 = scalar_lea.hbm %s6716_s9, 512 }
 0x5b4   :  { %p6273_p7 = scmp.ne.s32.totalorder %s6716_s9, %s6272_s15  ;;  %p6276_p8 = scmp.lt.u32.totalorder %s6272_s15, %s6716_s9 }
 0x5b6   :  { %p6278_p9 = pnand %p6276_p8, %p6273_p7 }
 0x5b8   :  { %6281 = shalt.err (!%p6278_p9)
}
 0x5b9   :  { %4056 = dma.vmem_to_hbm [thread:$0]  %s4054_s21, 512, %s6716_s9, [#allocation4]  }
 0x5ba   :  { %s6358_s7 = smov [#allocation19]  }
 0x5bb   :  { %s4073_s6 = sshll.u32 %s6358_s7, 4  ;;  %s4074_s6 = int_to_ptr.vmem [resolvable:$true] %s4073_s6 }
 0x5bc   :  { %s6282_s8 = scalar_lea.vmem %s4074_s6, 2048  ;;  %p6287_p11 = scmp.lt.s32.totalorder %s4074_s6, %s4074_s6 }
 0x5bd   :  { %p6283_p10 = scmp.ne.s32.totalorder %s4074_s6, %s6282_s8  ;;  %p6288_p12 = scmp.lt.s32.totalorder %s6282_s8, %s6282_s8 }
 0x5bf   :  { %p6289_p13 = por %p6288_p12, %p6287_p11 }
 0x5c1   :  { %p6290_p0 = pnand %p6289_p13, %p6283_p10 }
 0x5c3   :  { %6293 = shalt.err (!%p6290_p0)
}
 0x5c4   :  { %s6294_s24 = scalar_lea.hbm %s6718_s11, 2048 }
 0x5c5   :  { %p6295_p1 = scmp.ne.s32.totalorder %s6718_s11, %s6294_s24  ;;  %p6298_p2 = scmp.lt.u32.totalorder %s6294_s24, %s6718_s11 }
 0x5c7   :  { %p6300_p3 = pnand %p6298_p2, %p6295_p1 }
 0x5c9   :  { %6303 = shalt.err (!%p6300_p3)
}
 0x5ca   :  { %4076 = dma.vmem_to_hbm [thread:$0]  %s4074_s6, 2048, %s6718_s11, [#allocation18]  }
 0x5cb   :  { %s6359_s30 = smov [#allocation20]  }
 0x5cc   :  { %s4083_s26 = sshll.u32 %s6359_s30, 4  ;;  %s4084_s26 = int_to_ptr.vmem [resolvable:$true] %s4083_s26 }
 0x5cd   :  { %s6304_s2 = scalar_lea.vmem %s4084_s26, 128  ;;  %p6309_p5 = scmp.lt.s32.totalorder %s4084_s26, %s4084_s26 }
 0x5ce   :  { %p6305_p4 = scmp.ne.s32.totalorder %s4084_s26, %s6304_s2  ;;  %p6310_p6 = scmp.lt.s32.totalorder %s6304_s2, %s6304_s2 }
 0x5d0   :  { %p6311_p7 = por %p6310_p6, %p6309_p5 }
 0x5d2   :  { %p6312_p8 = pnand %p6311_p7, %p6305_p4 }
 0x618   :  { %v4350_v9 = vpop.f32.mrb[18].mxu0 }
 0x619   :  { %v4385_v10 = vpop.f32.mrb[18].mxu1  ;;  %v4351_v11 = vpop.f32.mrb[19].mxu0 }
 0x61a   :  { %v4352_v12 = vadd.f32 %v4351_v11, %v4350_v9  ;;  %v4386_v13 = vpop.f32.mrb[19].mxu1 }
 0x61b   :  { %v4387_v14 = vadd.f32 %v4386_v13, %v4385_v10 }
 0x61c   :  { %v3973_v15 = vadd.f32 %v4352_v12, %v3903_v8 }
 0x61e   :  { %v4043_v16 = vadd.f32 %v4387_v14, %v3973_v15 }
 0x620   :  { %4046 = vst [vmem:[#allocation20] sm:$0xff] %v4043_v16 }
 0x621   :  { %6315 = shalt.err (!%p6312_p8)
}
 0x622   :  { %s6316_s18 = scalar_lea.hbm %s6719_s12, 128 }
 0x623   :  { %p6317_p9 = scmp.ne.s32.totalorder %s6719_s12, %s6316_s18  ;;  %p6320_p10 = scmp.lt.u32.totalorder %s6316_s18, %s6719_s12 }
 0x625   :  { %p6322_p11 = pnand %p6320_p10, %p6317_p9 }
 0x627   :  { %6325 = shalt.err (!%p6322_p11)
}
 0x628   :  { %4086 = dma.vmem_to_hbm [thread:$0]  %s4084_s26, 128, %s6719_s12, [#allocation21]  }
 0x629   :  { %6336 = dma.done.wait [#allocation4], 512  }
 0x62a   :  { %6337 = vsyncadd [#allocation4], 4294966784 }
 0x62b   :  { %6338 = dma.done.wait [#allocation18], 2560  }
 0x62c   :  { %6339 = vsyncadd [#allocation18], 4294964736 }
 0x62d   :  { %6340 = dma.done.wait [#allocation21], 128  }
 0x62e   :  { %6341 = vsyncadd [#allocation21], 4294967168 }
 0x62f   :  { %4099 = vsyncpa [#allocation3], 1 }
 0x630   :  { %4100 = vsyncpa [#allocation6], 1 }
 0x631   :  { %4101 = vsyncpa [#allocation9], 1 }
 0x632   :  { %4102 = vsyncpa [#allocation12], 1 }
 0x633   :  { %4103 = vsyncpa [#allocation15], 1 }
 0x634   :  { %4104 = vsyncpa [#allocation4], 1 }
 0x635   :  { %4105 = vsyncpa [#allocation18], 1 }
 0x636   :  { %4106 = vsyncpa [#allocation21], 1 }

</bundles_post_ra>
